<compile_context>
chip_gen: v6e
topology: v6e:2x2x1
jax: 0.10.0
libtpu: 0.0.40
codegen_flags: <defaults>
</compile_context>

<pallas_src>
import jax
import jax.numpy as jnp
import numpy as np
from jax.experimental import pallas as pl
from jax.experimental.pallas import tpu as pltpu

NEG = -1e30


def _leaky(x, slope):
    return jnp.where(x > 0, x, slope * x)


def smiles_encoder_kernel(
    x_ref,        # (Bn, F0)         bf16  node features of this molecule group
    ae_ref,       # (1, 4, Bn, Bn)   bf16  folded edge logits (NEG on non-edges), per layer
    wcat0_ref,    # (F0, 2D+1)       bf16  layer 0: [lin_src | lin_res | lin_src @ att_dst]
    wcatstk_ref,  # (3, D, 2D+1)     bf16  layers 1..3, same packing
    asrc_ref,     # (4, D)           f32   att_src per layer
    bias_ref,     # (4, D)           f32   bias per layer
    wout_ref,     # (2, D, Dout)     f32   [Wout_max_half, Wout_mean_half]
    bout_ref,     # (1, Dout)        f32
    out_ref,      # (1, B, Dout)     f32   one row per molecule in the group
):
    D = asrc_ref.shape[1]
    B = out_ref.shape[1]
    Bn = x_ref.shape[0]
    Np = Bn // B
    asrc_all = asrc_ref[...]
    bias_all = bias_ref[...]

    def gat_layer(h_bf, Wcat, layer):
        # one shared-LHS bf16 MXU matmul -> hp / residual / s_dst together (f32 accumulate)
        z = jnp.dot(h_bf, Wcat, preferred_element_type=jnp.float32)        # (Bn, 2D+1)
        hp = z[:, :D]                                                      # (Bn, D)
        res = z[:, D:2 * D]                                                # (Bn, D)
        s_dst = z[:, 2 * D:2 * D + 1]                                      # (Bn, 1)
        s_src = jnp.sum(hp * asrc_all[layer:layer + 1, :], axis=1)         # (Bn,)
        # non-edges (incl. cross-molecule pairs) already carry NEG inside ae
        e = s_dst + s_src + ae_ref[0, layer].astype(jnp.float32)           # (Bn, Bn)
        e = _leaky(e, 0.2)                                                 # GATConv negative_slope
        e = e - jnp.max(e, axis=1, keepdims=True)                          # softmax over sources j
        p = jnp.exp(e)                                                     # masked logits -> exactly 0
        att = p * pl.reciprocal(jnp.sum(p, axis=1, keepdims=True), approx=True)
        msg = jnp.dot(att.astype(jnp.bfloat16), hp.astype(jnp.bfloat16),
                      preferred_element_type=jnp.float32)                  # (Bn, D) MXU aggregate
        return msg + res + bias_all[layer:layer + 1, :]

    # initial_conv -> leaky -> conv1 -> leaky -> conv2 -> leaky -> conv3
    h = gat_layer(x_ref[...], wcat0_ref[...], 0)
    h = _leaky(h, 0.01)
    for l in range(3):
        h = gat_layer(h.astype(jnp.bfloat16), wcatstk_ref[l], l + 1)
        if l < 2:
            h = _leaky(h, 0.01)

    # per-molecule global max / mean pool (static, tile-aligned slices of the group)
    gmax_rows, gmean_rows = [], []
    for b in range(B):
        hb = h[b * Np:(b + 1) * Np, :]                                     # (Np, D)
        gmax_rows.append(jnp.max(hb, axis=0, keepdims=True))
        gmean_rows.append(jnp.mean(hb, axis=0, keepdims=True))
    gmax = _leaky(jnp.concatenate(gmax_rows, axis=0), 0.01)                # (B, D)
    gmean = _leaky(jnp.concatenate(gmean_rows, axis=0), 0.01)              # (B, D)
    # split-Wout epilogue: no lane concat of [gmax|gmean]; one (B, Dout) store per step
    row = (jnp.dot(gmax, wout_ref[0], preferred_element_type=jnp.float32)
           + jnp.dot(gmean, wout_ref[1], preferred_element_type=jnp.float32)
           + bout_ref[...])                                                # (B, Dout)
    out_ref[0] = row


def smiles_encoder_forward(x, adj, ead, p, n_graphs, nodes_per_graph, mols_per_group):
    N, F0 = x.shape
    D = p["Asrc"].shape[1]
    Dout = p["bout"].shape[-1]
    B = mols_per_group
    Np = nodes_per_graph
    Bn = B * Np                      # nodes per super-graph (128 here; 256 on v6e/v7x)
    assert n_graphs % B == 0
    Ng = n_graphs // B

    # ---- exact parameter folds, computed once outside the kernel ----
    # edge attention: alpha_e[i,j] = edge_attr[i,j,:] @ (W_edge @ att_edge)
    w_ea = jnp.einsum("lkd,ld->lk", p["Wedge"], p["Aedge"])                     # (4, 11)
    # shared-LHS fusion: h @ [W | Wres | W @ att_dst]   (cast once to bf16 for MXU)
    wdst0 = (p["W0"] @ p["Adst"][0])[:, None]                                   # (F0, 1)
    wcat0 = jnp.concatenate([p["W0"], p["Wres0"], wdst0], axis=1).astype(jnp.bfloat16)
    wdstk = jnp.einsum("lij,lj->li", p["Wstk"], p["Adst"][1:])[..., None]       # (3, D, 1)
    wcatstk = jnp.concatenate([p["Wstk"], p["Wresstk"], wdstk], axis=2).astype(jnp.bfloat16)
    wout = jnp.stack([p["Wout"][:D], p["Wout"][D:]], axis=0)                    # (2, D, Dout)

    # ---- group B molecules per grid step (block-diagonal super-graph blocks) ----
    def diag_blocks(a):
        return jnp.stack([a[g * Bn:(g + 1) * Bn, g * Bn:(g + 1) * Bn] for g in range(Ng)])

    adj_grp = diag_blocks(adj)                                                  # (Ng, Bn, Bn)
    ead_grp = diag_blocks(ead)                                                  # (Ng, Bn, Bn, 11)
    ae = jnp.einsum("gijk,lk->glij", ead_grp, w_ea)                             # (Ng, 4, Bn, Bn)
    # fold the non-edge mask into the logits (replaces the in-kernel adj compare+select)
    ae = jnp.where(adj_grp[:, None] > 0.5, ae, NEG).astype(jnp.bfloat16)
    x_bf = x.astype(jnp.bfloat16)

    grid_spec = pltpu.PrefetchScalarGridSpec(
        num_scalar_prefetch=0,
        grid=(Ng,),
        in_specs=[
            pl.BlockSpec((Bn, F0), lambda g: (g, 0)),                # x (bf16)
            pl.BlockSpec((1, 4, Bn, Bn), lambda g: (g, 0, 0, 0)),    # folded edge logits (bf16)
            pl.BlockSpec((F0, 2 * D + 1), lambda g: (0, 0)),         # wcat0 (resident)
            pl.BlockSpec((3, D, 2 * D + 1), lambda g: (0, 0, 0)),    # wcat layers 1..3
            pl.BlockSpec((4, D), lambda g: (0, 0)),                  # att_src
            pl.BlockSpec((4, D), lambda g: (0, 0)),                  # bias
            pl.BlockSpec((2, D, Dout), lambda g: (0, 0, 0)),         # Wout split in halves
            pl.BlockSpec((1, Dout), lambda g: (0, 0)),               # bout
        ],
        out_specs=pl.BlockSpec((1, B, Dout), lambda g: (g, 0, 0)),
    )
    out = pl.pallas_call(
        smiles_encoder_kernel,
        out_shape=jax.ShapeDtypeStruct((Ng, B, Dout), jnp.float32),
        grid_spec=grid_spec,
        compiler_params=pltpu.CompilerParams(
            dimension_semantics=("parallel",),       # groups independent; both TCs on v7x
            vmem_limit_bytes=32 * 1024 * 1024,       # ample (per-step ae tile ~128 KiB bf16),
                                                     # and within v7x's 64 MiB physical VMEM
        ),
    )(x_bf, ae, wcat0, wcatstk, p["Asrc"], p["Bias"], wout, p["bout"])
    return out.reshape(n_graphs, Dout)


# ----------------------------- glue / setup -----------------------------

def build_graph(key, n_graphs, nodes_per_graph, node_feat, edge_dim=11):
    N = n_graphs * nodes_per_graph
    src, dst = [], []
    for g in range(n_graphs):
        b = g * nodes_per_graph
        for i in range(nodes_per_graph - 1):           # bidirectional chain per molecule
            src += [b + i, b + i + 1]
            dst += [b + i + 1, b + i]
    src = np.array(src)
    dst = np.array(dst)
    E = len(src)

    k1, k2 = jax.random.split(key)
    x = jax.random.normal(k1, (N, node_feat), jnp.float32)
    edge_attr = jax.random.uniform(k2, (E, edge_dim), jnp.float32)
    ea_np = np.asarray(edge_attr)

    adj = np.zeros((N, N), np.float32)
    ead = np.zeros((N, N, edge_dim), np.float32)
    for e in range(E):
        adj[dst[e], src[e]] = 1.0
        ead[dst[e], src[e]] = ea_np[e]
    # self loops; edge_attr fill_value='mean' (mean of incoming-edge attrs)
    for i in range(N):
        inc = ea_np[dst == i]
        fill = inc.mean(axis=0) if len(inc) else np.zeros(edge_dim, np.float32)
        adj[i, i] = 1.0
        ead[i, i] = fill
    assert np.all(np.diag(adj) == 1.0)      # no empty attention row (guards 0/0)
    return jnp.asarray(x), jnp.asarray(adj), jnp.asarray(ead)


def build_params(key, F0, D, Dout, edge_dim=11, scale=0.1):
    keys = jax.random.split(key, 11)
    it = iter(keys)

    def rnd(shape):
        return scale * jax.random.normal(next(it), shape, jnp.float32)

    return dict(
        W0=rnd((F0, D)), Wres0=rnd((F0, D)),
        Wstk=rnd((3, D, D)), Wresstk=rnd((3, D, D)),
        Asrc=rnd((4, D)), Adst=rnd((4, D)),
        Wedge=rnd((4, edge_dim, D)), Aedge=rnd((4, D)),
        Bias=rnd((4, D)),
        Wout=rnd((2 * D, Dout)), bout=rnd((1, Dout)),
    )


def ref_forward(x, adj, ead, p, n_graphs, nodes_per_graph):
    def leaky(v, s):
        return jnp.where(v > 0, v, s * v)

    def gat(h_in, W, Wres, asrc, adst, We, ae_vec, bias):
        hp = h_in @ W
        s_src = hp @ asrc
        s_dst = hp @ adst
        ae = jnp.einsum("ijk,kd,d->ij", ead, We, ae_vec)
        e = s_dst[:, None] + s_src[None, :] + ae
        e = leaky(e, 0.2)
        e = jnp.where(adj > 0.5, e, NEG)
        e = e - e.max(axis=1, keepdims=True)
        w = jnp.exp(e) * adj
        att = w / w.sum(axis=1, keepdims=True)
        return att @ hp + h_in @ Wres + bias

    h = gat(x, p["W0"], p["Wres0"], p["Asrc"][0], p["Adst"][0],
            p["Wedge"][0], p["Aedge"][0], p["Bias"][0])
    h = leaky(h, 0.01)
    for l in range(3):
        h = gat(h, p["Wstk"][l], p["Wresstk"][l], p["Asrc"][l + 1], p["Adst"][l + 1],
                p["Wedge"][l + 1], p["Aedge"][l + 1], p["Bias"][l + 1])
        if l < 2:
            h = leaky(h, 0.01)

    Np = nodes_per_graph
    rows = []
    for g in range(n_graphs):
        hg = h[g * Np:(g + 1) * Np]
        pooled = leaky(jnp.concatenate([hg.max(axis=0), hg.mean(axis=0)]), 0.01)
        rows.append(pooled @ p["Wout"] + p["bout"][0])
    return jnp.stack(rows)


if __name__ == "__main__":
    key = jax.random.PRNGKey(0)
    kg, kp = jax.random.split(key)
    F0, D, Dout = 16, 32, 24          # node_n_feat, smiles_node_embed_dim, smiles_graph_encoder_dim
    G, Np = 16, 16                    # molecules in the batch, nodes per molecule
    B = 8                             # molecules per grid step -> 128-node super-graphs, grid=(2,)
                                      # (use B*Np=256 on v6e/v7x for full-width MXU tiles)

    x, adj, ead = build_graph(kg, n_graphs=G, nodes_per_graph=Np, node_feat=F0)
    params = build_params(kp, F0, D, Dout)

    out = smiles_encoder_forward(x, adj, ead, params, G, Np, B)
    out = jax.block_until_ready(out)

    ref = ref_forward(x, adj, ead, params, G, Np)
    err = np.max(np.abs(np.asarray(out) - np.asarray(ref)))
    # tolerance relaxed vs the f32-only version: bf16 MXU operands / bf16 edge-logit slab
    assert np.allclose(np.asarray(out), np.asarray(ref), rtol=3e-2, atol=3e-2), f"max abs diff {err}"
    print("KERNEL_OK")
</pallas_src>

<mosaic_0001>
module attributes {stable_mosaic.version = 11 : i64} {
  func.func @smiles_encoder_kernel(%arg0: i32, %arg1: memref<128x16xbf16, #tpu.memory_space<vmem>>, %arg2: memref<1x4x128x128xbf16, #tpu.memory_space<vmem>>, %arg3: memref<16x65xbf16, #tpu.memory_space<vmem>>, %arg4: memref<3x32x65xbf16, #tpu.memory_space<vmem>>, %arg5: memref<4x32xf32, #tpu.memory_space<vmem>>, %arg6: memref<4x32xf32, #tpu.memory_space<vmem>>, %arg7: memref<2x32x24xf32, #tpu.memory_space<vmem>>, %arg8: memref<1x24xf32, #tpu.memory_space<vmem>>, %arg9: memref<1x8x24xf32, #tpu.memory_space<vmem>>) attributes {dimension_semantics = [#tpu.dimension_semantics<parallel>], iteration_bounds = array<i64: 2>, scalar_prefetch = 0 : i64, scratch_operands = 0 : i64, tpu.core_type = #tpu.core_type<tc>, window_params = [{transform_indices = @transform_0, window_bounds = array<i64: 128, 16>}, {transform_indices = @transform_1, window_bounds = array<i64: 1, 4, 128, 128>}, {pipeline_mode = #tpu.pipeline_mode<synchronous>, transform_indices = @transform_2, window_bounds = array<i64: 16, 65>}, {pipeline_mode = #tpu.pipeline_mode<synchronous>, transform_indices = @transform_3, window_bounds = array<i64: 3, 32, 65>}, {pipeline_mode = #tpu.pipeline_mode<synchronous>, transform_indices = @transform_4, window_bounds = array<i64: 4, 32>}, {pipeline_mode = #tpu.pipeline_mode<synchronous>, transform_indices = @transform_5, window_bounds = array<i64: 4, 32>}, {pipeline_mode = #tpu.pipeline_mode<synchronous>, transform_indices = @transform_6, window_bounds = array<i64: 2, 32, 24>}, {pipeline_mode = #tpu.pipeline_mode<synchronous>, transform_indices = @transform_7, window_bounds = array<i64: 1, 24>}, {transform_indices = @transform_8, window_bounds = array<i64: 1, 8, 24>}]} {
    %c0 = arith.constant 0 : index
    %c0_0 = arith.constant 0 : index
    %0 = vector.load %arg5[%c0, %c0_0] : memref<4x32xf32, #tpu.memory_space<vmem>>, vector<4x32xf32>
    %c0_1 = arith.constant 0 : index
    %c0_2 = arith.constant 0 : index
    %1 = vector.load %arg6[%c0_1, %c0_2] : memref<4x32xf32, #tpu.memory_space<vmem>>, vector<4x32xf32>
    %c0_3 = arith.constant 0 : index
    %c0_4 = arith.constant 0 : index
    %2 = vector.load %arg1[%c0_3, %c0_4] : memref<128x16xbf16, #tpu.memory_space<vmem>>, vector<128x16xbf16>
    %c0_5 = arith.constant 0 : index
    %c0_6 = arith.constant 0 : index
    %3 = vector.load %arg3[%c0_5, %c0_6] : memref<16x65xbf16, #tpu.memory_space<vmem>>, vector<16x65xbf16>
    %cst = arith.constant dense<0.000000e+00> : vector<128x65xf32>
    %4 = tpu.matmul %2, %3, %cst {dimension_numbers = #tpu.dot_dimension_numbers<[1], [0], [0], [1], [0, 0, 1, 1], [], []>} : vector<128x16xbf16>, vector<16x65xbf16>, vector<128x65xf32> -> vector<128x65xf32>
    %5 = vector.extract_strided_slice %4 {offsets = [0, 0], sizes = [128, 32], strides = [1, 1]} : vector<128x65xf32> to vector<128x32xf32>
    %6 = vector.extract_strided_slice %4 {offsets = [0, 32], sizes = [128, 32], strides = [1, 1]} : vector<128x65xf32> to vector<128x32xf32>
    %7 = vector.extract_strided_slice %4 {offsets = [0, 64], sizes = [128, 1], strides = [1, 1]} : vector<128x65xf32> to vector<128x1xf32>
    %8 = vector.extract_strided_slice %0 {offsets = [0, 0], sizes = [1, 32], strides = [1, 1]} : vector<4x32xf32> to vector<1x32xf32>
    %9 = vector.broadcast %8 : vector<1x32xf32> to vector<128x32xf32>
    %10 = arith.mulf %5, %9 : vector<128x32xf32>
    %cst_7 = arith.constant dense<0.000000e+00> : vector<128xf32>
    %11 = vector.multi_reduction <add>, %10, %cst_7 [1] : vector<128x32xf32> to vector<128xf32>
    %12 = vector.shape_cast %11 : vector<128xf32> to vector<1x128xf32>
    %13 = vector.broadcast %7 : vector<128x1xf32> to vector<128x128xf32>
    %14 = vector.broadcast %12 : vector<1x128xf32> to vector<128x128xf32>
    %15 = arith.addf %13, %14 : vector<128x128xf32>
    %c0_8 = arith.constant 0 : index
    %c0_9 = arith.constant 0 : index
    %c0_10 = arith.constant 0 : index
    %c0_11 = arith.constant 0 : index
    %16 = vector.load %arg2[%c0_8, %c0_9, %c0_10, %c0_11] : memref<1x4x128x128xbf16, #tpu.memory_space<vmem>>, vector<1x1x128x128xbf16>
    %17 = vector.shape_cast %16 : vector<1x1x128x128xbf16> to vector<128x128xbf16>
    %18 = arith.extf %17 : vector<128x128xbf16> to vector<128x128xf32>
    %19 = arith.addf %15, %18 : vector<128x128xf32>
    %cst_12 = arith.constant 0.000000e+00 : f32
    %20 = vector.broadcast %cst_12 : f32 to vector<128x128xf32>
    %21 = arith.cmpf ogt, %19, %20 : vector<128x128xf32>
    %cst_13 = arith.constant 2.000000e-01 : f32
    %22 = vector.broadcast %cst_13 : f32 to vector<128x128xf32>
    %23 = arith.mulf %22, %19 : vector<128x128xf32>
    %24 = arith.select %21, %19, %23 : vector<128x128xi1>, vector<128x128xf32>
    %cst_14 = arith.constant dense<0xFF800000> : vector<128xf32>
    %25 = vector.multi_reduction <maximumf>, %24, %cst_14 [1] : vector<128x128xf32> to vector<128xf32>
    %26 = vector.shape_cast %25 : vector<128xf32> to vector<128x1xf32>
    %27 = vector.broadcast %26 : vector<128x1xf32> to vector<128x128xf32>
    %28 = arith.subf %24, %27 : vector<128x128xf32>
    %29 = math.exp %28 : vector<128x128xf32>
    %cst_15 = arith.constant dense<0.000000e+00> : vector<128xf32>
    %30 = vector.multi_reduction <add>, %29, %cst_15 [1] : vector<128x128xf32> to vector<128xf32>
    %31 = vector.shape_cast %30 : vector<128xf32> to vector<128x1xf32>
    %32 = tpu.reciprocal %31 {approx = true} : vector<128x1xf32> -> vector<128x1xf32>
    %33 = vector.broadcast %32 : vector<128x1xf32> to vector<128x128xf32>
    %34 = arith.mulf %29, %33 : vector<128x128xf32>
    %35 = arith.truncf %34 : vector<128x128xf32> to vector<128x128xbf16>
    %36 = arith.truncf %5 : vector<128x32xf32> to vector<128x32xbf16>
    %cst_16 = arith.constant dense<0.000000e+00> : vector<128x32xf32>
    %37 = tpu.matmul %35, %36, %cst_16 {dimension_numbers = #tpu.dot_dimension_numbers<[1], [0], [0], [1], [0, 0, 1, 1], [], []>} : vector<128x128xbf16>, vector<128x32xbf16>, vector<128x32xf32> -> vector<128x32xf32>
    %38 = arith.addf %37, %6 : vector<128x32xf32>
    %39 = vector.extract_strided_slice %1 {offsets = [0, 0], sizes = [1, 32], strides = [1, 1]} : vector<4x32xf32> to vector<1x32xf32>
    %40 = vector.broadcast %39 : vector<1x32xf32> to vector<128x32xf32>
    %41 = arith.addf %38, %40 : vector<128x32xf32>
    %cst_17 = arith.constant 0.000000e+00 : f32
    %42 = vector.broadcast %cst_17 : f32 to vector<128x32xf32>
    %43 = arith.cmpf ogt, %41, %42 : vector<128x32xf32>
    %cst_18 = arith.constant 0.00999999977 : f32
    %44 = vector.broadcast %cst_18 : f32 to vector<128x32xf32>
    %45 = arith.mulf %44, %41 : vector<128x32xf32>
    %46 = arith.select %43, %41, %45 : vector<128x32xi1>, vector<128x32xf32>
    %47 = arith.truncf %46 : vector<128x32xf32> to vector<128x32xbf16>
    %c0_19 = arith.constant 0 : index
    %c0_20 = arith.constant 0 : index
    %c0_21 = arith.constant 0 : index
    %48 = vector.load %arg4[%c0_19, %c0_20, %c0_21] : memref<3x32x65xbf16, #tpu.memory_space<vmem>>, vector<1x32x65xbf16>
    %49 = vector.shape_cast %48 : vector<1x32x65xbf16> to vector<32x65xbf16>
    %cst_22 = arith.constant dense<0.000000e+00> : vector<128x65xf32>
    %50 = tpu.matmul %47, %49, %cst_22 {dimension_numbers = #tpu.dot_dimension_numbers<[1], [0], [0], [1], [0, 0, 1, 1], [], []>} : vector<128x32xbf16>, vector<32x65xbf16>, vector<128x65xf32> -> vector<128x65xf32>
    %51 = vector.extract_strided_slice %50 {offsets = [0, 0], sizes = [128, 32], strides = [1, 1]} : vector<128x65xf32> to vector<128x32xf32>
    %52 = vector.extract_strided_slice %50 {offsets = [0, 32], sizes = [128, 32], strides = [1, 1]} : vector<128x65xf32> to vector<128x32xf32>
    %53 = vector.extract_strided_slice %50 {offsets = [0, 64], sizes = [128, 1], strides = [1, 1]} : vector<128x65xf32> to vector<128x1xf32>
    %54 = vector.extract_strided_slice %0 {offsets = [1, 0], sizes = [1, 32], strides = [1, 1]} : vector<4x32xf32> to vector<1x32xf32>
    %55 = vector.broadcast %54 : vector<1x32xf32> to vector<128x32xf32>
    %56 = arith.mulf %51, %55 : vector<128x32xf32>
    %cst_23 = arith.constant dense<0.000000e+00> : vector<128xf32>
    %57 = vector.multi_reduction <add>, %56, %cst_23 [1] : vector<128x32xf32> to vector<128xf32>
    %58 = vector.shape_cast %57 : vector<128xf32> to vector<1x128xf32>
    %59 = vector.broadcast %53 : vector<128x1xf32> to vector<128x128xf32>
    %60 = vector.broadcast %58 : vector<1x128xf32> to vector<128x128xf32>
    %61 = arith.addf %59, %60 : vector<128x128xf32>
    %c0_24 = arith.constant 0 : index
    %c1 = arith.constant 1 : index
    %c0_25 = arith.constant 0 : index
    %c0_26 = arith.constant 0 : index
    %62 = vector.load %arg2[%c0_24, %c1, %c0_25, %c0_26] : memref<1x4x128x128xbf16, #tpu.memory_space<vmem>>, vector<1x1x128x128xbf16>
    %63 = vector.shape_cast %62 : vector<1x1x128x128xbf16> to vector<128x128xbf16>
    %64 = arith.extf %63 : vector<128x128xbf16> to vector<128x128xf32>
    %65 = arith.addf %61, %64 : vector<128x128xf32>
    %cst_27 = arith.constant 0.000000e+00 : f32
    %66 = vector.broadcast %cst_27 : f32 to vector<128x128xf32>
    %67 = arith.cmpf ogt, %65, %66 : vector<128x128xf32>
    %cst_28 = arith.constant 2.000000e-01 : f32
    %68 = vector.broadcast %cst_28 : f32 to vector<128x128xf32>
    %69 = arith.mulf %68, %65 : vector<128x128xf32>
    %70 = arith.select %67, %65, %69 : vector<128x128xi1>, vector<128x128xf32>
    %cst_29 = arith.constant dense<0xFF800000> : vector<128xf32>
    %71 = vector.multi_reduction <maximumf>, %70, %cst_29 [1] : vector<128x128xf32> to vector<128xf32>
    %72 = vector.shape_cast %71 : vector<128xf32> to vector<128x1xf32>
    %73 = vector.broadcast %72 : vector<128x1xf32> to vector<128x128xf32>
    %74 = arith.subf %70, %73 : vector<128x128xf32>
    %75 = math.exp %74 : vector<128x128xf32>
    %cst_30 = arith.constant dense<0.000000e+00> : vector<128xf32>
    %76 = vector.multi_reduction <add>, %75, %cst_30 [1] : vector<128x128xf32> to vector<128xf32>
    %77 = vector.shape_cast %76 : vector<128xf32> to vector<128x1xf32>
    %78 = tpu.reciprocal %77 {approx = true} : vector<128x1xf32> -> vector<128x1xf32>
    %79 = vector.broadcast %78 : vector<128x1xf32> to vector<128x128xf32>
    %80 = arith.mulf %75, %79 : vector<128x128xf32>
    %81 = arith.truncf %80 : vector<128x128xf32> to vector<128x128xbf16>
    %82 = arith.truncf %51 : vector<128x32xf32> to vector<128x32xbf16>
    %cst_31 = arith.constant dense<0.000000e+00> : vector<128x32xf32>
    %83 = tpu.matmul %81, %82, %cst_31 {dimension_numbers = #tpu.dot_dimension_numbers<[1], [0], [0], [1], [0, 0, 1, 1], [], []>} : vector<128x128xbf16>, vector<128x32xbf16>, vector<128x32xf32> -> vector<128x32xf32>
    %84 = arith.addf %83, %52 : vector<128x32xf32>
    %85 = vector.extract_strided_slice %1 {offsets = [1, 0], sizes = [1, 32], strides = [1, 1]} : vector<4x32xf32> to vector<1x32xf32>
    %86 = vector.broadcast %85 : vector<1x32xf32> to vector<128x32xf32>
    %87 = arith.addf %84, %86 : vector<128x32xf32>
    %cst_32 = arith.constant 0.000000e+00 : f32
    %88 = vector.broadcast %cst_32 : f32 to vector<128x32xf32>
    %89 = arith.cmpf ogt, %87, %88 : vector<128x32xf32>
    %cst_33 = arith.constant 0.00999999977 : f32
    %90 = vector.broadcast %cst_33 : f32 to vector<128x32xf32>
    %91 = arith.mulf %90, %87 : vector<128x32xf32>
    %92 = arith.select %89, %87, %91 : vector<128x32xi1>, vector<128x32xf32>
    %93 = arith.truncf %92 : vector<128x32xf32> to vector<128x32xbf16>
    %c1_34 = arith.constant 1 : index
    %c0_35 = arith.constant 0 : index
    %c0_36 = arith.constant 0 : index
    %94 = vector.load %arg4[%c1_34, %c0_35, %c0_36] : memref<3x32x65xbf16, #tpu.memory_space<vmem>>, vector<1x32x65xbf16>
    %95 = vector.shape_cast %94 : vector<1x32x65xbf16> to vector<32x65xbf16>
    %cst_37 = arith.constant dense<0.000000e+00> : vector<128x65xf32>
    %96 = tpu.matmul %93, %95, %cst_37 {dimension_numbers = #tpu.dot_dimension_numbers<[1], [0], [0], [1], [0, 0, 1, 1], [], []>} : vector<128x32xbf16>, vector<32x65xbf16>, vector<128x65xf32> -> vector<128x65xf32>
    %97 = vector.extract_strided_slice %96 {offsets = [0, 0], sizes = [128, 32], strides = [1, 1]} : vector<128x65xf32> to vector<128x32xf32>
    %98 = vector.extract_strided_slice %96 {offsets = [0, 32], sizes = [128, 32], strides = [1, 1]} : vector<128x65xf32> to vector<128x32xf32>
    %99 = vector.extract_strided_slice %96 {offsets = [0, 64], sizes = [128, 1], strides = [1, 1]} : vector<128x65xf32> to vector<128x1xf32>
    %100 = vector.extract_strided_slice %0 {offsets = [2, 0], sizes = [1, 32], strides = [1, 1]} : vector<4x32xf32> to vector<1x32xf32>
    %101 = vector.broadcast %100 : vector<1x32xf32> to vector<128x32xf32>
    %102 = arith.mulf %97, %101 : vector<128x32xf32>
    %cst_38 = arith.constant dense<0.000000e+00> : vector<128xf32>
    %103 = vector.multi_reduction <add>, %102, %cst_38 [1] : vector<128x32xf32> to vector<128xf32>
    %104 = vector.shape_cast %103 : vector<128xf32> to vector<1x128xf32>
    %105 = vector.broadcast %99 : vector<128x1xf32> to vector<128x128xf32>
    %106 = vector.broadcast %104 : vector<1x128xf32> to vector<128x128xf32>
    %107 = arith.addf %105, %106 : vector<128x128xf32>
    %c0_39 = arith.constant 0 : index
    %c2 = arith.constant 2 : index
    %c0_40 = arith.constant 0 : index
    %c0_41 = arith.constant 0 : index
    %108 = vector.load %arg2[%c0_39, %c2, %c0_40, %c0_41] : memref<1x4x128x128xbf16, #tpu.memory_space<vmem>>, vector<1x1x128x128xbf16>
    %109 = vector.shape_cast %108 : vector<1x1x128x128xbf16> to vector<128x128xbf16>
    %110 = arith.extf %109 : vector<128x128xbf16> to vector<128x128xf32>
    %111 = arith.addf %107, %110 : vector<128x128xf32>
    %cst_42 = arith.constant 0.000000e+00 : f32
    %112 = vector.broadcast %cst_42 : f32 to vector<128x128xf32>
    %113 = arith.cmpf ogt, %111, %112 : vector<128x128xf32>
    %cst_43 = arith.constant 2.000000e-01 : f32
    %114 = vector.broadcast %cst_43 : f32 to vector<128x128xf32>
    %115 = arith.mulf %114, %111 : vector<128x128xf32>
    %116 = arith.select %113, %111, %115 : vector<128x128xi1>, vector<128x128xf32>
    %cst_44 = arith.constant dense<0xFF800000> : vector<128xf32>
    %117 = vector.multi_reduction <maximumf>, %116, %cst_44 [1] : vector<128x128xf32> to vector<128xf32>
    %118 = vector.shape_cast %117 : vector<128xf32> to vector<128x1xf32>
    %119 = vector.broadcast %118 : vector<128x1xf32> to vector<128x128xf32>
    %120 = arith.subf %116, %119 : vector<128x128xf32>
    %121 = math.exp %120 : vector<128x128xf32>
    %cst_45 = arith.constant dense<0.000000e+00> : vector<128xf32>
    %122 = vector.multi_reduction <add>, %121, %cst_45 [1] : vector<128x128xf32> to vector<128xf32>
    %123 = vector.shape_cast %122 : vector<128xf32> to vector<128x1xf32>
    %124 = tpu.reciprocal %123 {approx = true} : vector<128x1xf32> -> vector<128x1xf32>
    %125 = vector.broadcast %124 : vector<128x1xf32> to vector<128x128xf32>
    %126 = arith.mulf %121, %125 : vector<128x128xf32>
    %127 = arith.truncf %126 : vector<128x128xf32> to vector<128x128xbf16>
    %128 = arith.truncf %97 : vector<128x32xf32> to vector<128x32xbf16>
    %cst_46 = arith.constant dense<0.000000e+00> : vector<128x32xf32>
    %129 = tpu.matmul %127, %128, %cst_46 {dimension_numbers = #tpu.dot_dimension_numbers<[1], [0], [0], [1], [0, 0, 1, 1], [], []>} : vector<128x128xbf16>, vector<128x32xbf16>, vector<128x32xf32> -> vector<128x32xf32>
    %130 = arith.addf %129, %98 : vector<128x32xf32>
    %131 = vector.extract_strided_slice %1 {offsets = [2, 0], sizes = [1, 32], strides = [1, 1]} : vector<4x32xf32> to vector<1x32xf32>
    %132 = vector.broadcast %131 : vector<1x32xf32> to vector<128x32xf32>
    %133 = arith.addf %130, %132 : vector<128x32xf32>
    %cst_47 = arith.constant 0.000000e+00 : f32
    %134 = vector.broadcast %cst_47 : f32 to vector<128x32xf32>
    %135 = arith.cmpf ogt, %133, %134 : vector<128x32xf32>
    %cst_48 = arith.constant 0.00999999977 : f32
    %136 = vector.broadcast %cst_48 : f32 to vector<128x32xf32>
    %137 = arith.mulf %136, %133 : vector<128x32xf32>
    %138 = arith.select %135, %133, %137 : vector<128x32xi1>, vector<128x32xf32>
    %139 = arith.truncf %138 : vector<128x32xf32> to vector<128x32xbf16>
    %c2_49 = arith.constant 2 : index
    %c0_50 = arith.constant 0 : index
    %c0_51 = arith.constant 0 : index
    %140 = vector.load %arg4[%c2_49, %c0_50, %c0_51] : memref<3x32x65xbf16, #tpu.memory_space<vmem>>, vector<1x32x65xbf16>
    %141 = vector.shape_cast %140 : vector<1x32x65xbf16> to vector<32x65xbf16>
    %cst_52 = arith.constant dense<0.000000e+00> : vector<128x65xf32>
    %142 = tpu.matmul %139, %141, %cst_52 {dimension_numbers = #tpu.dot_dimension_numbers<[1], [0], [0], [1], [0, 0, 1, 1], [], []>} : vector<128x32xbf16>, vector<32x65xbf16>, vector<128x65xf32> -> vector<128x65xf32>
    %143 = vector.extract_strided_slice %142 {offsets = [0, 0], sizes = [128, 32], strides = [1, 1]} : vector<128x65xf32> to vector<128x32xf32>
    %144 = vector.extract_strided_slice %142 {offsets = [0, 32], sizes = [128, 32], strides = [1, 1]} : vector<128x65xf32> to vector<128x32xf32>
    %145 = vector.extract_strided_slice %142 {offsets = [0, 64], sizes = [128, 1], strides = [1, 1]} : vector<128x65xf32> to vector<128x1xf32>
    %146 = vector.extract_strided_slice %0 {offsets = [3, 0], sizes = [1, 32], strides = [1, 1]} : vector<4x32xf32> to vector<1x32xf32>
    %147 = vector.broadcast %146 : vector<1x32xf32> to vector<128x32xf32>
    %148 = arith.mulf %143, %147 : vector<128x32xf32>
    %cst_53 = arith.constant dense<0.000000e+00> : vector<128xf32>
    %149 = vector.multi_reduction <add>, %148, %cst_53 [1] : vector<128x32xf32> to vector<128xf32>
    %150 = vector.shape_cast %149 : vector<128xf32> to vector<1x128xf32>
    %151 = vector.broadcast %145 : vector<128x1xf32> to vector<128x128xf32>
    %152 = vector.broadcast %150 : vector<1x128xf32> to vector<128x128xf32>
    %153 = arith.addf %151, %152 : vector<128x128xf32>
    %c0_54 = arith.constant 0 : index
    %c3 = arith.constant 3 : index
    %c0_55 = arith.constant 0 : index
    %c0_56 = arith.constant 0 : index
    %154 = vector.load %arg2[%c0_54, %c3, %c0_55, %c0_56] : memref<1x4x128x128xbf16, #tpu.memory_space<vmem>>, vector<1x1x128x128xbf16>
    %155 = vector.shape_cast %154 : vector<1x1x128x128xbf16> to vector<128x128xbf16>
    %156 = arith.extf %155 : vector<128x128xbf16> to vector<128x128xf32>
    %157 = arith.addf %153, %156 : vector<128x128xf32>
    %cst_57 = arith.constant 0.000000e+00 : f32
    %158 = vector.broadcast %cst_57 : f32 to vector<128x128xf32>
    %159 = arith.cmpf ogt, %157, %158 : vector<128x128xf32>
    %cst_58 = arith.constant 2.000000e-01 : f32
    %160 = vector.broadcast %cst_58 : f32 to vector<128x128xf32>
    %161 = arith.mulf %160, %157 : vector<128x128xf32>
    %162 = arith.select %159, %157, %161 : vector<128x128xi1>, vector<128x128xf32>
    %cst_59 = arith.constant dense<0xFF800000> : vector<128xf32>
    %163 = vector.multi_reduction <maximumf>, %162, %cst_59 [1] : vector<128x128xf32> to vector<128xf32>
    %164 = vector.shape_cast %163 : vector<128xf32> to vector<128x1xf32>
    %165 = vector.broadcast %164 : vector<128x1xf32> to vector<128x128xf32>
    %166 = arith.subf %162, %165 : vector<128x128xf32>
    %167 = math.exp %166 : vector<128x128xf32>
    %cst_60 = arith.constant dense<0.000000e+00> : vector<128xf32>
    %168 = vector.multi_reduction <add>, %167, %cst_60 [1] : vector<128x128xf32> to vector<128xf32>
    %169 = vector.shape_cast %168 : vector<128xf32> to vector<128x1xf32>
    %170 = tpu.reciprocal %169 {approx = true} : vector<128x1xf32> -> vector<128x1xf32>
    %171 = vector.broadcast %170 : vector<128x1xf32> to vector<128x128xf32>
    %172 = arith.mulf %167, %171 : vector<128x128xf32>
    %173 = arith.truncf %172 : vector<128x128xf32> to vector<128x128xbf16>
    %174 = arith.truncf %143 : vector<128x32xf32> to vector<128x32xbf16>
    %cst_61 = arith.constant dense<0.000000e+00> : vector<128x32xf32>
    %175 = tpu.matmul %173, %174, %cst_61 {dimension_numbers = #tpu.dot_dimension_numbers<[1], [0], [0], [1], [0, 0, 1, 1], [], []>} : vector<128x128xbf16>, vector<128x32xbf16>, vector<128x32xf32> -> vector<128x32xf32>
    %176 = arith.addf %175, %144 : vector<128x32xf32>
    %177 = vector.extract_strided_slice %1 {offsets = [3, 0], sizes = [1, 32], strides = [1, 1]} : vector<4x32xf32> to vector<1x32xf32>
    %178 = vector.broadcast %177 : vector<1x32xf32> to vector<128x32xf32>
    %179 = arith.addf %176, %178 : vector<128x32xf32>
    %180 = vector.extract_strided_slice %179 {offsets = [0, 0], sizes = [16, 32], strides = [1, 1]} : vector<128x32xf32> to vector<16x32xf32>
    %cst_62 = arith.constant dense<0xFF800000> : vector<32xf32>
    %181 = vector.multi_reduction <maximumf>, %180, %cst_62 [0] : vector<16x32xf32> to vector<32xf32>
    %182 = vector.shape_cast %181 : vector<32xf32> to vector<1x32xf32>
    %cst_63 = arith.constant dense<0.000000e+00> : vector<32xf32>
    %183 = vector.multi_reduction <add>, %180, %cst_63 [0] : vector<16x32xf32> to vector<32xf32>
    %184 = vector.shape_cast %183 : vector<32xf32> to vector<1x32xf32>
    %cst_64 = arith.constant 1.600000e+01 : f32
    %185 = vector.broadcast %cst_64 : f32 to vector<1x32xf32>
    %186 = arith.divf %184, %185 : vector<1x32xf32>
    %187 = vector.extract_strided_slice %179 {offsets = [16, 0], sizes = [16, 32], strides = [1, 1]} : vector<128x32xf32> to vector<16x32xf32>
    %cst_65 = arith.constant dense<0xFF800000> : vector<32xf32>
    %188 = vector.multi_reduction <maximumf>, %187, %cst_65 [0] : vector<16x32xf32> to vector<32xf32>
    %189 = vector.shape_cast %188 : vector<32xf32> to vector<1x32xf32>
    %cst_66 = arith.constant dense<0.000000e+00> : vector<32xf32>
    %190 = vector.multi_reduction <add>, %187, %cst_66 [0] : vector<16x32xf32> to vector<32xf32>
    %191 = vector.shape_cast %190 : vector<32xf32> to vector<1x32xf32>
    %cst_67 = arith.constant 1.600000e+01 : f32
    %192 = vector.broadcast %cst_67 : f32 to vector<1x32xf32>
    %193 = arith.divf %191, %192 : vector<1x32xf32>
    %194 = vector.extract_strided_slice %179 {offsets = [32, 0], sizes = [16, 32], strides = [1, 1]} : vector<128x32xf32> to vector<16x32xf32>
    %cst_68 = arith.constant dense<0xFF800000> : vector<32xf32>
    %195 = vector.multi_reduction <maximumf>, %194, %cst_68 [0] : vector<16x32xf32> to vector<32xf32>
    %196 = vector.shape_cast %195 : vector<32xf32> to vector<1x32xf32>
    %cst_69 = arith.constant dense<0.000000e+00> : vector<32xf32>
    %197 = vector.multi_reduction <add>, %194, %cst_69 [0] : vector<16x32xf32> to vector<32xf32>
    %198 = vector.shape_cast %197 : vector<32xf32> to vector<1x32xf32>
    %cst_70 = arith.constant 1.600000e+01 : f32
    %199 = vector.broadcast %cst_70 : f32 to vector<1x32xf32>
    %200 = arith.divf %198, %199 : vector<1x32xf32>
    %201 = vector.extract_strided_slice %179 {offsets = [48, 0], sizes = [16, 32], strides = [1, 1]} : vector<128x32xf32> to vector<16x32xf32>
    %cst_71 = arith.constant dense<0xFF800000> : vector<32xf32>
    %202 = vector.multi_reduction <maximumf>, %201, %cst_71 [0] : vector<16x32xf32> to vector<32xf32>
    %203 = vector.shape_cast %202 : vector<32xf32> to vector<1x32xf32>
    %cst_72 = arith.constant dense<0.000000e+00> : vector<32xf32>
    %204 = vector.multi_reduction <add>, %201, %cst_72 [0] : vector<16x32xf32> to vector<32xf32>
    %205 = vector.shape_cast %204 : vector<32xf32> to vector<1x32xf32>
    %cst_73 = arith.constant 1.600000e+01 : f32
    %206 = vector.broadcast %cst_73 : f32 to vector<1x32xf32>
    %207 = arith.divf %205, %206 : vector<1x32xf32>
    %208 = vector.extract_strided_slice %179 {offsets = [64, 0], sizes = [16, 32], strides = [1, 1]} : vector<128x32xf32> to vector<16x32xf32>
    %cst_74 = arith.constant dense<0xFF800000> : vector<32xf32>
    %209 = vector.multi_reduction <maximumf>, %208, %cst_74 [0] : vector<16x32xf32> to vector<32xf32>
    %210 = vector.shape_cast %209 : vector<32xf32> to vector<1x32xf32>
    %cst_75 = arith.constant dense<0.000000e+00> : vector<32xf32>
    %211 = vector.multi_reduction <add>, %208, %cst_75 [0] : vector<16x32xf32> to vector<32xf32>
    %212 = vector.shape_cast %211 : vector<32xf32> to vector<1x32xf32>
    %cst_76 = arith.constant 1.600000e+01 : f32
    %213 = vector.broadcast %cst_76 : f32 to vector<1x32xf32>
    %214 = arith.divf %212, %213 : vector<1x32xf32>
    %215 = vector.extract_strided_slice %179 {offsets = [80, 0], sizes = [16, 32], strides = [1, 1]} : vector<128x32xf32> to vector<16x32xf32>
    %cst_77 = arith.constant dense<0xFF800000> : vector<32xf32>
    %216 = vector.multi_reduction <maximumf>, %215, %cst_77 [0] : vector<16x32xf32> to vector<32xf32>
    %217 = vector.shape_cast %216 : vector<32xf32> to vector<1x32xf32>
    %cst_78 = arith.constant dense<0.000000e+00> : vector<32xf32>
    %218 = vector.multi_reduction <add>, %215, %cst_78 [0] : vector<16x32xf32> to vector<32xf32>
    %219 = vector.shape_cast %218 : vector<32xf32> to vector<1x32xf32>
    %cst_79 = arith.constant 1.600000e+01 : f32
    %220 = vector.broadcast %cst_79 : f32 to vector<1x32xf32>
    %221 = arith.divf %219, %220 : vector<1x32xf32>
    %222 = vector.extract_strided_slice %179 {offsets = [96, 0], sizes = [16, 32], strides = [1, 1]} : vector<128x32xf32> to vector<16x32xf32>
    %cst_80 = arith.constant dense<0xFF800000> : vector<32xf32>
    %223 = vector.multi_reduction <maximumf>, %222, %cst_80 [0] : vector<16x32xf32> to vector<32xf32>
    %224 = vector.shape_cast %223 : vector<32xf32> to vector<1x32xf32>
    %cst_81 = arith.constant dense<0.000000e+00> : vector<32xf32>
    %225 = vector.multi_reduction <add>, %222, %cst_81 [0] : vector<16x32xf32> to vector<32xf32>
    %226 = vector.shape_cast %225 : vector<32xf32> to vector<1x32xf32>
    %cst_82 = arith.constant 1.600000e+01 : f32
    %227 = vector.broadcast %cst_82 : f32 to vector<1x32xf32>
    %228 = arith.divf %226, %227 : vector<1x32xf32>
    %229 = vector.extract_strided_slice %179 {offsets = [112, 0], sizes = [16, 32], strides = [1, 1]} : vector<128x32xf32> to vector<16x32xf32>
    %cst_83 = arith.constant dense<0xFF800000> : vector<32xf32>
    %230 = vector.multi_reduction <maximumf>, %229, %cst_83 [0] : vector<16x32xf32> to vector<32xf32>
    %231 = vector.shape_cast %230 : vector<32xf32> to vector<1x32xf32>
    %cst_84 = arith.constant dense<0.000000e+00> : vector<32xf32>
    %232 = vector.multi_reduction <add>, %229, %cst_84 [0] : vector<16x32xf32> to vector<32xf32>
    %233 = vector.shape_cast %232 : vector<32xf32> to vector<1x32xf32>
    %cst_85 = arith.constant 1.600000e+01 : f32
    %234 = vector.broadcast %cst_85 : f32 to vector<1x32xf32>
    %235 = arith.divf %233, %234 : vector<1x32xf32>
    %236 = tpu.concatenate %182, %189, %196, %203, %210, %217, %224, %231 in 0 : vector<1x32xf32>, vector<1x32xf32>, vector<1x32xf32>, vector<1x32xf32>, vector<1x32xf32>, vector<1x32xf32>, vector<1x32xf32>, vector<1x32xf32> -> vector<8x32xf32>
    %cst_86 = arith.constant 0.000000e+00 : f32
    %237 = vector.broadcast %cst_86 : f32 to vector<8x32xf32>
    %238 = arith.cmpf ogt, %236, %237 : vector<8x32xf32>
    %cst_87 = arith.constant 0.00999999977 : f32
    %239 = vector.broadcast %cst_87 : f32 to vector<8x32xf32>
    %240 = arith.mulf %239, %236 : vector<8x32xf32>
    %241 = arith.select %238, %236, %240 : vector<8x32xi1>, vector<8x32xf32>
    %242 = tpu.concatenate %186, %193, %200, %207, %214, %221, %228, %235 in 0 : vector<1x32xf32>, vector<1x32xf32>, vector<1x32xf32>, vector<1x32xf32>, vector<1x32xf32>, vector<1x32xf32>, vector<1x32xf32>, vector<1x32xf32> -> vector<8x32xf32>
    %cst_88 = arith.constant 0.000000e+00 : f32
    %243 = vector.broadcast %cst_88 : f32 to vector<8x32xf32>
    %244 = arith.cmpf ogt, %242, %243 : vector<8x32xf32>
    %cst_89 = arith.constant 0.00999999977 : f32
    %245 = vector.broadcast %cst_89 : f32 to vector<8x32xf32>
    %246 = arith.mulf %245, %242 : vector<8x32xf32>
    %247 = arith.select %244, %242, %246 : vector<8x32xi1>, vector<8x32xf32>
    %c0_90 = arith.constant 0 : index
    %c0_91 = arith.constant 0 : index
    %c0_92 = arith.constant 0 : index
    %248 = vector.load %arg7[%c0_90, %c0_91, %c0_92] : memref<2x32x24xf32, #tpu.memory_space<vmem>>, vector<1x32x24xf32>
    %249 = vector.shape_cast %248 : vector<1x32x24xf32> to vector<32x24xf32>
    %cst_93 = arith.constant dense<0.000000e+00> : vector<8x24xf32>
    %250 = tpu.matmul %241, %249, %cst_93 {dimension_numbers = #tpu.dot_dimension_numbers<[1], [0], [0], [1], [0, 0, 1, 1], [], []>} : vector<8x32xf32>, vector<32x24xf32>, vector<8x24xf32> -> vector<8x24xf32>
    %c1_94 = arith.constant 1 : index
    %c0_95 = arith.constant 0 : index
    %c0_96 = arith.constant 0 : index
    %251 = vector.load %arg7[%c1_94, %c0_95, %c0_96] : memref<2x32x24xf32, #tpu.memory_space<vmem>>, vector<1x32x24xf32>
    %252 = vector.shape_cast %251 : vector<1x32x24xf32> to vector<32x24xf32>
    %cst_97 = arith.constant dense<0.000000e+00> : vector<8x24xf32>
    %253 = tpu.matmul %247, %252, %cst_97 {dimension_numbers = #tpu.dot_dimension_numbers<[1], [0], [0], [1], [0, 0, 1, 1], [], []>} : vector<8x32xf32>, vector<32x24xf32>, vector<8x24xf32> -> vector<8x24xf32>
    %254 = arith.addf %250, %253 : vector<8x24xf32>
    %c0_98 = arith.constant 0 : index
    %c0_99 = arith.constant 0 : index
    %255 = vector.load %arg8[%c0_98, %c0_99] : memref<1x24xf32, #tpu.memory_space<vmem>>, vector<1x24xf32>
    %256 = vector.broadcast %255 : vector<1x24xf32> to vector<8x24xf32>
    %257 = arith.addf %254, %256 : vector<8x24xf32>
    %c0_100 = arith.constant 0 : index
    %c0_101 = arith.constant 0 : index
    %c0_102 = arith.constant 0 : index
    %258 = vector.load %arg9[%c0_100, %c0_101, %c0_102] : memref<1x8x24xf32, #tpu.memory_space<vmem>>, vector<1x8x24xf32>
    %259 = vector.shape_cast %258 : vector<1x8x24xf32> to vector<8x24xf32>
    %260 = vector.shape_cast %257 : vector<8x24xf32> to vector<1x8x24xf32>
    tpu.vector_store %arg9[%c0_100, %c0_101, %c0_102], %260 {strides = array<i32>} : memref<1x8x24xf32, #tpu.memory_space<vmem>>, vector<1x8x24xf32>,
    return
  }
  func.func @transform_0(%arg0: i32) -> (i32, i32) {
    %c0_i32 = arith.constant 0 : i32
    %c0_i32_0 = arith.constant 0 : i32
    return %arg0, %c0_i32 : i32, i32
  }
  func.func @transform_1(%arg0: i32) -> (i32, i32, i32, i32) {
    %c0_i32 = arith.constant 0 : i32
    %c0_i32_0 = arith.constant 0 : i32
    %c0_i32_1 = arith.constant 0 : i32
    %c0_i32_2 = arith.constant 0 : i32
    return %arg0, %c0_i32, %c0_i32_0, %c0_i32_1 : i32, i32, i32, i32
  }
  func.func @transform_2(%arg0: i32) -> (i32, i32) {
    %c0_i32 = arith.constant 0 : i32
    %c0_i32_0 = arith.constant 0 : i32
    %c0_i32_1 = arith.constant 0 : i32
    return %c0_i32, %c0_i32_0 : i32, i32
  }
  func.func @transform_3(%arg0: i32) -> (i32, i32, i32) {
    %c0_i32 = arith.constant 0 : i32
    %c0_i32_0 = arith.constant 0 : i32
    %c0_i32_1 = arith.constant 0 : i32
    %c0_i32_2 = arith.constant 0 : i32
    return %c0_i32, %c0_i32_0, %c0_i32_1 : i32, i32, i32
  }
  func.func @transform_4(%arg0: i32) -> (i32, i32) {
    %c0_i32 = arith.constant 0 : i32
    %c0_i32_0 = arith.constant 0 : i32
    %c0_i32_1 = arith.constant 0 : i32
    return %c0_i32, %c0_i32_0 : i32, i32
  }
  func.func @transform_5(%arg0: i32) -> (i32, i32) {
    %c0_i32 = arith.constant 0 : i32
    %c0_i32_0 = arith.constant 0 : i32
    %c0_i32_1 = arith.constant 0 : i32
    return %c0_i32, %c0_i32_0 : i32, i32
  }
  func.func @transform_6(%arg0: i32) -> (i32, i32, i32) {
    %c0_i32 = arith.constant 0 : i32
    %c0_i32_0 = arith.constant 0 : i32
    %c0_i32_1 = arith.constant 0 : i32
    %c0_i32_2 = arith.constant 0 : i32
    return %c0_i32, %c0_i32_0, %c0_i32_1 : i32, i32, i32
  }
  func.func @transform_7(%arg0: i32) -> (i32, i32) {
    %c0_i32 = arith.constant 0 : i32
    %c0_i32_0 = arith.constant 0 : i32
    %c0_i32_1 = arith.constant 0 : i32
    return %c0_i32, %c0_i32_0 : i32, i32
  }
  func.func @transform_8(%arg0: i32) -> (i32, i32, i32) {
    %c0_i32 = arith.constant 0 : i32
    %c0_i32_0 = arith.constant 0 : i32
    %c0_i32_1 = arith.constant 0 : i32
    return %arg0, %c0_i32, %c0_i32_0 : i32, i32, i32
  }
}

</mosaic_0001>

<bundles_post_ra>
// kernel: tpu_custom_call.1
= control target key start
LH: loop header
LB: loop body
LE: loop exit
PB: predicated region body
PF: predicated region fallthrough
CT: control target
= control target key end

     0   :  { %13 = vsyncpa [#allocation3], 0  ;;  %s7409_s0 = inlined_call_operand.vmem [shape: bf16[256,16], index: 0, kind: input, shape index: {}]   ;;  %s7410_s1 = inlined_call_operand.hbm [shape: bf16[2,4,128,128], index: 1, kind: input, shape index: {}]   ;;  %s7411_s2 = inlined_call_operand.vmem [shape: bf16[16,65], index: 2, kind: input, shape index: {}]   ;;  %s7412_s3 = inlined_call_operand.vmem [shape: bf16[3,32,65], index: 3, kind: input, shape index: {}]   ;;  %s7413_s4 = inlined_call_operand.vmem [shape: f32[4,32], index: 4, kind: input, shape index: {}]   ;;  %s7414_s5 = inlined_call_operand.vmem [shape: f32[4,32], index: 5, kind: input, shape index: {}]   ;;  %s7415_s6 = inlined_call_operand.vmem [shape: f32[2,32,24], index: 6, kind: input, shape index: {}]   ;;  %s7416_s7 = inlined_call_operand.vmem [shape: f32[1,24], index: 7, kind: input, shape index: {}]   ;;  %s7417_s8 = inlined_call_operand.hbm [shape: f32[2,8,24], index: 8, kind: output, shape index: {}]  }
   0x1   :  { %15 = vsyncpa [#allocation3 + $0x1], 0 }
   0x2   :  { %16 = vsyncpa [#allocation4], 0 }
   0x3   :  { %18 = vsyncpa [#allocation4 + $0x1], 0  ;;  %s5467_s27 = smov 0   ;;  %s5469_s28 = smov 0  }
   0x4   :  { %s5471_s29 = smov 0   ;;  %s5473_s30 = smov 0  }
   0x5 LB: > { %s5488_s9 = sadd.s32 4294967295, %s5412_s30   ;;  %s4347_s10 = sadd.s32 4294967294, %s5412_s30   ;;  %s5412_s30 = sphi %s5473_s30, %s7482_s30   ;;  %s5408_s29 = sphi %s5471_s29, %s7481_s29   ;;  %s5404_s28 = sphi %s5469_s28, %s7480_s28   ;;  %s5400_s27 = sphi %s5467_s27, %s7479_s27  }
   0x6   : > { %s5492_s11 = sadd.s32 1, %s5412_s30   ;;  %s57_s12 = sadd.s32 1, %s5408_s29 }
   0x7   : > { %s54_s13 = ssub.s32 %s5412_s30, %s5492_s11  ;;  %p64_p0 = scmp.ne.s32.totalorder %s5408_s29, %s5404_s28 }
   0x8   : > { %p55_p1 = scmp.eq.s32.totalorder %s54_s13, 0  ;;  %p65_p2 = scmp.eq.s32.totalorder %s5412_s30, 0 }
   0x9   : > { %p70_p3 = scmp.ne.s32.totalorder %s5404_s28, %s5400_s27  ;;  %p71_p4 = scmp.eq.s32.totalorder %s5488_s9, 0 }
   0xa   : > { %s5504_s14 = scalar_select %p55_p1, %s5408_s29, %s57_s12  }
   0xb   : > { %p5506_p5 = por %p65_p2, %p64_p0  ;;  %p5510_p6 = por %p71_p4, %p70_p3 }
   0xc   : > { %7436 = sst [smem:[#allocation8_spill]] %s5504_s14  ;;  %p220_p7 = scmp.eq.s32.totalorder %s5488_s9, 1 }
   0xd   : > { %s7438_s16 = scalar_select %p5510_p6, 1, 0 }
   0xe   : > { %p226_p8 = scmp.eq.s32.totalorder %s4347_s10, 1  ;;  %p5001_p10 = scmp.lt.s32.totalorder %s5412_s30, 2 }
   0xf   : > { %p5517_p11 = por %p220_p7, %p64_p0  ;;  %s273_s19 = sand.u32 1, %s5408_s29  }
  0x10   : > { %p5521_p12 = por %p226_p8, %p70_p3  ;;  %s4472_s20 = sshll.u32 %s5412_s30, 12 }
  0x11   : > { %s7439_s17 = scalar_select %p5517_p11, 1, 0 }
  0x12   : > { %s7440_s18 = scalar_select %p5521_p12, 1, 0 }
  0x13   : > { %s4350_s21 = sshll.u32 %s273_s19, 8  ;;  %s5530_s24 = scalar_lea.hbm %s7410_s1, %s4472_s20 }
  0x14   : > { %s277_s25 = scalar_lea.vmem [#allocation2], %s4350_s21  ;;  %p5534_p13 = pnand %p5001_p10, %p5506_p5 }
  0x15   : > { %s284_s26 = sshll.u32 %s277_s25, 4  ;;  %s5540_s12 = scalar_lea.sflag [#allocation3], %s273_s19  ;;  %s5538_s26 = int_to_ptr.vmem [resolvable:$true] %s284_s26 }
  0x16   : > { %s5320_s13 = scalar_lea.hbm %s5530_s24, 4096  ;;  %p5322_p1 = pneg %p5534_p13 }
  0x17   : > { %p5321_p0 = scmp.ne.s32.totalorder %s5530_s24, %s5320_s13  ;;  %s5325_s21 = scalar_lea.hbm %s7410_s1, 8192 }
  0x18   : > { %p5326_p4 = scmp.lt.s32.totalorder %s5530_s24, %s7410_s1  ;;  %p5327_p5 = scmp.lt.s32.totalorder %s5325_s21, %s5320_s13 }
  0x19   : > { %p5323_p2 = pnand %p5322_p1, %p5321_p0 }
  0x1a   : > { %p5328_p7 = por %p5327_p5, %p5326_p4 }
  0x1b   : > { %p5324_p3 = pneg %p5323_p2 }
  0x1d   : > { %p5329_p8 = pnand %p5328_p7, %p5324_p3 }
  0x1f   : > { %5332 = shalt.err (!%p5329_p8)
}
  0x20   : > { %s5333_s19 = scalar_lea.vmem %s5538_s26, 4096  ;;  %s5414_s25 = smov [#allocation2]  }
  0x21   : > { %p5334_p10 = scmp.ne.s32.totalorder %s5538_s26, %s5333_s19  ;;  %s5338_s14 = sshll.u32 %s5414_s25, 4  ;;  %s5339_s14 = int_to_ptr.vmem [resolvable:$false] %s5338_s14 }
  0x22   : > { %s5340_s20 = scalar_lea.vmem %s5339_s14, 8192  ;;  %p5341_p2 = scmp.lt.s32.totalorder %s5538_s26, %s5339_s14 }
  0x23   : > { %p5336_p9 = pnand %p5334_p10, %p5322_p1  ;;  %p5342_p12 = scmp.lt.s32.totalorder %s5340_s20, %s5333_s19 }
  0x25   : > { %p5337_p0 = pneg %p5336_p9  ;;  %p5343_p11 = por %p5342_p12, %p5341_p2 }
  0x27   : > { %p5344_p6 = pnand %p5343_p11, %p5337_p0 }
  0x29   : > { %5347 = shalt.err (!%p5344_p6)
}
  0x2a   : > { %s5415_s13 = smov 64   ;;  %s5416_s22 = smov 4  }
  0x2b   : > { %4996 = dma.hbm_to_vmem [thread:$0]  (!%p5534_p13), %s5530_s24, 4096, %s5538_s26, %s5540_s12, %s5415_s13, %s5415_s13, %s5416_s22  }
  0x2c   : > { %p4353_p9 = scmp.ge.s32.totalorder %s5412_s30, 1  ;;  %p292_p1 = scmp.lt.s32.totalorder %s5412_s30, 3 }
  0x2e   : > { %p293_p3 = pnand %p4353_p9, %p292_p1 }
  0x30   : > { %296 = sbr.rel (%p293_p3) target bundleno = 4893 (0x131d), region = 52 }
  0x35   : > { %s5564_s14 = sand.u32 1, %s5404_s28   ;;  %p7442_p6 = scmp.ne.s32.totalorder %s7438_s16, 0 }
  0x36   : > { %s4354_s21 = sshll.u32 %s5564_s14, 8  ;;  %s299_s15 = scalar_lea.sflag [#allocation3], %s5564_s14 }
  0x37   : > { %s5568_s23 = scalar_lea.vmem [#allocation2], %s4354_s21 }
  0x38   : > { %5391 = dma.done.wait (%p7442_p6), %s299_s15, 4096  }
  0x39   : > { %5393 = vsyncadd (%p7442_p6), %s299_s15, 4294963200  ;;  %s4356_s24 = sshll.u32 %s5488_s9, 4  ;;  %v5417_v0 = vmov 64   ;;  %v5043_v1 = vld [vmem:[%s7411_s2] sm:$0xff]   ;;  %vm413_vm0 = vcmask 130048   ;;  %v535_v18 = vlaneseq  ;;  %vm555_vm1 = vcmask 261120  }
  0x3a   : > { %p341_p11 = scmp.lt.s32.totalorder %s4356_s24, 31  ;;  %5041 = vset.pattern.permute.xlu1 %v5417_v0  ;;  %5042 = vset.pattern.permute.xlu0 %v5417_v0  ;;  %v347_v26 = vld [vmem:[%s7413_s4] sm:$0xf]  ;;  %vm711_vm2 = vcmask 130112   ;;  %vm718_vm3 = vcmask 195712   ;;  %vm725_vm4 = vcmask 261312  }
  0x3b   : > { %4745 = vmatprep.subr.bf16.mxu0 %v5043_v1  ;;  %v5612_v21 = vshrl.u32 %v535_v18, 7  ;;  %vm732_vm5 = vcmask 326912   ;;  %vm739_vm6 = vcmask 392512   ;;  %vm746_vm7 = vcmask 458112   ;;  %s5418_s22 = smov 96   ;;  %s4355_s12 = sshll.u32 %s5564_s14, 3 }
  0x3c   : > { %s7484_s24 = smov (!%p341_p11, %s4356_s24), 31  ;;  %4746 = vmatpush3.bf16.msra.mxu0 %v5043_v1  ;;  %vm753_vm8 = vcmask 523712   ;;  %vm760_vm9 = vcmask 589312   ;;  %vm767_vm10 = vcmask 654912   ;;  %vm774_vm11 = vcmask 720512   ;;  %s4469_s20 = sshll.u32 %s5488_s9, 7 }
  0x3d   : > { %s4357_s26 = sshll.u32 %s7484_s24, 2  ;;  %v7420_v24 = vsub.s32 0, %v5612_v21  ;;  %vm7433_vm12 = vcmask 786112   ;;  %vm7432_vm13 = vcmask 851712   ;;  %vm7431_vm14 = vcmask 917312   ;;  %s339_s16 = scalar_lea.vmem [#allocation5], %s4355_s12 }
  0x3e   : > { %s344_s19 = scalar_lea.vmem %s7409_s0, %s4357_s26  ;;  %vm7422_vm15 = vcmask 982912   ;;  %s4265_s13 = sshll.u32 %s339_s16, 4  ;;  %s4266_s13 = int_to_ptr.vmem [resolvable:$true] %s4265_s13 }
  0x3f   : > { %v5044_v2 = vld [vmem:[%s344_s19] sm:$0xff]   ;;  %v5045_v3 = vld [vmem:[%s344_s19 + $0x8] sm:$0xff]   ;;  %v5046_v4 = vld [vmem:[%s344_s19 + $0x10] sm:$0xff]   ;;  %v5628_v28 = vrot.slane %v347_v26, %v7420_v24  ;;  %s5348_s24 = scalar_lea.vmem %s4266_s13, 128  ;;  %p7475_p13 = scmp.ne.s32.totalorder %s7439_s17, 0 }
  0x40   : > { %4747 = vmatprep.mubr.msk.bf16.mxu0 %vm413_vm0, %v5044_v2  ;;  %v5047_v5 = vld [vmem:[%s344_s19 + $0x18] sm:$0xff]   ;;  %v5048_v6 = vld [vmem:[%s344_s19 + $0x20] sm:$0xff]   ;;  %v5049_v7 = vld [vmem:[%s344_s19 + $0x28] sm:$0xff]   ;;  %p5349_p12 = scmp.ne.s32.totalorder %s4266_s13, %s5348_s24  ;;  %s5421_s26 = smov [#allocation5]  }
  0x41   : > { %4748 = vmatmul.mubr.msk.bf16.vlgmr.msra.gmra.mxu0 %vm413_vm0, %v5045_v3  ;;  %v5050_v8 = vld [vmem:[%s344_s19 + $0x30] sm:$0xff]   ;;  %v5051_v9 = vld [vmem:[%s344_s19 + $0x38] sm:$0xff]   ;;  %v4604_v24 = vld [vmem:[%s5568_s23 + $0x20] sm:$0xff]   ;;  %s5352_s9 = sshll.u32 %s5421_s26, 4  ;;  %s5353_s9 = int_to_ptr.vmem [resolvable:$false] %s5352_s9 }
  0x42   : > { %4751 = vmatprep.mubr.msk.bf16.mxu0 %vm413_vm0, %v5046_v4  ;;  %p5350_p4 = pnand %p5349_p12, %p7475_p13  ;;  %s5354_s10 = scalar_lea.vmem %s5353_s9, 256 }
  0x43   : > { %p5355_p7 = scmp.lt.s32.totalorder %s4266_s13, %s5353_s9  ;;  %p5356_p8 = scmp.lt.s32.totalorder %s5354_s10, %s5348_s24 }
  0x44   : > { %p5351_p5 = pneg %p5350_p4 }
  0x45   : > { %p5357_p10 = por %p5356_p8, %p5355_p7 }
  0x47   : > { %p5358_p0 = pnand %p5357_p10, %p5351_p5 }
  0x49   : > { %4752 = vmatmul.mubr.msk.bf16.gmra.mxu0 %vm413_vm0, %v5047_v5 }
  0x4a   : > { %4755 = vmatprep.mubr.msk.bf16.mxu0 %vm413_vm0, %v5048_v6 }
  0x51   : > { %4756 = vmatmul.mubr.msk.bf16.gmra.mxu0 %vm413_vm0, %v5049_v7 }
  0x52   : > { %4759 = vmatprep.mubr.msk.bf16.mxu0 %vm413_vm0, %v5050_v8 }
  0x59   : > { %4760 = vmatmul.mubr.msk.bf16.gmra.mxu0 %vm413_vm0, %v5051_v9  ;;  %vm7421_vm0 = vcmask 1048512  }
 0x101   : > { %v5589_v10 = vpop.f32.mrf.mxu0 }
 0x102   : > { %616 = vperm.xlu1 %5041, %v5589_v10   ;;  %v541_v34 = vmul.f32 %v5589_v10, %v5628_v28 }
 0x103   : > { %v5592_v11 = vpop.f32.mrf.mxu0 }
 0x104   : > { %606 = vperm.xlu0 %5042, %v5592_v11   ;;  %v539_v31 = vmul.f32 %v5628_v28, %v5592_v11  ;;  %v562_v39 = vsel %vm555_vm1, %v541_v34, 0.0 }
 0x105   : > { %v5595_v12 = vpop.f32.mrf.mxu0 }
 0x106   : > { %v556_v35 = vsel %vm555_vm1, %v539_v31, 0.0  ;;  %v1089_v50 = vpack.c.bf16 %v5595_v12, %v5589_v10  ;;  %v542_v53 = vmul.f32 %v5595_v12, %v5628_v28 }
 0x107   : > { %v5597_v13 = vpop.f32.mrf.mxu0 }
 0x108   : > { %v540_v36 = vmul.f32 %v5628_v28, %v5597_v13  ;;  %v1088_v52 = vpack.c.bf16 %v5597_v13, %v5592_v11  ;;  %v565_v54 = vsel %vm555_vm1, %v542_v53, 0.0 }
 0x109   : > { %v5599_v14 = vpop.f32.mrf.mxu0 }
 0x10a   : > { %v545_v38 = vmul.f32 %v5599_v14, %v5628_v28  ;;  %v559_v40 = vsel %vm555_vm1, %v540_v36, 0.0 }
 0x10b   : > { %v5601_v15 = vpop.f32.mrf.mxu0 }
 0x10c   : > { %v574_v42 = vsel %vm555_vm1, %v545_v38, 0.0  ;;  %v543_v43 = vmul.f32 %v5628_v28, %v5601_v15 }
 0x10d   : > { %v5603_v16 = vpop.f32.mrf.mxu0 }
 0x10e   : > { %v1091_v44 = vpack.c.bf16 %v5603_v16, %v5599_v14  ;;  %v568_v45 = vsel %vm555_vm1, %v543_v43, 0.0  ;;  %v546_v59 = vmul.f32 %v5603_v16, %v5628_v28 }
 0x10f   : > { %v5605_v17 = vpop.f32.mrf.mxu0 }
 0x110   : > { %v1090_v47 = vpack.c.bf16 %v5605_v17, %v5601_v15  ;;  %v577_v60 = vsel %vm555_vm1, %v546_v59, 0.0  ;;  %v544_v61 = vmul.f32 %v5628_v28, %v5605_v17 }
 0x111   : > { %v5607_v19 = vpop.f32.mrf.mxu0 }
 0x112   : > { %v549_v46 = vmul.f32 %v5607_v19, %v5628_v28  ;;  %v571_v62 = vsel %vm555_vm1, %v544_v61, 0.0 }
 0x113   : > { %v5609_v20 = vpop.f32.mrf.mxu0 }
 0x114   : > { %v586_v48 = vsel %vm555_vm1, %v549_v46, 0.0  ;;  %v547_v49 = vmul.f32 %v5628_v28, %v5609_v20 }
 0x115   : > { %v5614_v22 = vpop.f32.mrf.mxu0 }
 0x116   : > { %v1093_v37 = vpack.c.bf16 %v5614_v22, %v5607_v19  ;;  %v580_v51 = vsel %vm555_vm1, %v547_v49, 0.0  ;;  %v550_v63 = vmul.f32 %v5614_v22, %v5628_v28 }
 0x117   : > { %v5616_v23 = vpop.f32.mrf.mxu0 }
 0x118   : > { %v1092_v41 = vpack.c.bf16 %v5616_v23, %v5609_v20  ;;  %v589_v0 = vsel %vm555_vm1, %v550_v63, 0.0  ;;  %v548_v1 = vmul.f32 %v5628_v28, %v5616_v23 }
 0x119   : > { %v5619_v25 = vpop.f32.mrf.mxu0 }
 0x11a   : > { %v553_v55 = vmul.f32 %v5619_v25, %v5628_v28  ;;  %v583_v2 = vsel %vm555_vm1, %v548_v1, 0.0 }
 0x11b   : > { %v5624_v27 = vpop.f32.mrf.mxu0 }
 0x11c   : > { %v598_v56 = vsel %vm555_vm1, %v553_v55, 0.0  ;;  %v551_v57 = vmul.f32 %v5628_v28, %v5624_v27 }
 0x11d   : > { %v5630_v29 = vpop.f32.mrf.mxu0 }
 0x11e   : > { %v1095_v30 = vpack.c.bf16 %v5630_v29, %v5619_v25  ;;  %v592_v58 = vsel %vm555_vm1, %v551_v57, 0.0  ;;  %v554_v3 = vmul.f32 %v5630_v29, %v5628_v28 }
 0x11f   : > { %v5636_v32 = vpop.f32.mrf.mxu0 }
 0x120   : > { %4763 = vmatprep.subr.bf16.mxu1 %v1095_v30  ;;  %v1094_v33 = vpack.c.bf16 %v5636_v32, %v5624_v27  ;;  %v601_v4 = vsel %vm555_vm1, %v554_v3, 0.0  ;;  %v552_v5 = vmul.f32 %v5628_v28, %v5636_v32 }
 0x121   : > { %4764 = vmatpush3.bf16.msra.mxu1 %v1095_v30 }
 0x122   : > { %4765 = vmatprep.subr.bf16.mxu1 %v1094_v33  ;;  %v595_v6 = vsel %vm555_vm1, %v552_v5, 0.0 }
 0x123   : > { %557 = vadd.xlane.f32.xlu0 %v556_v35 }
 0x125   : > { %4766 = vmatpush3.bf16.msra.mxu1 %v1094_v33 }
 0x126   : > { %563 = vadd.xlane.f32.xlu1 %v562_v39  ;;  %4767 = vmatprep.subr.bf16.mxu1 %v1093_v37 }
 0x127   : > { %560 = vadd.xlane.f32.xlu0 %v559_v40 }
 0x129   : > { %4768 = vmatpush3.bf16.msra.mxu1 %v1093_v37  ;;  %v5727_v37 = vand.u32 127, %v535_v18 }
 0x12a   : > { %4769 = vmatprep.subr.bf16.mxu1 %v1092_v41 }
 0x12b   : > { %575 = vadd.xlane.f32.xlu0 %v574_v42  ;;  %v706_v39 = vadd.s32 4294967288, %v5727_v37  ;;  %v720_v43 = vadd.s32 4294967272, %v5727_v37  ;;  %v727_v18 = vadd.s32 4294967264, %v5727_v37  ;;  %v734_v49 = vadd.s32 4294967256, %v5727_v37 }
 0x12c   : > { %v741_v59 = vadd.s32 4294967248, %v5727_v37  ;;  %v748_v1 = vadd.s32 4294967240, %v5727_v37  ;;  %v755_v5 = vadd.s32 4294967232, %v5727_v37 }
 0x12d   : > { %4770 = vmatpush3.bf16.msra.mxu1 %v1092_v41  ;;  %v5733_v42 = vsub.s32 %v706_v39, %v5612_v21  ;;  %v5759_v57 = vsub.s32 %v734_v49, %v5612_v21  ;;  %v769_v39 = vadd.s32 4294967216, %v5727_v37  ;;  %v776_v49 = vadd.s32 4294967208, %v5727_v37 }
 0x12e   : > { %4771 = vmatprep.subr.bf16.mxu1 %v1091_v44  ;;  %v5769_v3 = vsub.s32 %v741_v59, %v5612_v21 }
 0x12f   : > { %569 = vadd.xlane.f32.xlu0 %v568_v45  ;;  %v5739_v45 = vsub.s32 %v5727_v37, %v5612_v21 }
 0x131   : > { %4772 = vmatpush3.bf16.msra.mxu1 %v1091_v44  ;;  %v713_v44 = vadd.s32 4294967280, %v5727_v37 }
 0x132   : > { %4773 = vmatprep.subr.bf16.mxu1 %v1090_v47 }
 0x133   : > { %587 = vadd.xlane.f32.xlu0 %v586_v48  ;;  %v5744_v48 = vsub.s32 %v720_v43, %v5612_v21 }
 0x135   : > { %4774 = vmatpush3.bf16.msra.mxu1 %v1090_v47 }
 0x136   : > { %4775 = vmatprep.subr.bf16.mxu1 %v1089_v50 }
 0x137   : > { %621 = vperm.xlu1 %5041, %v5595_v12   ;;  %581 = vadd.xlane.f32.xlu0 %v580_v51 }
 0x139   : > { %4776 = vmatpush3.bf16.msra.mxu1 %v1089_v50  ;;  %v5748_v50 = vsub.s32 %v713_v44, %v5612_v21  ;;  %v5785_v44 = vsub.s32 %v755_v5, %v5612_v21 }
 0x13a   : > { %4777 = vmatprep.subr.bf16.mxu1 %v1088_v52 }
 0x13b   : > { %611 = vperm.xlu1 %5041, %v5597_v13  }
 0x13d   : > { %4778 = vmatpush3.bf16.msra.mxu1 %v1088_v52 }
 0x14d   : > { %651 = vperm.xlu0 %5042, %v5616_v23  }
 0x15f   : > { %566 = vadd.xlane.f32.xlu1 %v565_v54  ;;  %v5754_v54 = vsub.s32 %v727_v18, %v5612_v21 }
 0x16c   : > { %599 = vadd.xlane.f32.xlu0 %v598_v56 }
 0x170   : > { %636 = vperm.xlu1 %5041, %v5599_v14   ;;  %593 = vadd.xlane.f32.xlu0 %v592_v58 }
 0x174   : > { %626 = vperm.xlu1 %5041, %v5601_v15  }
 0x178   : > { %641 = vperm.xlu1 %5041, %v5603_v16  }
 0x17c   : > { %631 = vperm.xlu1 %5041, %v5605_v17  }
 0x17d   : > { %v5712_v7 = vpop.permute.xlu1 %616 }
 0x17f   : > { %v5720_v33 = vpop.permute.xlu0 %606 }
 0x186   : > { %661 = vperm.xlu0 %5042, %v5614_v22  }
 0x18a   : > { %671 = vperm.xlu0 %5042, %v5636_v32  }
 0x18e   : > { %681 = vperm.xlu0 %5042, %v5630_v29  }
 0x1a0   : > { %578 = vadd.xlane.f32.xlu1 %v577_v60 }
 0x1ac   : > { %v558_v34 = vpop.xlane.xlu0 %557 }
 0x1ad   : > { %v705_v52 = vrot.slane %v558_v34, %v5739_v45  ;;  %v762_v34 = vadd.s32 4294967224, %v5727_v37 }
 0x1af   : > { %v564_v8 = vpop.xlane.xlu1 %563 }
 0x1b0   : > { %v561_v36 = vpop.xlane.xlu0 %560  ;;  %v717_v58 = vrot.slane %v564_v8, %v5748_v50  ;;  %v5776_v8 = vsub.s32 %v748_v1, %v5612_v21  ;;  %v797_v1 = vadd.s32 4294967184, %v5727_v37 }
 0x1b1   : > { %656 = vperm.xlu1 %5041, %v5607_v19   ;;  %v710_v47 = vrot.slane %v561_v36, %v5733_v42 }
 0x1b3   : > { %v5714_v9 = vpop.permute.xlu1 %621  ;;  %v712_v55 = vsel %vm711_vm2, %v710_v47, %v705_v52  ;;  %v5791_v52 = vsub.s32 %v762_v34, %v5612_v21 }
 0x1b4   : > { %v576_v40 = vpop.xlane.xlu0 %575  ;;  %v719_v61 = vsel %vm718_vm3, %v717_v58, %v712_v55  ;;  %v783_v58 = vadd.s32 4294967200, %v5727_v37 }
 0x1b5   : > { %v745_v36 = vrot.slane %v576_v40, %v5769_v3  ;;  %v5794_v40 = vsub.s32 %v769_v39, %v5612_v21  ;;  %v5818_v39 = vsub.s32 %v797_v1, %v5612_v21 }
 0x1b6   : > { %v5810_v5 = vsub.s32 %v783_v58, %v5612_v21  ;;  %v4601_v58 = vld [vmem:[%s5568_s23 + $0x8] sm:$0xff]  }
 0x1b7   : > { %v5716_v26 = vpop.permute.xlu1 %611  ;;  %7445 = vst [vmem:[#allocation11_spill] sm:$0xff] %v5818_v39 }
 0x1b8   : > { %v570_v46 = vpop.xlane.xlu0 %569  ;;  %7443 = vst [vmem:[#allocation9_spill] sm:$0xff] %v5810_v5 }
 0x1bc   : > { %v588_v53 = vpop.xlane.xlu0 %587 }
 0x1d5   : > { %572 = vadd.xlane.f32.xlu1 %v571_v62  ;;  %v731_v62 = vrot.slane %v570_v46, %v5754_v54 }
 0x1e6   : > { %646 = vperm.xlu1 %5041, %v5609_v20  }
 0x1e8   : > { %v567_v30 = vpop.xlane.xlu1 %566 }
 0x1e9   : > { %v724_v56 = vrot.slane %v567_v30, %v5744_v48 }
 0x1eb   : > { %v726_v63 = vsel %vm725_vm4, %v724_v56, %v719_v61 }
 0x1ec   : > { %v5718_v31 = vpop.permute.xlu1 %636 }
 0x1f0   : > { %v5722_v28 = vpop.permute.xlu1 %626 }
 0x1f4   : > { %v5724_v35 = vpop.permute.xlu1 %641 }
 0x1f8   : > { %v5729_v38 = vpop.permute.xlu1 %631 }
 0x20a   : > { %590 = vadd.xlane.f32.xlu1 %v589_v0  ;;  %v582_v0 = vpop.xlane.xlu0 %581 }
 0x20b   : > { %v759_v56 = vrot.slane %v582_v0, %v5785_v44 }
 0x20e   : > { %584 = vadd.xlane.f32.xlu1 %v583_v2  ;;  %v5782_v43 = vpop.permute.xlu0 %651 }
 0x212   : > { %602 = vadd.xlane.f32.xlu1 %v601_v4  ;;  %v733_v4 = vsel %vm732_vm5, %v731_v62, %v726_v63  ;;  %v790_v62 = vadd.s32 4294967192, %v5727_v37  ;;  %v773_v63 = vrot.slane %v588_v53, %v5794_v40 }
 0x214   : > { %v5815_v53 = vsub.s32 %v790_v62, %v5612_v21  ;;  %v4602_v62 = vld [vmem:[%s5568_s23 + $0x10] sm:$0xff]  }
 0x216   : > { %596 = vadd.xlane.f32.xlu1 %v595_v6  ;;  %7444 = vst [vmem:[#allocation10_spill] sm:$0xff] %v5815_v53 }
 0x227   : > { %666 = vperm.xlu1 %5041, %v5624_v27  }
 0x229   : > { %v579_v41 = vpop.xlane.xlu1 %578 }
 0x22a   : > { %v752_v47 = vrot.slane %v579_v41, %v5776_v8  ;;  %v5800_v41 = vsub.s32 %v776_v49, %v5612_v21 }
 0x22b   : > { %676 = vperm.xlu1 %5041, %v5619_v25  }
 0x22d   : > { %v5750_v51 = vpop.permute.xlu1 %656 }
 0x25e   : > { %v573_v60 = vpop.xlane.xlu1 %572 }
 0x25f   : > { %v738_v2 = vrot.slane %v573_v60, %v5759_v57  ;;  %v600_v60 = vpop.xlane.xlu0 %599 }
 0x261   : > { %v740_v30 = vsel %vm739_vm6, %v738_v2, %v733_v4  ;;  %v804_v4 = vadd.s32 4294967176, %v5727_v37 }
 0x262   : > { %v5773_v6 = vpop.permute.xlu1 %646  ;;  %v747_v46 = vsel %vm746_vm7, %v745_v36, %v740_v30 }
 0x263   : > { %v754_v55 = vsel %vm753_vm8, %v752_v47, %v747_v46  ;;  %v594_v46 = vpop.xlane.xlu0 %593  ;;  %v5821_v37 = vsub.s32 %v804_v4, %v5612_v21 }
 0x264   : > { %v761_v2 = vsel %vm760_vm9, %v759_v56, %v754_v55  ;;  %v787_v49 = vrot.slane %v594_v46, %v5810_v5  ;;  %v4474_v56 = vld [vmem:[%s5568_s23] sm:$0xff]   ;;  %v4480_v46 = vunpack.c.h.bf16 %v4601_v58 }
 0x265   : > { %7446 = vst [vmem:[#allocation12_spill] sm:$0xff] %v5821_v37  ;;  %v4475_v4 = vunpack.c.l.bf16 %v4474_v56 }
 0x293   : > { %v591_v18 = vpop.xlane.xlu1 %590 }
 0x294   : > { %v780_v36 = vrot.slane %v591_v18, %v5800_v41 }
 0x297   : > { %v585_v59 = vpop.xlane.xlu1 %584 }
 0x298   : > { %v766_v61 = vrot.slane %v585_v59, %v5791_v52  ;;  %v801_v59 = vrot.slane %v600_v60, %v5818_v39  ;;  %v4483_v60 = vunpack.c.l.bf16 %v4602_v62 }
 0x29a   : > { %v768_v0 = vsel %vm767_vm10, %v766_v61, %v761_v2 }
 0x29b   : > { %v775_v30 = vsel %vm774_vm11, %v773_v63, %v768_v0  ;;  %v603_v34 = vpop.xlane.xlu1 %602  ;;  %v4476_v0 = vunpack.c.h.bf16 %v4474_v56 }
 0x29c   : > { %v782_v47 = vsel %vm7433_vm12, %v780_v36, %v775_v30  ;;  %v808_v63 = vrot.slane %v603_v34, %v5821_v37  ;;  %v4479_v30 = vunpack.c.l.bf16 %v4601_v58 }
 0x29d   : > { %v789_v61 = vsel %vm7432_vm13, %v787_v49, %v782_v47  ;;  %v4603_v49 = vld [vmem:[%s5568_s23 + $0x18] sm:$0xff]  }
 0x29f   : > { %v597_v55 = vpop.xlane.xlu1 %596 }
 0x2a0   : > { %v794_v18 = vrot.slane %v597_v55, %v5815_v53  ;;  %v4488_v53 = vunpack.c.h.bf16 %v4603_v49 }
 0x2a2   : > { %v796_v1 = vsel %vm7431_vm14, %v794_v18, %v789_v61 }
 0x2a3   : > { %v803_v2 = vsel %vm7422_vm15, %v801_v59, %v796_v1  ;;  %v4484_v59 = vunpack.c.h.bf16 %v4602_v62 }
 0x2a4   : > { %v5835_v36 = vsel %vm7421_vm0, %v808_v63, %v803_v2 }
 0x2a5   : > { %v825_v55 = vadd.f32 %v5835_v36, %v5716_v26  ;;  %v824_v47 = vadd.f32 %v5835_v36, %v5720_v33  ;;  %v826_v34 = vadd.f32 %v5835_v36, %v5712_v7  ;;  %v827_v18 = vadd.f32 %v5835_v36, %v5714_v9 }
 0x2a6   : > { %v828_v56 = vadd.f32 %v5835_v36, %v5722_v28  ;;  %v829_v58 = vadd.f32 %v5835_v36, %v5729_v38  ;;  %v4487_v33 = vunpack.c.l.bf16 %v4603_v49  ;;  %v830_v28 = vadd.f32 %v5835_v36, %v5718_v31 }
 0x2a7   : > { %v873_v61 = vadd.f32 %v4476_v0, %v825_v55  ;;  %v872_v63 = vadd.f32 %v4475_v4, %v824_v47  ;;  %v874_v26 = vadd.f32 %v4479_v30, %v826_v34  ;;  %v875_v1 = vadd.f32 %v4480_v46, %v827_v18  ;;  %v662_v46 = vpop.permute.xlu0 %661  ;;  %v4605_v34 = vld [vmem:[%s5568_s23 + $0x28] sm:$0xff]  }
 0x2a8   : > { %v876_v2 = vadd.f32 %v4483_v60, %v828_v56  ;;  %v877_v9 = vadd.f32 %v4484_v59, %v829_v58  ;;  %v4491_v0 = vunpack.c.l.bf16 %v4604_v24  ;;  %v831_v30 = vadd.f32 %v5835_v36, %v5724_v35  ;;  %v4606_v59 = vld [vmem:[%s5568_s23 + $0x30] sm:$0xff]  }
 0x2a9   : > { %vm889_vm0 = vcmp.gt.f32.partialorder %v873_v61, 0.0  ;;  %v905_v7 = vmul.f32 0.2, %v873_v61  ;;  %vm888_vm15 = vcmp.gt.f32.partialorder %v872_v63, 0.0  ;;  %v904_v37 = vmul.f32 0.2, %v872_v63 }
 0x2aa   : > { %v906_v39 = vmul.f32 0.2, %v874_v26  ;;  %vm890_vm14 = vcmp.gt.f32.partialorder %v874_v26, 0.0  ;;  %v907_v62 = vmul.f32 0.2, %v875_v1  ;;  %vm891_vm13 = vcmp.gt.f32.partialorder %v875_v1, 0.0 }
 0x2ab   : > { %v5853_v5 = vsel %vm889_vm0, %v873_v61, %v905_v7  ;;  %v5855_v38 = vsel %vm888_vm15, %v872_v63, %v904_v37  ;;  %vm892_vm12 = vcmp.gt.f32.partialorder %v876_v2, 0.0  ;;  %v908_v4 = vmul.f32 0.2, %v876_v2 }
 0x2ac   : > { %938 = vmax.xlane.f32.xlu0 %v5853_v5  ;;  %936 = vmax.xlane.f32.xlu1 %v5855_v38  ;;  %v4492_v31 = vunpack.c.h.bf16 %v4604_v24  ;;  %v5861_v60 = vsel %vm890_vm14, %v874_v26, %v906_v39  ;;  %v909_v37 = vmul.f32 0.2, %v877_v9  ;;  %v878_v55 = vadd.f32 %v4487_v33, %v830_v28  ;;  %v667_v24 = vpop.permute.xlu1 %666  ;;  %v672_v33 = vpop.permute.xlu0 %671  ;;  %v4607_v28 = vld [vmem:[%s5568_s23 + $0x38] sm:$0xff]  }
 0x2ad   : > { %v832_v47 = vadd.f32 %v5835_v36, %v5773_v6  ;;  %v5866_v49 = vsel %vm891_vm13, %v875_v1, %v907_v62  ;;  %vm893_vm15 = vcmp.gt.f32.partialorder %v877_v9, 0.0  ;;  %v879_v18 = vadd.f32 %v4488_v53, %v831_v30 }
 0x2ae   : > { %v833_v56 = vadd.f32 %v5835_v36, %v5782_v43  ;;  %v5873_v35 = vsel %vm892_vm12, %v876_v2, %v908_v4  ;;  %v4495_v39 = vunpack.c.l.bf16 %v4605_v34  ;;  %v4496_v58 = vunpack.c.h.bf16 %v4605_v34 }
 0x2af   : > { %v5876_v6 = vsel %vm893_vm15, %v877_v9, %v909_v37  ;;  %v910_v61 = vmul.f32 0.2, %v878_v55  ;;  %v880_v63 = vadd.f32 %v4491_v0, %v832_v47  ;;  %v834_v53 = vadd.f32 %v5835_v36, %v5750_v51 }
 0x2b0   : > { %940 = vmax.xlane.f32.xlu0 %v5861_v60  ;;  %942 = vmax.xlane.f32.xlu1 %v5866_v49  ;;  %vm894_vm13 = vcmp.gt.f32.partialorder %v878_v55, 0.0  ;;  %v911_v43 = vmul.f32 0.2, %v879_v18  ;;  %v881_v26 = vadd.f32 %v4492_v31, %v833_v56  ;;  %v835_v1 = vadd.f32 %v5835_v36, %v662_v46  ;;  %v677_v4 = vpop.permute.xlu1 %676  ;;  %v682_v56 = vpop.permute.xlu0 %681 }
 0x2b1   : > { %vm895_vm12 = vcmp.gt.f32.partialorder %v879_v18, 0.0  ;;  %v4499_v2 = vunpack.c.l.bf16 %v4606_v59  ;;  %v836_v7 = vadd.f32 %v5835_v36, %v667_v24  ;;  %v4500_v9 = vunpack.c.h.bf16 %v4606_v59 }
 0x2b2   : > { %v5885_v62 = vsel %vm894_vm13, %v878_v55, %v910_v61  ;;  %vm896_vm14 = vcmp.gt.f32.partialorder %v880_v63, 0.0  ;;  %v912_v51 = vmul.f32 0.2, %v880_v63  ;;  %v882_v0 = vadd.f32 %v4495_v39, %v834_v53 }
 0x2b3   : > { %v5887_v30 = vsel %vm895_vm12, %v879_v18, %v911_v43  ;;  %v913_v31 = vmul.f32 0.2, %v881_v26  ;;  %v883_v46 = vadd.f32 %v4496_v58, %v835_v1  ;;  %v837_v37 = vadd.f32 %v5835_v36, %v672_v33 }
 0x2b4   : > { %944 = vmax.xlane.f32.xlu0 %v5873_v35  ;;  %946 = vmax.xlane.f32.xlu1 %v5876_v6  ;;  %vm897_vm0 = vcmp.gt.f32.partialorder %v881_v26, 0.0  ;;  %v4503_v47 = vunpack.c.l.bf16 %v4607_v28  ;;  %v4504_v34 = vunpack.c.h.bf16 %v4607_v28  ;;  %v884_v55 = vadd.f32 %v4499_v2, %v836_v7 }
 0x2b5   : > { %v838_v24 = vadd.f32 %v5835_v36, %v677_v4  ;;  %v5894_v39 = vsel %vm896_vm14, %v880_v63, %v912_v51  ;;  %v914_v18 = vmul.f32 0.2, %v882_v0  ;;  %v5896_v59 = vsel %vm897_vm0, %v881_v26, %v913_v31 }
 0x2b6   : > { %v915_v58 = vmul.f32 0.2, %v883_v46  ;;  %v885_v61 = vadd.f32 %v4500_v9, %v837_v37  ;;  %v839_v53 = vadd.f32 %v5835_v36, %v682_v56  ;;  %vm898_vm15 = vcmp.gt.f32.partialorder %v882_v0, 0.0 }
 0x2b7   : > { %vm899_vm13 = vcmp.gt.f32.partialorder %v883_v46, 0.0  ;;  %v886_v43 = vadd.f32 %v4503_v47, %v838_v24  ;;  %v916_v1 = vmul.f32 0.2, %v884_v55  ;;  %v5901_v33 = vsel %vm898_vm15, %v882_v0, %v914_v18 }
 0x2b8   : > { %948 = vmax.xlane.f32.xlu0 %v5885_v62  ;;  %950 = vmax.xlane.f32.xlu1 %v5887_v30  ;;  %v5903_v2 = vsel %vm899_vm13, %v883_v46, %v915_v58  ;;  %v917_v63 = vmul.f32 0.2, %v885_v61  ;;  %v887_v7 = vadd.f32 %v4504_v34, %v839_v53  ;;  %vm900_vm12 = vcmp.gt.f32.partialorder %v884_v55, 0.0 }
 0x2b9   : > { %vm901_vm14 = vcmp.gt.f32.partialorder %v885_v61, 0.0  ;;  %v5907_v36 = vsel %vm900_vm12, %v884_v55, %v916_v1  ;;  %v918_v9 = vmul.f32 0.2, %v886_v43  ;;  %vm902_vm0 = vcmp.gt.f32.partialorder %v886_v43, 0.0 }
 0x2ba   : > { %v5909_v26 = vsel %vm901_vm14, %v885_v61, %v917_v63  ;;  %v919_v28 = vmul.f32 0.2, %v887_v7  ;;  %vm903_vm15 = vcmp.gt.f32.partialorder %v887_v7, 0.0 }
 0x2bb   : > { %v5913_v51 = vsel %vm902_vm0, %v886_v43, %v918_v9 }
 0x2bc   : > { %952 = vmax.xlane.f32.xlu0 %v5894_v39  ;;  %954 = vmax.xlane.f32.xlu1 %v5896_v59  ;;  %v5915_v0 = vsel %vm903_vm15, %v887_v7, %v919_v28 }
 0x2c0   : > { %956 = vmax.xlane.f32.xlu0 %v5901_v33  ;;  %958 = vmax.xlane.f32.xlu1 %v5903_v2 }
 0x2c4   : > { %960 = vmax.xlane.f32.xlu0 %v5907_v36  ;;  %962 = vmax.xlane.f32.xlu1 %v5909_v26 }
 0x2c8   : > { %964 = vmax.xlane.f32.xlu0 %v5913_v51  ;;  %966 = vmax.xlane.f32.xlu1 %v5915_v0 }
 0x335   : > { %v937_v4 = vpop.xlane.xlu1 %936  ;;  %v939_v31 = vpop.xlane.xlu0 %938 }
 0x336   : > { %v968_v46 = vsub.f32 %v5855_v38, %v937_v4  ;;  %v969_v37 = vsub.f32 %v5853_v5, %v939_v31 }
 0x338   : > { %v984_v47 = vmul.f32 1.442695, %v968_v46  ;;  %v986_v34 = vmul.f32 1.442695, %v969_v37 }
 0x339   : > { %v943_v56 = vpop.xlane.xlu1 %942  ;;  %v941_v55 = vpop.xlane.xlu0 %940 }
 0x33a   : > { %5058 = vpow2.f32 %v984_v47  ;;  %v971_v24 = vsub.f32 %v5866_v49, %v943_v56  ;;  %v970_v18 = vsub.f32 %v5861_v60, %v941_v55 }
 0x33b   : > { %5060 = vpow2.f32 %v986_v34 }
 0x33c   : > { %v990_v58 = vmul.f32 1.442695, %v971_v24  ;;  %v988_v61 = vmul.f32 1.442695, %v970_v18 }
 0x33d   : > { %v947_v53 = vpop.xlane.xlu1 %946  ;;  %v945_v43 = vpop.xlane.xlu0 %944 }
 0x33e   : > { %5062 = vpow2.f32 %v990_v58  ;;  %v973_v1 = vsub.f32 %v5876_v6, %v947_v53  ;;  %v972_v38 = vsub.f32 %v5873_v35, %v945_v43 }
 0x33f   : > { %5064 = vpow2.f32 %v988_v61 }
 0x340   : > { %v994_v5 = vmul.f32 1.442695, %v973_v1  ;;  %v992_v63 = vmul.f32 1.442695, %v972_v38 }
 0x341   : > { %v951_v7 = vpop.xlane.xlu1 %950  ;;  %v949_v9 = vpop.xlane.xlu0 %948 }
 0x342   : > { %5066 = vpow2.f32 %v994_v5  ;;  %v975_v49 = vsub.f32 %v5887_v30, %v951_v7  ;;  %v974_v60 = vsub.f32 %v5885_v62, %v949_v9 }
 0x343   : > { %5068 = vpow2.f32 %v992_v63 }
 0x344   : > { %v998_v28 = vmul.f32 1.442695, %v975_v49  ;;  %v996_v4 = vmul.f32 1.442695, %v974_v60 }
 0x345   : > { %v955_v31 = vpop.xlane.xlu1 %954  ;;  %v953_v46 = vpop.xlane.xlu0 %952 }
 0x346   : > { %5070 = vpow2.f32 %v998_v28  ;;  %v977_v6 = vsub.f32 %v5896_v59, %v955_v31  ;;  %v976_v35 = vsub.f32 %v5894_v39, %v953_v46 }
 0x347   : > { %v5929_v37 = vpop.eup %5058  ;;  %5072 = vpow2.f32 %v996_v4 }
 0x348   : > { %v5931_v47 = vpop.eup %5060  ;;  %v1002_v34 = vmul.f32 1.442695, %v977_v6  ;;  %v1000_v56 = vmul.f32 1.442695, %v976_v35  ;;  %1016 = vadd.xlane.f32.xlu0 %v5929_v37 }
 0x349   : > { %1018 = vadd.xlane.f32.xlu1 %v5931_v47  ;;  %v959_v62 = vpop.xlane.xlu1 %958  ;;  %v957_v30 = vpop.xlane.xlu0 %956 }
 0x34a   : > { %5074 = vpow2.f32 %v1002_v34  ;;  %v979_v55 = vsub.f32 %v5903_v2, %v959_v62  ;;  %v978_v59 = vsub.f32 %v5901_v33, %v957_v30 }
 0x34b   : > { %v5937_v24 = vpop.eup %5062  ;;  %5076 = vpow2.f32 %v1000_v56 }
 0x34c   : > { %v5939_v39 = vpop.eup %5064  ;;  %v1006_v18 = vmul.f32 1.442695, %v979_v55  ;;  %v1004_v58 = vmul.f32 1.442695, %v978_v59 }
 0x34d   : > { %1022 = vadd.xlane.f32.xlu1 %v5937_v24  ;;  %1020 = vadd.xlane.f32.xlu0 %v5939_v39  ;;  %v963_v61 = vpop.xlane.xlu1 %962  ;;  %v961_v53 = vpop.xlane.xlu0 %960 }
 0x34e   : > { %5078 = vpow2.f32 %v1006_v18  ;;  %v981_v43 = vsub.f32 %v5909_v26, %v963_v61  ;;  %v980_v2 = vsub.f32 %v5907_v36, %v961_v53 }
 0x34f   : > { %v5945_v1 = vpop.eup %5066  ;;  %5080 = vpow2.f32 %v1004_v58 }
 0x350   : > { %v5947_v33 = vpop.eup %5068  ;;  %v1010_v38 = vmul.f32 1.442695, %v981_v43  ;;  %v1008_v5 = vmul.f32 1.442695, %v980_v2 }
 0x351   : > { %1026 = vadd.xlane.f32.xlu1 %v5945_v1  ;;  %1024 = vadd.xlane.f32.xlu0 %v5947_v33  ;;  %v967_v63 = vpop.xlane.xlu1 %966  ;;  %v965_v7 = vpop.xlane.xlu0 %964 }
 0x352   : > { %5082 = vpow2.f32 %v1010_v38  ;;  %v983_v9 = vsub.f32 %v5915_v0, %v967_v63  ;;  %v982_v26 = vsub.f32 %v5913_v51, %v965_v7 }
 0x353   : > { %v5953_v49 = vpop.eup %5070  ;;  %5084 = vpow2.f32 %v1008_v5 }
 0x354   : > { %v5955_v36 = vpop.eup %5072  ;;  %v1014_v60 = vmul.f32 1.442695, %v983_v9  ;;  %v1012_v28 = vmul.f32 1.442695, %v982_v26 }
 0x355   : > { %1030 = vadd.xlane.f32.xlu1 %v5953_v49  ;;  %1028 = vadd.xlane.f32.xlu0 %v5955_v36 }
 0x356   : > { %5086 = vpow2.f32 %v1014_v60 }
 0x357   : > { %v5959_v4 = vpop.eup %5074  ;;  %5088 = vpow2.f32 %v1012_v28 }
 0x358   : > { %v5961_v31 = vpop.eup %5076 }
 0x359   : > { %1034 = vadd.xlane.f32.xlu1 %v5959_v4  ;;  %1032 = vadd.xlane.f32.xlu0 %v5961_v31 }
 0x35b   : > { %v5965_v51 = vpop.eup %5078 }
 0x35c   : > { %v5967_v0 = vpop.eup %5080 }
 0x35d   : > { %1038 = vadd.xlane.f32.xlu1 %v5965_v51  ;;  %1036 = vadd.xlane.f32.xlu0 %v5967_v0 }
 0x35f   : > { %v5971_v46 = vpop.eup %5082 }
 0x360   : > { %v5973_v6 = vpop.eup %5084 }
 0x361   : > { %1042 = vadd.xlane.f32.xlu1 %v5971_v46  ;;  %1040 = vadd.xlane.f32.xlu0 %v5973_v6 }
 0x363   : > { %v5977_v35 = vpop.eup %5086 }
 0x364   : > { %v5979_v34 = vpop.eup %5088 }
 0x365   : > { %1046 = vadd.xlane.f32.xlu1 %v5977_v35  ;;  %1044 = vadd.xlane.f32.xlu0 %v5979_v34 }
 0x376   : > { %1098 = vrot.lane.b32.xlu1 %v5597_v13, %s5418_s22 }
 0x37a   : > { %1100 = vrot.lane.b32.xlu1 %v5589_v10, %s5418_s22  ;;  %v5052_v10 = vld [vmem:[%s7412_s3 + $0x8] sm:$0xff]  }
 0x37b   : > { %1096 = vrot.lane.b32.xlu0 %v5592_v11, %s5418_s22  ;;  %4795 = vmatprep.subr.bf16.mxu0 %v5052_v10 }
 0x37c   : > { %4796 = vmatpush3.bf16.msra.mxu0 %v5052_v10 }
 0x37e   : > { %1104 = vrot.lane.b32.xlu1 %v5601_v15, %s5418_s22 }
 0x37f   : > { %1102 = vrot.lane.b32.xlu0 %v5595_v12, %s5418_s22 }
 0x382   : > { %1108 = vrot.lane.b32.xlu1 %v5599_v14, %s5418_s22 }
 0x383   : > { %1106 = vrot.lane.b32.xlu0 %v5605_v17, %s5418_s22 }
 0x386   : > { %1112 = vrot.lane.b32.xlu1 %v5609_v20, %s5418_s22 }
 0x387   : > { %1110 = vrot.lane.b32.xlu0 %v5603_v16, %s5418_s22 }
 0x38a   : > { %1116 = vrot.lane.b32.xlu1 %v5607_v19, %s5418_s22 }
 0x38b   : > { %1114 = vrot.lane.b32.xlu0 %v5616_v23, %s5418_s22 }
 0x38e   : > { %1120 = vrot.lane.b32.xlu1 %v5624_v27, %s5418_s22 }
 0x38f   : > { %1118 = vrot.lane.b32.xlu0 %v5614_v22, %s5418_s22 }
 0x392   : > { %1124 = vrot.lane.b32.xlu1 %v5619_v25, %s5418_s22 }
 0x393   : > { %1122 = vrot.lane.b32.xlu0 %v5636_v32, %s5418_s22 }
 0x397   : > { %1126 = vrot.lane.b32.xlu0 %v5630_v29, %s5418_s22 }
 0x3d1   : > { %v1017_v11 = vpop.xlane.xlu0 %1016 }
 0x3d2   : > { %v1019_v12 = vpop.xlane.xlu1 %1018  ;;  %5090 = vrcp.f32 %v1017_v11 }
 0x3d3   : > { %5092 = vrcp.f32 %v1019_v12 }
 0x3d6   : > { %v1023_v13 = vpop.xlane.xlu1 %1022  ;;  %v1021_v14 = vpop.xlane.xlu0 %1020 }
 0x3d7   : > { %5094 = vrcp.f32 %v1023_v13 }
 0x3d8   : > { %5096 = vrcp.f32 %v1021_v14 }
 0x3da   : > { %v1027_v15 = vpop.xlane.xlu1 %1026  ;;  %v1025_v16 = vpop.xlane.xlu0 %1024 }
 0x3db   : > { %5098 = vrcp.f32 %v1027_v15 }
 0x3dc   : > { %5100 = vrcp.f32 %v1025_v16 }
 0x3de   : > { %v1031_v17 = vpop.xlane.xlu1 %1030  ;;  %v1029_v19 = vpop.xlane.xlu0 %1028 }
 0x3df   : > { %v5091_v20 = vpop.eup %5090  ;;  %5102 = vrcp.f32 %v1031_v17 }
 0x3e0   : > { %v5093_v22 = vpop.eup %5092  ;;  %5104 = vrcp.f32 %v1029_v19  ;;  %v1064_v23 = vmul.f32 %v5091_v20, %v5929_v37 }
 0x3e1   : > { %v1065_v25 = vmul.f32 %v5093_v22, %v5931_v47 }
 0x3e2   : > { %v1035_v27 = vpop.xlane.xlu1 %1034  ;;  %v1033_v29 = vpop.xlane.xlu0 %1032 }
 0x3e3   : > { %5106 = vrcp.f32 %v1035_v27  ;;  %v1080_v32 = vpack.c.bf16 %v1065_v25, %v1064_v23 }
 0x3e4   : > { %v5095_v56 = vpop.eup %5094  ;;  %5108 = vrcp.f32 %v1033_v29 }
 0x3e5   : > { %v5097_v62 = vpop.eup %5096  ;;  %4779 = vmatprep.mubr.bf16.mxu1 %v1080_v32  ;;  %v1067_v30 = vmul.f32 %v5095_v56, %v5937_v24 }
 0x3e6   : > { %v1039_v55 = vpop.xlane.xlu1 %1038  ;;  %v1037_v59 = vpop.xlane.xlu0 %1036  ;;  %v1066_v18 = vmul.f32 %v5097_v62, %v5939_v39 }
 0x3e7   : > { %5110 = vrcp.f32 %v1039_v55 }
 0x3e8   : > { %v5099_v58 = vpop.eup %5098  ;;  %5112 = vrcp.f32 %v1037_v59  ;;  %v1081_v37 = vpack.c.bf16 %v1067_v30, %v1066_v18  ;;  %v7447_v30 = vsub.s32 0, %v5612_v21 }
 0x3e9   : > { %v5101_v61 = vpop.eup %5100  ;;  %v1069_v47 = vmul.f32 %v5099_v58, %v5945_v1 }
 0x3ea   : > { %4780 = vmatmul.mubr.bf16.vlgmr.msra.gmra.mxu1 %v1081_v37  ;;  %v1043_v53 = vpop.xlane.xlu1 %1042  ;;  %v1041_v43 = vpop.xlane.xlu0 %1040  ;;  %v1068_v2 = vmul.f32 %v5101_v61, %v5947_v33 }
 0x3eb   : > { %5114 = vrcp.f32 %v1043_v53 }
 0x3ec   : > { %v5103_v38 = vpop.eup %5102  ;;  %5116 = vrcp.f32 %v1041_v43  ;;  %v1082_v24 = vpack.c.bf16 %v1069_v47, %v1068_v2 }
 0x3ed   : > { %v5105_v5 = vpop.eup %5104  ;;  %v1071_v63 = vmul.f32 %v5103_v38, %v5953_v49 }
 0x3ee   : > { %4783 = vmatprep.mubr.bf16.mxu1 %v1082_v24  ;;  %v1047_v39 = vpop.xlane.xlu1 %1046  ;;  %v1045_v7 = vpop.xlane.xlu0 %1044  ;;  %v1070_v9 = vmul.f32 %v5105_v5, %v5955_v36 }
 0x3ef   : > { %5118 = vrcp.f32 %v1047_v39 }
 0x3f0   : > { %v5107_v26 = vpop.eup %5106  ;;  %5120 = vrcp.f32 %v1045_v7  ;;  %v1083_v1 = vpack.c.bf16 %v1071_v63, %v1070_v9 }
 0x3f1   : > { %v5109_v60 = vpop.eup %5108  ;;  %v1073_v28 = vmul.f32 %v5107_v26, %v5959_v4 }
 0x3f2   : > { %4784 = vmatmul.mubr.bf16.gmra.mxu1 %v1083_v1  ;;  %v1072_v33 = vmul.f32 %v5109_v60, %v5961_v31  ;;  %v1097_v23 = vpop.permute.xlu0 %1096 }
 0x3f4   : > { %v5111_v10 = vpop.eup %5110  ;;  %v1084_v11 = vpack.c.bf16 %v1073_v28, %v1072_v33 }
 0x3f5   : > { %v5113_v12 = vpop.eup %5112  ;;  %v1075_v49 = vmul.f32 %v5111_v10, %v5965_v51 }
 0x3f6   : > { %4787 = vmatprep.mubr.bf16.mxu1 %v1084_v11  ;;  %v1074_v13 = vmul.f32 %v5113_v12, %v5967_v0  ;;  %v5053_v0 = vld [vmem:[%s7412_s3] sm:$0xff]  }
 0x3f7   : > { %4797 = vmatprep.subr.bf16.mxu0 %v5053_v0 }
 0x3f8   : > { %v5115_v14 = vpop.eup %5114  ;;  %v1085_v36 = vpack.c.bf16 %v1075_v49, %v1074_v13  ;;  %4798 = vmatpush3.bf16.msra.mxu0 %v5053_v0 }
 0x3f9   : > { %v5117_v15 = vpop.eup %5116  ;;  %v1077_v16 = vmul.f32 %v5115_v14, %v5971_v46  ;;  %v1099_v46 = vpop.permute.xlu1 %1098 }
 0x3fa   : > { %4788 = vmatmul.mubr.bf16.gmra.mxu1 %v1085_v36  ;;  %v1076_v17 = vmul.f32 %v5117_v15, %v5973_v6  ;;  %v1103_v6 = vpop.permute.xlu0 %1102 }
 0x3fc   : > { %v5119_v4 = vpop.eup %5118  ;;  %v1086_v19 = vpack.c.bf16 %v1077_v16, %v1076_v17 }
 0x3fd   : > { %v5121_v20 = vpop.eup %5120  ;;  %v1079_v31 = vmul.f32 %v5119_v4, %v5977_v35  ;;  %v1101_v25 = vpop.permute.xlu1 %1100  ;;  %v348_v35 = vld [vmem:[%s7414_s5] sm:$0xf] }
 0x3fe   : > { %4791 = vmatprep.mubr.bf16.mxu1 %v1086_v19  ;;  %v1078_v22 = vmul.f32 %v5121_v20, %v5979_v34  ;;  %v1107_v29 = vpop.permute.xlu0 %1106  ;;  %v6042_v55 = vrot.slane %v348_v35, %v7447_v30 }
 0x400   : > { %v1087_v51 = vpack.c.bf16 %v1079_v31, %v1078_v22 }
 0x401   : > { %v1105_v27 = vpop.permute.xlu1 %1104 }
 0x402   : > { %4792 = vmatmul.mubr.bf16.gmra.mxu1 %v1087_v51  ;;  %v1111_v18 = vpop.permute.xlu0 %1110 }
 0x405   : > { %v1109_v56 = vpop.permute.xlu1 %1108 }
 0x406   : > { %v1115_v5 = vpop.permute.xlu0 %1114 }
 0x409   : > { %v1113_v24 = vpop.permute.xlu1 %1112 }
 0x40a   : > { %v1119_v16 = vpop.permute.xlu0 %1118 }
 0x40d   : > { %v1117_v13 = vpop.permute.xlu1 %1116 }
 0x4aa   : > { %v4781_v32 = vpop.f32.mrf.mxu1 }
 0x4ab   : > { %v1187_v62 = vadd.f32 %v4781_v32, %v1101_v25  ;;  %v1121_v32 = vpop.permute.xlu1 %1120 }
 0x4ac   : > { %v1178_v34 = vpop.f32.mrf.mxu1 }
 0x4ad   : > { %v1179_v59 = vadd.f32 %v1178_v34, %v1097_v23  ;;  %v1247_v47 = vadd.f32 %v6042_v55, %v1187_v62 }
 0x4ae   : > { %v4782_v58 = vpop.f32.mrf.mxu1 }
 0x4af   : > { %v1190_v37 = vadd.f32 %v4782_v58, %v1103_v6  ;;  %v1245_v53 = vadd.f32 %v6042_v55, %v1179_v59  ;;  %v1279_v9 = vmul.f32 0.01, %v1247_v47  ;;  %vm1263_vm0 = vcmp.gt.f32.partialorder %v1247_v47, 0.0 }
 0x4b0   : > { %v1181_v61 = vpop.f32.mrf.mxu1 }
 0x4b1   : > { %v1248_v43 = vadd.f32 %v6042_v55, %v1190_v37  ;;  %v1182_v2 = vadd.f32 %v1181_v61, %v1099_v46  ;;  %v1277_v26 = vmul.f32 0.01, %v1245_v53  ;;  %vm1261_vm12 = vcmp.gt.f32.partialorder %v1245_v53, 0.0 }
 0x4b2   : > { %v4785_v38 = vpop.f32.mrf.mxu1  ;;  %v1295_v17 = vsel %vm1263_vm0, %v1247_v47, %v1279_v9 }
 0x4b3   : > { %v1280_v63 = vmul.f32 0.01, %v1248_v43  ;;  %v1246_v39 = vadd.f32 %v6042_v55, %v1182_v2  ;;  %vm1264_vm13 = vcmp.gt.f32.partialorder %v1248_v43, 0.0  ;;  %v1203_v28 = vadd.f32 %v4785_v38, %v1109_v56  ;;  %v1123_v56 = vpop.permute.xlu0 %1122 }
 0x4b4   : > { %v1194_v7 = vpop.f32.mrf.mxu1  ;;  %v1293_v14 = vsel %vm1261_vm12, %v1245_v53, %v1277_v26 }
 0x4b5   : > { %v1195_v1 = vadd.f32 %v1194_v7, %v1105_v27  ;;  %vm1262_vm14 = vcmp.gt.f32.partialorder %v1246_v39, 0.0  ;;  %v1278_v60 = vmul.f32 0.01, %v1246_v39  ;;  %v1296_v11 = vsel %vm1264_vm13, %v1248_v43, %v1280_v63  ;;  %v1125_v7 = vpop.permute.xlu1 %1124 }
 0x4b6   : > { %v4786_v33 = vpop.f32.mrf.mxu1  ;;  %v1251_v4 = vadd.f32 %v6042_v55, %v1203_v28  ;;  %v1310_v22 = vpack.c.bf16 %v1296_v11, %v1295_v17 }
 0x4b7   : > { %v1206_v10 = vadd.f32 %v4786_v33, %v1111_v18  ;;  %v1294_v12 = vsel %vm1262_vm14, %v1246_v39, %v1278_v60  ;;  %v1249_v36 = vadd.f32 %v6042_v55, %v1195_v1  ;;  %v1127_v60 = vpop.permute.xlu0 %1126 }
 0x4b8   : > { %v1197_v49 = vpop.f32.mrf.mxu1  ;;  %v1309_v31 = vpack.c.bf16 %v1294_v12, %v1293_v14  ;;  %v1283_v27 = vmul.f32 0.01, %v1251_v4  ;;  %vm1267_vm14 = vcmp.gt.f32.partialorder %v1251_v4, 0.0 }
 0x4b9   : > { %v1252_v15 = vadd.f32 %v6042_v55, %v1206_v10  ;;  %v1198_v19 = vadd.f32 %v1197_v49, %v1107_v29  ;;  %v1281_v23 = vmul.f32 0.01, %v1249_v36  ;;  %vm1265_vm13 = vcmp.gt.f32.partialorder %v1249_v36, 0.0 }
 0x4ba   : > { %v4789_v20 = vpop.f32.mrf.mxu1  ;;  %4799 = vmatprep.mubr.msk.bf16.mxu0 %vm555_vm1, %v1309_v31  ;;  %v1299_v47 = vsel %vm1267_vm14, %v1251_v4, %v1283_v27 }
 0x4bb   : > { %v1284_v51 = vmul.f32 0.01, %v1252_v15  ;;  %v1250_v0 = vadd.f32 %v6042_v55, %v1198_v19  ;;  %vm1268_vm15 = vcmp.gt.f32.partialorder %v1252_v15, 0.0  ;;  %v1219_v25 = vadd.f32 %v4789_v20, %v1117_v13  ;;  %4800 = vmatmul.mubr.msk.bf16.vlgmr.msra.gmra.mxu0 %vm555_vm1, %v1310_v22 }
 0x4bc   : > { %v1210_v46 = vpop.f32.mrf.mxu1  ;;  %v1297_v18 = vsel %vm1265_vm13, %v1249_v36, %v1281_v23 }
 0x4bd   : > { %v1211_v6 = vadd.f32 %v1210_v46, %v1113_v24  ;;  %vm1266_vm12 = vcmp.gt.f32.partialorder %v1250_v0, 0.0  ;;  %v1282_v35 = vmul.f32 0.01, %v1250_v0  ;;  %v1300_v62 = vsel %vm1268_vm15, %v1252_v15, %v1284_v51 }
 0x4be   : > { %v4790_v29 = vpop.f32.mrf.mxu1  ;;  %v1255_v58 = vadd.f32 %v6042_v55, %v1219_v25  ;;  %v1312_v38 = vpack.c.bf16 %v1300_v62, %v1299_v47 }
 0x4bf   : > { %v1222_v34 = vadd.f32 %v4790_v29, %v1119_v16  ;;  %v1298_v30 = vsel %vm1266_vm12, %v1250_v0, %v1282_v35  ;;  %v1253_v37 = vadd.f32 %v6042_v55, %v1211_v6 }
 0x4c0   : > { %v1213_v59 = vpop.f32.mrf.mxu1  ;;  %v1311_v2 = vpack.c.bf16 %v1298_v30, %v1297_v18  ;;  %v1287_v9 = vmul.f32 0.01, %v1255_v58  ;;  %vm1271_vm12 = vcmp.gt.f32.partialorder %v1255_v58, 0.0 }
 0x4c1   : > { %v1256_v61 = vadd.f32 %v6042_v55, %v1222_v34  ;;  %v1214_v53 = vadd.f32 %v1213_v59, %v1115_v5  ;;  %v1285_v26 = vmul.f32 0.01, %v1253_v37  ;;  %vm1269_vm15 = vcmp.gt.f32.partialorder %v1253_v37, 0.0 }
 0x4c2   : > { %v4793_v43 = vpop.f32.mrf.mxu1  ;;  %4803 = vmatprep.mubr.msk.bf16.mxu0 %vm555_vm1, %v1311_v2  ;;  %v1303_v15 = vsel %vm1271_vm12, %v1255_v58, %v1287_v9  ;;  %vm7448_vm12 = vcmask 786112  }
 0x4c3   : > { %v1288_v24 = vmul.f32 0.01, %v1256_v61  ;;  %v1254_v63 = vadd.f32 %v6042_v55, %v1214_v53  ;;  %vm1272_vm0 = vcmp.gt.f32.partialorder %v1256_v61, 0.0  ;;  %4804 = vmatmul.mubr.msk.bf16.gmra.mxu0 %vm555_vm1, %v1312_v38  ;;  %v1235_v28 = vadd.f32 %v4793_v43, %v1125_v7  ;;  %v5314_v43 = vld [vmem:[%s7413_s4] sm:$0xf] }
 0x4c4   : > { %v1226_v39 = vpop.f32.mrf.mxu1  ;;  %v1301_v14 = vsel %vm1269_vm15, %v1253_v37, %v1285_v26 }
 0x4c5   : > { %v1227_v1 = vadd.f32 %v1226_v39, %v1121_v32  ;;  %vm1270_vm13 = vcmp.gt.f32.partialorder %v1254_v63, 0.0  ;;  %v1286_v5 = vmul.f32 0.01, %v1254_v63  ;;  %v1304_v11 = vsel %vm1272_vm0, %v1256_v61, %v1288_v24 }
 0x4c6   : > { %v4794_v33 = vpop.f32.mrf.mxu1  ;;  %v1259_v16 = vadd.f32 %v6042_v55, %v1235_v28  ;;  %v1314_v19 = vpack.c.bf16 %v1304_v11, %v1303_v15  ;;  %v7434_v61 = vsub.s32 1, %v5612_v21 }
 0x4c7   : > { %v1238_v10 = vadd.f32 %v4794_v33, %v1127_v60  ;;  %v1302_v12 = vsel %vm1270_vm13, %v1254_v63, %v1286_v5  ;;  %v1257_v49 = vadd.f32 %v6042_v55, %v1227_v1 }
 0x4c8   : > { %v1229_v13 = vpop.f32.mrf.mxu1  ;;  %v1313_v4 = vpack.c.bf16 %v1302_v12, %v1301_v14  ;;  %v1291_v51 = vmul.f32 0.01, %v1259_v16  ;;  %vm1275_vm13 = vcmp.gt.f32.partialorder %v1259_v16, 0.0  ;;  %v6102_v2 = vrot.slane %v5314_v43, %v7434_v61 }
 0x4c9   : > { %v1260_v36 = vadd.f32 %v6042_v55, %v1238_v10  ;;  %v1230_v17 = vadd.f32 %v1229_v13, %v1123_v56  ;;  %v1289_v20 = vmul.f32 0.01, %v1257_v49  ;;  %vm1273_vm14 = vcmp.gt.f32.partialorder %v1257_v49, 0.0 }
 0x4ca   : > { %4807 = vmatprep.mubr.msk.bf16.mxu0 %vm555_vm1, %v1313_v4  ;;  %v1307_v27 = vsel %vm1275_vm13, %v1259_v16, %v1291_v51  ;;  %vm7456_vm13 = vcmask 1048512  }
 0x4cb   : > { %v1292_v31 = vmul.f32 0.01, %v1260_v36  ;;  %v1258_v22 = vadd.f32 %v6042_v55, %v1230_v17  ;;  %vm1276_vm0 = vcmp.gt.f32.partialorder %v1260_v36, 0.0  ;;  %4808 = vmatmul.mubr.msk.bf16.gmra.mxu0 %vm555_vm1, %v1314_v19  ;;  %v1305_v46 = vsel %vm1273_vm14, %v1257_v49, %v1289_v20 }
 0x4cc   : > { %vm7452_vm14 = vcmask 851712  }
 0x4cd   : > { %vm1274_vm15 = vcmp.gt.f32.partialorder %v1258_v22, 0.0  ;;  %v1290_v0 = vmul.f32 0.01, %v1258_v22  ;;  %v1308_v23 = vsel %vm1276_vm0, %v1260_v36, %v1292_v31  ;;  %vm7454_vm0 = vcmask 917312  }
 0x4ce   : > { %v1316_v35 = vpack.c.bf16 %v1308_v23, %v1307_v27 }
 0x4cf   : > { %v1306_v25 = vsel %vm1274_vm15, %v1258_v22, %v1290_v0  ;;  %vm7455_vm15 = vcmask 982912  }
 0x4d0   : > { %v1315_v6 = vpack.c.bf16 %v1306_v25, %v1305_v46 }
 0x4d2   : > { %4811 = vmatprep.mubr.msk.bf16.mxu0 %vm555_vm1, %v1315_v6 }
 0x4d3   : > { %4812 = vmatmul.mubr.msk.bf16.gmra.mxu0 %vm555_vm1, %v1316_v35 }
 0x57b   : > { %v6068_v55 = vpop.f32.mrf.mxu0 }
 0x57c   : > { %1534 = vperm.xlu1 %5041, %v6068_v55   ;;  %v1460_v39 = vmul.f32 %v6068_v55, %v6102_v2 }
 0x57d   : > { %v6071_v29 = vpop.f32.mrf.mxu0 }
 0x57e   : > { %1524 = vperm.xlu0 %5042, %v6071_v29   ;;  %v1458_v26 = vmul.f32 %v6102_v2, %v6071_v29  ;;  %v1480_v1 = vsel %vm555_vm1, %v1460_v39, 0.0 }
 0x57f   : > { %v6074_v32 = vpop.f32.mrf.mxu0 }
 0x580   : > { %v1474_v5 = vsel %vm555_vm1, %v1458_v26, 0.0  ;;  %v1970_v11 = vpack.c.bf16 %v6074_v32, %v6068_v55  ;;  %v1461_v13 = vmul.f32 %v6074_v32, %v6102_v2 }
 0x581   : > { %v6076_v34 = vpop.f32.mrf.mxu0 }
 0x582   : > { %v1969_v12 = vpack.c.bf16 %v6076_v34, %v6071_v29  ;;  %v1459_v49 = vmul.f32 %v6102_v2, %v6076_v34  ;;  %v1483_v15 = vsel %vm555_vm1, %v1461_v13, 0.0 }
 0x583   : > { %v6078_v56 = vpop.f32.mrf.mxu0 }
 0x584   : > { %v1477_v14 = vsel %vm555_vm1, %v1459_v49, 0.0  ;;  %v1464_v36 = vmul.f32 %v6078_v56, %v6102_v2 }
 0x585   : > { %v6080_v62 = vpop.f32.mrf.mxu0 }
 0x586   : > { %v1492_v16 = vsel %vm555_vm1, %v1464_v36, 0.0  ;;  %v1462_v17 = vmul.f32 %v6102_v2, %v6080_v62 }
 0x587   : > { %v6082_v30 = vpop.f32.mrf.mxu0 }
 0x588   : > { %v1972_v33 = vpack.c.bf16 %v6082_v30, %v6078_v56  ;;  %v1465_v4 = vmul.f32 %v6082_v30, %v6102_v2  ;;  %v1486_v19 = vsel %vm555_vm1, %v1462_v17, 0.0 }
 0x589   : > { %v6084_v59 = vpop.f32.mrf.mxu0 }
 0x58a   : > { %v1971_v10 = vpack.c.bf16 %v6084_v59, %v6080_v62  ;;  %v1495_v20 = vsel %vm555_vm1, %v1465_v4, 0.0  ;;  %v1463_v22 = vmul.f32 %v6102_v2, %v6084_v59 }
 0x58b   : > { %v6086_v18 = vpop.f32.mrf.mxu0 }
 0x58c   : > { %v1468_v31 = vmul.f32 %v6086_v18, %v6102_v2  ;;  %v1489_v46 = vsel %vm555_vm1, %v1463_v22, 0.0 }
 0x58d   : > { %v6088_v58 = vpop.f32.mrf.mxu0 }
 0x58e   : > { %v1504_v51 = vsel %vm555_vm1, %v1468_v31, 0.0  ;;  %v1466_v0 = vmul.f32 %v6102_v2, %v6088_v58 }
 0x58f   : > { %v6090_v37 = vpop.f32.mrf.mxu0 }
 0x590   : > { %v1974_v60 = vpack.c.bf16 %v6090_v37, %v6086_v18  ;;  %v1498_v23 = vsel %vm555_vm1, %v1466_v0, 0.0  ;;  %v1469_v25 = vmul.f32 %v6090_v37, %v6102_v2 }
 0x591   : > { %v6093_v47 = vpop.f32.mrf.mxu0 }
 0x592   : > { %v1973_v28 = vpack.c.bf16 %v6093_v47, %v6088_v58  ;;  %v1507_v27 = vsel %vm555_vm1, %v1469_v25, 0.0  ;;  %v1467_v35 = vmul.f32 %v6102_v2, %v6093_v47 }
 0x593   : > { %v6095_v53 = vpop.f32.mrf.mxu0 }
 0x594   : > { %v1472_v6 = vmul.f32 %v6095_v53, %v6102_v2  ;;  %v1501_v39 = vsel %vm555_vm1, %v1467_v35, 0.0 }
 0x595   : > { %v6104_v38 = vpop.f32.mrf.mxu0 }
 0x596   : > { %v1516_v43 = vsel %vm555_vm1, %v1472_v6, 0.0 }
 0x597   : > { %v6106_v24 = vpop.f32.mrf.mxu0 }
 0x598   : > { %v1976_v63 = vpack.c.bf16 %v6106_v24, %v6095_v53 }
 0x599   : > { %v6112_v7 = vpop.f32.mrf.mxu0 }
 0x59a   : > { %4815 = vmatprep.subr.bf16.mxu1 %v1976_v63  ;;  %v1975_v9 = vpack.c.bf16 %v6112_v7, %v6104_v38 }
 0x59b   : > { %4816 = vmatpush3.bf16.msra.mxu1 %v1976_v63  ;;  %v1470_v63 = vmul.f32 %v6102_v2, %v6104_v38 }
 0x59c   : > { %4817 = vmatprep.subr.bf16.mxu1 %v1975_v9 }
 0x59d   : > { %1481 = vadd.xlane.f32.xlu0 %v1480_v1  ;;  %v1510_v26 = vsel %vm555_vm1, %v1470_v63, 0.0 }
 0x59f   : > { %4818 = vmatpush3.bf16.msra.mxu1 %v1975_v9  ;;  %v1473_v9 = vmul.f32 %v6106_v24, %v6102_v2 }
 0x5a0   : > { %1475 = vadd.xlane.f32.xlu1 %v1474_v5  ;;  %4819 = vmatprep.subr.bf16.mxu1 %v1974_v60 }
 0x5a1   : > { %v1519_v1 = vsel %vm555_vm1, %v1473_v9, 0.0 }
 0x5a3   : > { %4820 = vmatpush3.bf16.msra.mxu1 %v1974_v60  ;;  %v1471_v60 = vmul.f32 %v6102_v2, %v6112_v7 }
 0x5a4   : > { %4821 = vmatprep.subr.bf16.mxu1 %v1973_v28 }
 0x5a5   : > { %v1513_v5 = vsel %vm555_vm1, %v1471_v60, 0.0 }
 0x5a7   : > { %4822 = vmatpush3.bf16.msra.mxu1 %v1973_v28 }
 0x5a8   : > { %4823 = vmatprep.subr.bf16.mxu1 %v1972_v33 }
 0x5ab   : > { %4824 = vmatpush3.bf16.msra.mxu1 %v1972_v33 }
 0x5ac   : > { %4825 = vmatprep.subr.bf16.mxu1 %v1971_v10 }
 0x5af   : > { %4826 = vmatpush3.bf16.msra.mxu1 %v1971_v10 }
 0x5b0   : > { %4827 = vmatprep.subr.bf16.mxu1 %v1970_v11 }
 0x5b1   : > { %1529 = vperm.xlu1 %5041, %v6076_v34  }
 0x5b3   : > { %1539 = vperm.xlu0 %5042, %v6074_v32   ;;  %4828 = vmatpush3.bf16.msra.mxu1 %v1970_v11 }
 0x5b4   : > { %4829 = vmatprep.subr.bf16.mxu1 %v1969_v12 }
 0x5b7   : > { %4830 = vmatpush3.bf16.msra.mxu1 %v1969_v12 }
 0x5d2   : > { %1478 = vadd.xlane.f32.xlu0 %v1477_v14 }
 0x5d5   : > { %1484 = vadd.xlane.f32.xlu1 %v1483_v15 }
 0x5d6   : > { %1493 = vadd.xlane.f32.xlu0 %v1492_v16 }
 0x5e6   : > { %1554 = vperm.xlu1 %5041, %v6078_v56  }
 0x5ea   : > { %1544 = vperm.xlu1 %5041, %v6080_v62  }
 0x5ec   : > { %1559 = vperm.xlu0 %5042, %v6082_v30  }
 0x5f7   : > { %v6188_v28 = vpop.permute.xlu1 %1534 }
 0x5f9   : > { %v6190_v10 = vpop.permute.xlu0 %1524 }
 0x60b   : > { %1487 = vadd.xlane.f32.xlu0 %v1486_v19 }
 0x60e   : > { %1496 = vadd.xlane.f32.xlu1 %v1495_v20 }
 0x61f   : > { %1574 = vperm.xlu1 %5041, %v6086_v18  }
 0x621   : > { %1549 = vperm.xlu0 %5042, %v6084_v59  }
 0x626   : > { %v1482_v2 = vpop.xlane.xlu0 %1481 }
 0x629   : > { %v1476_v33 = vpop.xlane.xlu1 %1475 }
 0x62a   : > { %v1621_v22 = vrot.slane %v1476_v33, %v5739_v45 }
 0x62d   : > { %v1530_v11 = vpop.permute.xlu1 %1529 }
 0x62e   : > { %v6192_v12 = vpop.permute.xlu0 %1539 }
 0x640   : > { %1505 = vadd.xlane.f32.xlu0 %v1504_v51 }
 0x643   : > { %1490 = vadd.xlane.f32.xlu1 %v1489_v46  ;;  %v1630_v46 = vrot.slane %v1482_v2, %v5748_v50 }
 0x644   : > { %1499 = vadd.xlane.f32.xlu0 %v1498_v23 }
 0x654   : > { %1564 = vperm.xlu1 %5041, %v6088_v58  }
 0x65a   : > { %1569 = vperm.xlu0 %5042, %v6093_v47  }
 0x65b   : > { %v1479_v13 = vpop.xlane.xlu0 %1478 }
 0x65c   : > { %v1625_v19 = vrot.slane %v1479_v13, %v5733_v42 }
 0x65e   : > { %v1485_v49 = vpop.xlane.xlu1 %1484  ;;  %v1626_v51 = vsel %vm711_vm2, %v1625_v19, %v1621_v22 }
 0x65f   : > { %v1494_v36 = vpop.xlane.xlu0 %1493  ;;  %v1635_v25 = vrot.slane %v1485_v49, %v5744_v48  ;;  %v1631_v6 = vsel %vm718_vm3, %v1630_v46, %v1626_v51 }
 0x662   : > { %v6194_v14 = vpop.permute.xlu1 %1554 }
 0x666   : > { %v1545_v15 = vpop.permute.xlu1 %1544 }
 0x667   : > { %v6196_v16 = vpop.permute.xlu0 %1559 }
 0x678   : > { %1508 = vadd.xlane.f32.xlu1 %v1507_v27 }
 0x679   : > { %1517 = vadd.xlane.f32.xlu0 %v1516_v43  ;;  %v1636_v43 = vsel %vm725_vm4, %v1635_v25, %v1631_v6 }
 0x67c   : > { %1502 = vadd.xlane.f32.xlu1 %v1501_v39 }
 0x67d   : > { %1511 = vadd.xlane.f32.xlu0 %v1510_v26 }
 0x680   : > { %1520 = vadd.xlane.f32.xlu1 %v1519_v1  ;;  %v1650_v1 = vrot.slane %v1494_v36, %v5769_v3 }
 0x684   : > { %1514 = vadd.xlane.f32.xlu1 %v1513_v5 }
 0x693   : > { %1579 = vperm.xlu0 %5042, %v6090_v37  }
 0x694   : > { %v1488_v4 = vpop.xlane.xlu0 %1487 }
 0x695   : > { %1584 = vperm.xlu1 %5041, %v6104_v38   ;;  %v1640_v27 = vrot.slane %v1488_v4, %v5754_v54 }
 0x697   : > { %1589 = vperm.xlu0 %5042, %v6112_v7   ;;  %v1497_v17 = vpop.xlane.xlu1 %1496  ;;  %v1641_v39 = vsel %vm732_vm5, %v1640_v27, %v1636_v43 }
 0x698   : > { %v1655_v2 = vrot.slane %v1497_v17, %v5776_v8 }
 0x699   : > { %1594 = vperm.xlu1 %5041, %v6095_v53  }
 0x69b   : > { %1599 = vperm.xlu0 %5042, %v6106_v24   ;;  %v6201_v31 = vpop.permute.xlu1 %1574 }
 0x69c   : > { %v6199_v20 = vpop.permute.xlu0 %1549 }
 0x6c9   : > { %v1506_v0 = vpop.xlane.xlu0 %1505 }
 0x6ca   : > { %v1670_v51 = vrot.slane %v1506_v0, %v5794_v40  ;;  %v7451_v0 = vld [vmem:[#allocation11_spill] sm:$0xff] }
 0x6cc   : > { %v1491_v23 = vpop.xlane.xlu1 %1490 }
 0x6cd   : > { %v1645_v35 = vrot.slane %v1491_v23, %v5759_v57  ;;  %v1500_v63 = vpop.xlane.xlu0 %1499 }
 0x6ce   : > { %v1660_v4 = vrot.slane %v1500_v63, %v5785_v44 }
 0x6cf   : > { %v1646_v26 = vsel %vm739_vm6, %v1645_v35, %v1641_v39  ;;  %v7449_v35 = vld [vmem:[#allocation9_spill] sm:$0xff]  ;;  %v7450_v39 = vld [vmem:[#allocation10_spill] sm:$0xff] }
 0x6d0   : > { %v6212_v9 = vpop.permute.xlu1 %1564  ;;  %v1651_v5 = vsel %vm746_vm7, %v1650_v1, %v1646_v26  ;;  %v4608_v1 = vld [vmem:[%s5568_s23 + $0x40] sm:$0xff]  }
 0x6d1   : > { %v1656_v49 = vsel %vm753_vm8, %v1655_v2, %v1651_v5 }
 0x6d2   : > { %v1661_v36 = vsel %vm760_vm9, %v1660_v4, %v1656_v49  ;;  %v4609_v49 = vld [vmem:[%s5568_s23 + $0x48] sm:$0xff]  }
 0x6d3   : > { %v7453_v4 = vld [vmem:[#allocation12_spill] sm:$0xff] }
 0x6d5   : > { %v6216_v60 = vpop.permute.xlu0 %1569 }
 0x701   : > { %v1509_v33 = vpop.xlane.xlu1 %1508 }
 0x702   : > { %v1518_v13 = vpop.xlane.xlu0 %1517  ;;  %v1675_v25 = vrot.slane %v1509_v33, %v5800_v41 }
 0x703   : > { %v1690_v5 = vrot.slane %v1518_v13, %v7451_v0 }
 0x705   : > { %v1503_v19 = vpop.xlane.xlu1 %1502 }
 0x706   : > { %v1665_v22 = vrot.slane %v1503_v19, %v5791_v52  ;;  %v1512_v6 = vpop.xlane.xlu0 %1511 }
 0x707   : > { %v1680_v43 = vrot.slane %v1512_v6, %v7449_v35  ;;  %v4512_v6 = vunpack.c.h.bf16 %v4609_v49 }
 0x708   : > { %v1666_v46 = vsel %vm767_vm10, %v1665_v22, %v1661_v36  ;;  %v4508_v36 = vunpack.c.h.bf16 %v4608_v1 }
 0x709   : > { %v1671_v23 = vsel %vm774_vm11, %v1670_v51, %v1666_v46  ;;  %v1521_v17 = vpop.xlane.xlu1 %1520  ;;  %v4610_v51 = vld [vmem:[%s5568_s23 + $0x50] sm:$0xff]  }
 0x70a   : > { %v1676_v27 = vsel %vm7448_vm12, %v1675_v25, %v1671_v23  ;;  %v1695_v19 = vrot.slane %v1521_v17, %v7453_v4  ;;  %v4507_v23 = vunpack.c.l.bf16 %v4608_v1  ;;  %v4511_v25 = vunpack.c.l.bf16 %v4609_v49  ;;  %v4611_v49 = vld [vmem:[%s5568_s23 + $0x58] sm:$0xff]  }
 0x70b   : > { %v1681_v2 = vsel %vm7452_vm14, %v1680_v43, %v1676_v27  ;;  %v4519_v4 = vunpack.c.l.bf16 %v4611_v49 }
 0x70d   : > { %v1515_v63 = vpop.xlane.xlu1 %1514 }
 0x70e   : > { %v1685_v26 = vrot.slane %v1515_v63, %v7450_v39  ;;  %v4515_v63 = vunpack.c.l.bf16 %v4610_v51 }
 0x710   : > { %v1686_v22 = vsel %vm7454_vm0, %v1685_v26, %v1681_v2 }
 0x711   : > { %v1691_v33 = vsel %vm7455_vm15, %v1690_v5, %v1686_v22 }
 0x712   : > { %v6240_v46 = vsel %vm7456_vm13, %v1695_v19, %v1691_v33 }
 0x713   : > { %v1705_v13 = vadd.f32 %v6240_v46, %v1530_v11  ;;  %v1704_v27 = vadd.f32 %v6240_v46, %v6190_v10  ;;  %v1706_v17 = vadd.f32 %v6240_v46, %v6188_v28  ;;  %v1707_v43 = vadd.f32 %v6240_v46, %v6192_v12  ;;  %v4612_v12 = vld [vmem:[%s5568_s23 + $0x60] sm:$0xff]  }
 0x714   : > { %v1708_v26 = vadd.f32 %v6240_v46, %v1545_v15  ;;  %v4516_v28 = vunpack.c.h.bf16 %v4610_v51  ;;  %v1710_v51 = vadd.f32 %v6240_v46, %v6194_v14 }
 0x715   : > { %v1754_v5 = vadd.f32 %v4508_v36, %v1705_v13  ;;  %v1753_v2 = vadd.f32 %v4507_v23, %v1704_v27  ;;  %v1755_v1 = vadd.f32 %v4511_v25, %v1706_v17  ;;  %v1756_v19 = vadd.f32 %v4512_v6, %v1707_v43  ;;  %v1580_v25 = vpop.permute.xlu0 %1579  ;;  %v4613_v43 = vld [vmem:[%s5568_s23 + $0x68] sm:$0xff]  }
 0x716   : > { %v1757_v33 = vadd.f32 %v4515_v63, %v1708_v26  ;;  %v4520_v23 = vunpack.c.h.bf16 %v4611_v49  ;;  %v1709_v6 = vadd.f32 %v6240_v46, %v6199_v20  ;;  %v1711_v13 = vadd.f32 %v6240_v46, %v6196_v16 }
 0x717   : > { %vm1770_vm12 = vcmp.gt.f32.partialorder %v1754_v5, 0.0  ;;  %v1786_v11 = vmul.f32 0.2, %v1754_v5  ;;  %vm1769_vm14 = vcmp.gt.f32.partialorder %v1753_v2, 0.0  ;;  %v1785_v22 = vmul.f32 0.2, %v1753_v2 }
 0x718   : > { %v1787_v61 = vmul.f32 0.2, %v1755_v1  ;;  %vm1771_vm0 = vcmp.gt.f32.partialorder %v1755_v1, 0.0  ;;  %v1788_v36 = vmul.f32 0.2, %v1756_v19  ;;  %vm1772_vm15 = vcmp.gt.f32.partialorder %v1756_v19, 0.0 }
 0x719   : > { %v6251_v10 = vsel %vm1770_vm12, %v1754_v5, %v1786_v11  ;;  %v6255_v15 = vsel %vm1769_vm14, %v1753_v2, %v1785_v22  ;;  %v1789_v63 = vmul.f32 0.2, %v1757_v33  ;;  %v4523_v27 = vunpack.c.l.bf16 %v4612_v12  ;;  %v1585_v22 = vpop.permute.xlu1 %1584 }
 0x71a   : > { %1819 = vmax.xlane.f32.xlu0 %v6251_v10  ;;  %1817 = vmax.xlane.f32.xlu1 %v6255_v15  ;;  %v4524_v17 = vunpack.c.h.bf16 %v4612_v12  ;;  %v6265_v26 = vsel %vm1771_vm0, %v1755_v1, %v1787_v61  ;;  %v1758_v5 = vadd.f32 %v4516_v28, %v1709_v6  ;;  %v1759_v2 = vadd.f32 %v4519_v4, %v1710_v51  ;;  %v4614_v28 = vld [vmem:[%s5568_s23 + $0x70] sm:$0xff]  }
 0x71b   : > { %v1712_v49 = vadd.f32 %v6240_v46, %v6212_v9  ;;  %v6270_v20 = vsel %vm1772_vm15, %v1756_v19, %v1788_v36  ;;  %vm1773_vm13 = vcmp.gt.f32.partialorder %v1757_v33, 0.0  ;;  %v1760_v14 = vadd.f32 %v4520_v23, %v1711_v13  ;;  %v1590_v9 = vpop.permute.xlu0 %1589 }
 0x71c   : > { %v1713_v16 = vadd.f32 %v6240_v46, %v6216_v60  ;;  %vm1774_vm12 = vcmp.gt.f32.partialorder %v1758_v5, 0.0  ;;  %v1790_v61 = vmul.f32 0.2, %v1758_v5  ;;  %v4527_v1 = vunpack.c.l.bf16 %v4613_v43 }
 0x71d   : > { %v4528_v11 = vunpack.c.h.bf16 %v4613_v43  ;;  %v1715_v4 = vadd.f32 %v6240_v46, %v1580_v25  ;;  %v6277_v12 = vsel %vm1773_vm13, %v1757_v33, %v1789_v63  ;;  %v1791_v19 = vmul.f32 0.2, %v1759_v2 }
 0x71e   : > { %1821 = vmax.xlane.f32.xlu0 %v6265_v26  ;;  %1823 = vmax.xlane.f32.xlu1 %v6270_v20  ;;  %v1761_v36 = vadd.f32 %v4523_v27, %v1712_v49  ;;  %v1714_v23 = vadd.f32 %v6240_v46, %v6201_v31  ;;  %v6282_v60 = vsel %vm1774_vm12, %v1758_v5, %v1790_v61  ;;  %vm1775_vm14 = vcmp.gt.f32.partialorder %v1759_v2, 0.0  ;;  %v4615_v27 = vld [vmem:[%s5568_s23 + $0x78] sm:$0xff]   ;;  %v1595_v5 = vpop.permute.xlu1 %1594 }
 0x71f   : > { %v1792_v6 = vmul.f32 0.2, %v1760_v14  ;;  %v1762_v51 = vadd.f32 %v4524_v17, %v1713_v16  ;;  %vm1776_vm0 = vcmp.gt.f32.partialorder %v1760_v14, 0.0  ;;  %v4531_v25 = vunpack.c.l.bf16 %v4614_v28  ;;  %v1600_v16 = vpop.permute.xlu0 %1599 }
 0x720   : > { %v1716_v13 = vadd.f32 %v6240_v46, %v1585_v22  ;;  %v4532_v33 = vunpack.c.h.bf16 %v4614_v28  ;;  %v1717_v63 = vadd.f32 %v6240_v46, %v1590_v9  ;;  %v6288_v43 = vsel %vm1775_vm14, %v1759_v2, %v1791_v19 }
 0x721   : > { %v1793_v31 = vmul.f32 0.2, %v1761_v36  ;;  %v1763_v49 = vadd.f32 %v4527_v1, %v1714_v23  ;;  %v1764_v0 = vadd.f32 %v4528_v11, %v1715_v4  ;;  %v6291_v61 = vsel %vm1776_vm0, %v1760_v14, %v1792_v6 }
 0x722   : > { %1825 = vmax.xlane.f32.xlu0 %v6277_v12  ;;  %1827 = vmax.xlane.f32.xlu1 %v6282_v60  ;;  %vm1777_vm15 = vcmp.gt.f32.partialorder %v1761_v36, 0.0  ;;  %v1794_v17 = vmul.f32 0.2, %v1762_v51  ;;  %vm1778_vm13 = vcmp.gt.f32.partialorder %v1762_v51, 0.0  ;;  %v1765_v22 = vadd.f32 %v4531_v25, %v1716_v13 }
 0x723   : > { %v4535_v28 = vunpack.c.l.bf16 %v4615_v27  ;;  %v4536_v9 = vunpack.c.h.bf16 %v4615_v27  ;;  %v1766_v39 = vadd.f32 %v4532_v33, %v1717_v63  ;;  %v1718_v2 = vadd.f32 %v6240_v46, %v1595_v5 }
 0x724   : > { %v6295_v19 = vsel %vm1777_vm15, %v1761_v36, %v1793_v31  ;;  %v1795_v1 = vmul.f32 0.2, %v1763_v49  ;;  %v1719_v11 = vadd.f32 %v6240_v46, %v1600_v16  ;;  %v6299_v14 = vsel %vm1778_vm13, %v1762_v51, %v1794_v17 }
 0x725   : > { %vm1779_vm12 = vcmp.gt.f32.partialorder %v1763_v49, 0.0  ;;  %v1796_v4 = vmul.f32 0.2, %v1764_v0  ;;  %vm1780_vm14 = vcmp.gt.f32.partialorder %v1764_v0, 0.0  ;;  %v1767_v23 = vadd.f32 %v4535_v28, %v1718_v2 }
 0x726   : > { %1829 = vmax.xlane.f32.xlu0 %v6288_v43  ;;  %1831 = vmax.xlane.f32.xlu1 %v6291_v61  ;;  %v6302_v6 = vsel %vm1779_vm12, %v1763_v49, %v1795_v1  ;;  %v1797_v25 = vmul.f32 0.2, %v1765_v22  ;;  %v1768_v13 = vadd.f32 %v4536_v9, %v1719_v11  ;;  %vm1781_vm0 = vcmp.gt.f32.partialorder %v1765_v22, 0.0 }
 0x727   : > { %v6305_v36 = vsel %vm1780_vm14, %v1764_v0, %v1796_v4  ;;  %v1798_v46 = vmul.f32 0.2, %v1766_v39  ;;  %vm1782_vm15 = vcmp.gt.f32.partialorder %v1766_v39, 0.0  ;;  %v1799_v33 = vmul.f32 0.2, %v1767_v23 }
 0x728   : > { %v6308_v51 = vsel %vm1781_vm0, %v1765_v22, %v1797_v25  ;;  %vm1783_vm13 = vcmp.gt.f32.partialorder %v1767_v23, 0.0  ;;  %v1800_v27 = vmul.f32 0.2, %v1768_v13  ;;  %vm1784_vm12 = vcmp.gt.f32.partialorder %v1768_v13, 0.0 }
 0x729   : > { %v6311_v63 = vsel %vm1782_vm15, %v1766_v39, %v1798_v46  ;;  %v6314_v31 = vsel %vm1783_vm13, %v1767_v23, %v1799_v33 }
 0x72a   : > { %1833 = vmax.xlane.f32.xlu0 %v6295_v19  ;;  %1835 = vmax.xlane.f32.xlu1 %v6299_v14  ;;  %v6317_v0 = vsel %vm1784_vm12, %v1768_v13, %v1800_v27 }
 0x72e   : > { %1837 = vmax.xlane.f32.xlu0 %v6302_v6  ;;  %1839 = vmax.xlane.f32.xlu1 %v6305_v36 }
 0x732   : > { %1841 = vmax.xlane.f32.xlu0 %v6308_v51  ;;  %1843 = vmax.xlane.f32.xlu1 %v6311_v63 }
 0x736   : > { %1845 = vmax.xlane.f32.xlu0 %v6314_v31  ;;  %1847 = vmax.xlane.f32.xlu1 %v6317_v0 }
 0x7a3   : > { %v1820_v49 = vpop.xlane.xlu0 %1819  ;;  %v1818_v5 = vpop.xlane.xlu1 %1817 }
 0x7a4   : > { %v1850_v17 = vsub.f32 %v6251_v10, %v1820_v49  ;;  %v1849_v39 = vsub.f32 %v6255_v15, %v1818_v5 }
 0x7a6   : > { %v1867_v16 = vmul.f32 1.442695, %v1850_v17  ;;  %v1865_v22 = vmul.f32 1.442695, %v1849_v39 }
 0x7a7   : > { %v1822_v28 = vpop.xlane.xlu0 %1821  ;;  %v1824_v9 = vpop.xlane.xlu1 %1823 }
 0x7a8   : > { %5122 = vpow2.f32 %v1867_v16  ;;  %v1851_v2 = vsub.f32 %v6265_v26, %v1822_v28  ;;  %v1852_v1 = vsub.f32 %v6270_v20, %v1824_v9 }
 0x7a9   : > { %5124 = vpow2.f32 %v1865_v22 }
 0x7aa   : > { %v1869_v11 = vmul.f32 1.442695, %v1851_v2  ;;  %v1871_v4 = vmul.f32 1.442695, %v1852_v1 }
 0x7ab   : > { %v1826_v23 = vpop.xlane.xlu0 %1825  ;;  %v1828_v25 = vpop.xlane.xlu1 %1827 }
 0x7ac   : > { %5126 = vpow2.f32 %v1869_v11  ;;  %v1853_v13 = vsub.f32 %v6277_v12, %v1826_v23  ;;  %v1854_v10 = vsub.f32 %v6282_v60, %v1828_v25 }
 0x7ad   : > { %5128 = vpow2.f32 %v1871_v4 }
 0x7ae   : > { %v1873_v15 = vmul.f32 1.442695, %v1853_v13  ;;  %v1875_v46 = vmul.f32 1.442695, %v1854_v10 }
 0x7af   : > { %v1830_v33 = vpop.xlane.xlu0 %1829  ;;  %v1832_v27 = vpop.xlane.xlu1 %1831 }
 0x7b0   : > { %5130 = vpow2.f32 %v1873_v15  ;;  %v1855_v26 = vsub.f32 %v6288_v43, %v1830_v33  ;;  %v1856_v20 = vsub.f32 %v6291_v61, %v1832_v27 }
 0x7b1   : > { %5132 = vpow2.f32 %v1875_v46 }
 0x7b2   : > { %v1877_v49 = vmul.f32 1.442695, %v1855_v26  ;;  %v1879_v5 = vmul.f32 1.442695, %v1856_v20 }
 0x7b3   : > { %v1834_v17 = vpop.xlane.xlu0 %1833  ;;  %v1836_v39 = vpop.xlane.xlu1 %1835 }
 0x7b4   : > { %5134 = vpow2.f32 %v1877_v49  ;;  %v1857_v12 = vsub.f32 %v6295_v19, %v1834_v17  ;;  %v1858_v60 = vsub.f32 %v6299_v14, %v1836_v39 }
 0x7b5   : > { %v6329_v16 = vpop.eup %5122  ;;  %5136 = vpow2.f32 %v1879_v5 }
 0x7b6   : > { %v6332_v22 = vpop.eup %5124  ;;  %v1881_v28 = vmul.f32 1.442695, %v1857_v12  ;;  %1899 = vadd.xlane.f32.xlu1 %v6329_v16  ;;  %v1883_v43 = vmul.f32 1.442695, %v1858_v60 }
 0x7b7   : > { %1897 = vadd.xlane.f32.xlu0 %v6332_v22  ;;  %v1838_v61 = vpop.xlane.xlu0 %1837  ;;  %v1840_v9 = vpop.xlane.xlu1 %1839 }
 0x7b8   : > { %5138 = vpow2.f32 %v1881_v28  ;;  %v1859_v2 = vsub.f32 %v6302_v6, %v1838_v61  ;;  %v1860_v19 = vsub.f32 %v6305_v36, %v1840_v9 }
 0x7b9   : > { %v6337_v1 = vpop.eup %5126  ;;  %5140 = vpow2.f32 %v1883_v43 }
 0x7ba   : > { %v6340_v11 = vpop.eup %5128  ;;  %v1885_v14 = vmul.f32 1.442695, %v1859_v2  ;;  %v1887_v4 = vmul.f32 1.442695, %v1860_v19 }
 0x7bb   : > { %1903 = vadd.xlane.f32.xlu1 %v6340_v11  ;;  %1901 = vadd.xlane.f32.xlu0 %v6337_v1  ;;  %v1842_v23 = vpop.xlane.xlu0 %1841  ;;  %v1844_v25 = vpop.xlane.xlu1 %1843 }
 0x7bc   : > { %5142 = vpow2.f32 %v1885_v14  ;;  %v1861_v13 = vsub.f32 %v6308_v51, %v1842_v23  ;;  %v1862_v6 = vsub.f32 %v6311_v63, %v1844_v25 }
 0x7bd   : > { %v6345_v10 = vpop.eup %5130  ;;  %5144 = vpow2.f32 %v1887_v4 }
 0x7be   : > { %v6348_v15 = vpop.eup %5132  ;;  %v1889_v36 = vmul.f32 1.442695, %v1861_v13  ;;  %v1891_v46 = vmul.f32 1.442695, %v1862_v6 }
 0x7bf   : > { %1907 = vadd.xlane.f32.xlu1 %v6348_v15  ;;  %1905 = vadd.xlane.f32.xlu0 %v6345_v10  ;;  %v1846_v33 = vpop.xlane.xlu0 %1845  ;;  %v1848_v27 = vpop.xlane.xlu1 %1847 }
 0x7c0   : > { %5146 = vpow2.f32 %v1889_v36  ;;  %v1863_v26 = vsub.f32 %v6314_v31, %v1846_v33  ;;  %v1864_v51 = vsub.f32 %v6317_v0, %v1848_v27 }
 0x7c1   : > { %v6353_v20 = vpop.eup %5134  ;;  %5148 = vpow2.f32 %v1891_v46 }
 0x7c2   : > { %v6356_v49 = vpop.eup %5136  ;;  %v1893_v63 = vmul.f32 1.442695, %v1863_v26  ;;  %v1895_v5 = vmul.f32 1.442695, %v1864_v51 }
 0x7c3   : > { %1911 = vadd.xlane.f32.xlu1 %v6356_v49  ;;  %1909 = vadd.xlane.f32.xlu0 %v6353_v20 }
 0x7c4   : > { %5150 = vpow2.f32 %v1893_v63 }
 0x7c5   : > { %v6360_v17 = vpop.eup %5138  ;;  %5152 = vpow2.f32 %v1895_v5 }
 0x7c6   : > { %v6362_v39 = vpop.eup %5140 }
 0x7c7   : > { %1915 = vadd.xlane.f32.xlu1 %v6362_v39  ;;  %1913 = vadd.xlane.f32.xlu0 %v6360_v17 }
 0x7c9   : > { %v6366_v31 = vpop.eup %5142 }
 0x7ca   : > { %v6368_v0 = vpop.eup %5144 }
 0x7cb   : > { %1919 = vadd.xlane.f32.xlu1 %v6368_v0  ;;  %1917 = vadd.xlane.f32.xlu0 %v6366_v31 }
 0x7cd   : > { %v6372_v12 = vpop.eup %5146 }
 0x7ce   : > { %v6374_v60 = vpop.eup %5148 }
 0x7cf   : > { %1923 = vadd.xlane.f32.xlu1 %v6374_v60  ;;  %1921 = vadd.xlane.f32.xlu0 %v6372_v12 }
 0x7d1   : > { %v6378_v28 = vpop.eup %5150 }
 0x7d2   : > { %v6380_v43 = vpop.eup %5152 }
 0x7d3   : > { %1927 = vadd.xlane.f32.xlu1 %v6380_v43  ;;  %1925 = vadd.xlane.f32.xlu0 %v6378_v28 }
 0x7e4   : > { %1979 = vrot.lane.b32.xlu1 %v6076_v34, %s5418_s22 }
 0x7e8   : > { %1981 = vrot.lane.b32.xlu1 %v6068_v55, %s5418_s22  ;;  %v5054_v55 = vld [vmem:[%s7412_s3 + $0x18] sm:$0xff]  }
 0x7e9   : > { %1977 = vrot.lane.b32.xlu0 %v6071_v29, %s5418_s22  ;;  %4847 = vmatprep.subr.bf16.mxu0 %v5054_v55 }
 0x7ea   : > { %4848 = vmatpush3.bf16.msra.mxu0 %v5054_v55 }
 0x7ec   : > { %1985 = vrot.lane.b32.xlu1 %v6080_v62, %s5418_s22 }
 0x7ed   : > { %1983 = vrot.lane.b32.xlu0 %v6074_v32, %s5418_s22 }
 0x7f0   : > { %1989 = vrot.lane.b32.xlu1 %v6078_v56, %s5418_s22 }
 0x7f1   : > { %1987 = vrot.lane.b32.xlu0 %v6084_v59, %s5418_s22 }
 0x7f4   : > { %1993 = vrot.lane.b32.xlu1 %v6088_v58, %s5418_s22 }
 0x7f5   : > { %1991 = vrot.lane.b32.xlu0 %v6082_v30, %s5418_s22 }
 0x7f8   : > { %1997 = vrot.lane.b32.xlu1 %v6086_v18, %s5418_s22 }
 0x7f9   : > { %1995 = vrot.lane.b32.xlu0 %v6093_v47, %s5418_s22 }
 0x7fc   : > { %2001 = vrot.lane.b32.xlu1 %v6104_v38, %s5418_s22 }
 0x7fd   : > { %1999 = vrot.lane.b32.xlu0 %v6090_v37, %s5418_s22 }
 0x800   : > { %2005 = vrot.lane.b32.xlu1 %v6095_v53, %s5418_s22 }
 0x801   : > { %2003 = vrot.lane.b32.xlu0 %v6112_v7, %s5418_s22 }
 0x805   : > { %2007 = vrot.lane.b32.xlu0 %v6106_v24, %s5418_s22 }
 0x83f   : > { %v1900_v29 = vpop.xlane.xlu1 %1899 }
 0x840   : > { %5154 = vrcp.f32 %v1900_v29  ;;  %v1898_v32 = vpop.xlane.xlu0 %1897 }
 0x841   : > { %5156 = vrcp.f32 %v1898_v32 }
 0x844   : > { %v1904_v34 = vpop.xlane.xlu1 %1903  ;;  %v1902_v56 = vpop.xlane.xlu0 %1901 }
 0x845   : > { %5158 = vrcp.f32 %v1904_v34 }
 0x846   : > { %5160 = vrcp.f32 %v1902_v56 }
 0x848   : > { %v1908_v62 = vpop.xlane.xlu1 %1907  ;;  %v1906_v30 = vpop.xlane.xlu0 %1905 }
 0x849   : > { %5162 = vrcp.f32 %v1908_v62 }
 0x84a   : > { %5164 = vrcp.f32 %v1906_v30 }
 0x84c   : > { %v1912_v59 = vpop.xlane.xlu1 %1911  ;;  %v1910_v18 = vpop.xlane.xlu0 %1909 }
 0x84d   : > { %v5155_v58 = vpop.eup %5154  ;;  %5166 = vrcp.f32 %v1912_v59 }
 0x84e   : > { %v5157_v37 = vpop.eup %5156  ;;  %5168 = vrcp.f32 %v1910_v18  ;;  %v1946_v47 = vmul.f32 %v5155_v58, %v6329_v16 }
 0x84f   : > { %v1945_v53 = vmul.f32 %v5157_v37, %v6332_v22 }
 0x850   : > { %v1916_v38 = vpop.xlane.xlu1 %1915  ;;  %v1914_v24 = vpop.xlane.xlu0 %1913 }
 0x851   : > { %5170 = vrcp.f32 %v1916_v38  ;;  %v1961_v7 = vpack.c.bf16 %v1946_v47, %v1945_v53 }
 0x852   : > { %v5159_v61 = vpop.eup %5158  ;;  %5172 = vrcp.f32 %v1914_v24 }
 0x853   : > { %v5161_v9 = vpop.eup %5160  ;;  %4831 = vmatprep.mubr.bf16.mxu1 %v1961_v7  ;;  %v1948_v2 = vmul.f32 %v5159_v61, %v6340_v11 }
 0x854   : > { %v1920_v19 = vpop.xlane.xlu1 %1919  ;;  %v1918_v14 = vpop.xlane.xlu0 %1917  ;;  %v1947_v4 = vmul.f32 %v5161_v9, %v6337_v1 }
 0x855   : > { %5174 = vrcp.f32 %v1920_v19  ;;  %v7457_v19 = vsub.s32 1, %v5612_v21 }
 0x856   : > { %v5163_v23 = vpop.eup %5162  ;;  %5176 = vrcp.f32 %v1918_v14  ;;  %v1962_v16 = vpack.c.bf16 %v1948_v2, %v1947_v4 }
 0x857   : > { %v5165_v25 = vpop.eup %5164  ;;  %v1950_v22 = vmul.f32 %v5163_v23, %v6348_v15 }
 0x858   : > { %4832 = vmatmul.mubr.bf16.vlgmr.msra.gmra.mxu1 %v1962_v16  ;;  %v1924_v13 = vpop.xlane.xlu1 %1923  ;;  %v1922_v6 = vpop.xlane.xlu0 %1921  ;;  %v1949_v36 = vmul.f32 %v5165_v25, %v6345_v10 }
 0x859   : > { %5178 = vrcp.f32 %v1924_v13 }
 0x85a   : > { %v5167_v46 = vpop.eup %5166  ;;  %5180 = vrcp.f32 %v1922_v6  ;;  %v1963_v11 = vpack.c.bf16 %v1950_v22, %v1949_v36 }
 0x85b   : > { %v5169_v33 = vpop.eup %5168  ;;  %v1952_v27 = vmul.f32 %v5167_v46, %v6356_v49 }
 0x85c   : > { %4835 = vmatprep.mubr.bf16.mxu1 %v1963_v11  ;;  %v1928_v1 = vpop.xlane.xlu1 %1927  ;;  %v1926_v26 = vpop.xlane.xlu0 %1925  ;;  %v1951_v51 = vmul.f32 %v5169_v33, %v6353_v20 }
 0x85d   : > { %5182 = vrcp.f32 %v1928_v1 }
 0x85e   : > { %v5171_v63 = vpop.eup %5170  ;;  %5184 = vrcp.f32 %v1926_v26  ;;  %v1964_v15 = vpack.c.bf16 %v1952_v27, %v1951_v51 }
 0x85f   : > { %v5173_v5 = vpop.eup %5172  ;;  %v1954_v55 = vmul.f32 %v5171_v63, %v6362_v39 }
 0x860   : > { %4836 = vmatmul.mubr.bf16.gmra.mxu1 %v1964_v15  ;;  %v1953_v10 = vmul.f32 %v5173_v5, %v6360_v17  ;;  %v1978_v53 = vpop.permute.xlu0 %1977 }
 0x862   : > { %v5175_v29 = vpop.eup %5174  ;;  %v1965_v32 = vpack.c.bf16 %v1954_v55, %v1953_v10 }
 0x863   : > { %v5177_v34 = vpop.eup %5176  ;;  %v1956_v49 = vmul.f32 %v5175_v29, %v6368_v0 }
 0x864   : > { %4839 = vmatprep.mubr.bf16.mxu1 %v1965_v32  ;;  %v1955_v56 = vmul.f32 %v5177_v34, %v6366_v31  ;;  %v5055_v31 = vld [vmem:[%s7412_s3 + $0x10] sm:$0xff]  }
 0x865   : > { %4849 = vmatprep.subr.bf16.mxu0 %v5055_v31 }
 0x866   : > { %v5179_v62 = vpop.eup %5178  ;;  %v1966_v20 = vpack.c.bf16 %v1956_v49, %v1955_v56  ;;  %4850 = vmatpush3.bf16.msra.mxu0 %v5055_v31 }
 0x867   : > { %v5181_v30 = vpop.eup %5180  ;;  %v1958_v59 = vmul.f32 %v5179_v62, %v6374_v60  ;;  %v1980_v60 = vpop.permute.xlu1 %1979 }
 0x868   : > { %4840 = vmatmul.mubr.bf16.gmra.mxu1 %v1966_v20  ;;  %v1957_v18 = vmul.f32 %v5181_v30, %v6372_v12  ;;  %v1984_v12 = vpop.permute.xlu0 %1983 }
 0x86a   : > { %v5183_v39 = vpop.eup %5182  ;;  %v1967_v58 = vpack.c.bf16 %v1958_v59, %v1957_v18 }
 0x86b   : > { %v5185_v37 = vpop.eup %5184  ;;  %v1960_v17 = vmul.f32 %v5183_v39, %v6380_v43  ;;  %v1982_v38 = vpop.permute.xlu1 %1981 }
 0x86c   : > { %4843 = vmatprep.mubr.bf16.mxu1 %v1967_v58  ;;  %v1959_v47 = vmul.f32 %v5185_v37, %v6378_v28  ;;  %v1988_v7 = vpop.permute.xlu0 %1987  ;;  %v5315_v28 = vld [vmem:[%s7414_s5] sm:$0xf] }
 0x86d   : > { %v6443_v14 = vrot.slane %v5315_v28, %v7457_v19 }
 0x86e   : > { %v1968_v0 = vpack.c.bf16 %v1960_v17, %v1959_v47 }
 0x86f   : > { %v1986_v24 = vpop.permute.xlu1 %1985 }
 0x870   : > { %4844 = vmatmul.mubr.bf16.gmra.mxu1 %v1968_v0  ;;  %v1992_v23 = vpop.permute.xlu0 %1991 }
 0x873   : > { %v1990_v43 = vpop.permute.xlu1 %1989 }
 0x874   : > { %v1996_v27 = vpop.permute.xlu0 %1995 }
 0x877   : > { %v1994_v33 = vpop.permute.xlu1 %1993 }
 0x878   : > { %v2000_v18 = vpop.permute.xlu0 %1999 }
 0x87b   : > { %v1998_v62 = vpop.permute.xlu1 %1997 }
 0x87c   : > { %v2004_v28 = vpop.permute.xlu0 %2003 }
 0x918   : > { %v4833_v61 = vpop.f32.mrf.mxu1 }
 0x919   : > { %v2068_v2 = vadd.f32 %v4833_v61, %v1982_v38 }
 0x91a   : > { %v2059_v9 = vpop.f32.mrf.mxu1 }
 0x91b   : > { %v2060_v4 = vadd.f32 %v2059_v9, %v1978_v53  ;;  %v2128_v13 = vadd.f32 %v6443_v14, %v2068_v2 }
 0x91c   : > { %v4834_v16 = vpop.f32.mrf.mxu1 }
 0x91d   : > { %v2071_v25 = vadd.f32 %v4834_v16, %v1984_v12  ;;  %v2126_v6 = vadd.f32 %v6443_v14, %v2060_v4  ;;  %v2160_v63 = vmul.f32 0.01, %v2128_v13  ;;  %vm2144_vm13 = vcmp.gt.f32.partialorder %v2128_v13, 0.0 }
 0x91e   : > { %v2062_v22 = vpop.f32.mrf.mxu1 }
 0x91f   : > { %v2129_v36 = vadd.f32 %v6443_v14, %v2071_v25  ;;  %v2063_v46 = vadd.f32 %v2062_v22, %v1980_v60  ;;  %v2158_v15 = vmul.f32 0.01, %v2126_v6  ;;  %vm2142_vm0 = vcmp.gt.f32.partialorder %v2126_v6, 0.0 }
 0x920   : > { %v4837_v11 = vpop.f32.mrf.mxu1  ;;  %v2176_v39 = vsel %vm2144_vm13, %v2128_v13, %v2160_v63 }
 0x921   : > { %v2161_v1 = vmul.f32 0.01, %v2129_v36  ;;  %v2127_v26 = vadd.f32 %v6443_v14, %v2063_v46  ;;  %vm2145_vm14 = vcmp.gt.f32.partialorder %v2129_v36, 0.0  ;;  %v2084_v10 = vadd.f32 %v4837_v11, %v1990_v43  ;;  %v2002_v43 = vpop.permute.xlu1 %2001 }
 0x922   : > { %v2075_v51 = vpop.f32.mrf.mxu1  ;;  %v2174_v20 = vsel %vm2142_vm0, %v2126_v6, %v2158_v15 }
 0x923   : > { %v2076_v5 = vadd.f32 %v2075_v51, %v1986_v24  ;;  %vm2143_vm15 = vcmp.gt.f32.partialorder %v2127_v26, 0.0  ;;  %v2159_v55 = vmul.f32 0.01, %v2127_v26  ;;  %v2177_v34 = vsel %vm2145_vm14, %v2129_v36, %v2161_v1 }
 0x924   : > { %v4838_v29 = vpop.f32.mrf.mxu1  ;;  %v2132_v58 = vadd.f32 %v6443_v14, %v2084_v10  ;;  %v2191_v0 = vpack.c.bf16 %v2177_v34, %v2176_v39  ;;  %v2008_v10 = vpop.permute.xlu0 %2007 }
 0x925   : > { %v2087_v32 = vadd.f32 %v4838_v29, %v1992_v23  ;;  %v2175_v49 = vsel %vm2143_vm15, %v2127_v26, %v2159_v55  ;;  %v2130_v30 = vadd.f32 %v6443_v14, %v2076_v5  ;;  %v2006_v63 = vpop.permute.xlu1 %2005 }
 0x926   : > { %v2078_v56 = vpop.f32.mrf.mxu1  ;;  %v2190_v47 = vpack.c.bf16 %v2175_v49, %v2174_v20  ;;  %v2164_v61 = vmul.f32 0.01, %v2132_v58  ;;  %vm2148_vm15 = vcmp.gt.f32.partialorder %v2132_v58, 0.0 }
 0x927   : > { %v2133_v59 = vadd.f32 %v6443_v14, %v2087_v32  ;;  %v2079_v37 = vadd.f32 %v2078_v56, %v1988_v7  ;;  %v2162_v38 = vmul.f32 0.01, %v2130_v30  ;;  %vm2146_vm14 = vcmp.gt.f32.partialorder %v2130_v30, 0.0 }
 0x928   : > { %v4841_v17 = vpop.f32.mrf.mxu1  ;;  %4851 = vmatprep.mubr.msk.bf16.mxu0 %vm555_vm1, %v2190_v47  ;;  %v2180_v6 = vsel %vm2148_vm15, %v2132_v58, %v2164_v61 }
 0x929   : > { %v2165_v31 = vmul.f32 0.01, %v2133_v59  ;;  %v2131_v60 = vadd.f32 %v6443_v14, %v2079_v37  ;;  %vm2149_vm12 = vcmp.gt.f32.partialorder %v2133_v59, 0.0  ;;  %v2100_v12 = vadd.f32 %v4841_v17, %v1998_v62  ;;  %4852 = vmatmul.mubr.msk.bf16.vlgmr.msra.gmra.mxu0 %vm555_vm1, %v2191_v0 }
 0x92a   : > { %v2091_v53 = vpop.f32.mrf.mxu1  ;;  %v2178_v16 = vsel %vm2146_vm14, %v2130_v30, %v2162_v38 }
 0x92b   : > { %v2092_v24 = vadd.f32 %v2091_v53, %v1994_v33  ;;  %vm2147_vm0 = vcmp.gt.f32.partialorder %v2131_v60, 0.0  ;;  %v2163_v9 = vmul.f32 0.01, %v2131_v60  ;;  %v2181_v19 = vsel %vm2149_vm12, %v2133_v59, %v2165_v31 }
 0x92c   : > { %v4842_v7 = vpop.f32.mrf.mxu1  ;;  %v2136_v25 = vadd.f32 %v6443_v14, %v2100_v12  ;;  %v2193_v33 = vpack.c.bf16 %v2181_v19, %v2180_v6  ;;  %v7435_v6 = vsub.s32 2, %v5612_v21 }
 0x92d   : > { %v2103_v2 = vadd.f32 %v4842_v7, %v2000_v18  ;;  %v2179_v4 = vsel %vm2147_vm0, %v2131_v60, %v2163_v9  ;;  %v2134_v22 = vadd.f32 %v6443_v14, %v2092_v24 }
 0x92e   : > { %v2094_v23 = vpop.f32.mrf.mxu1  ;;  %v2192_v11 = vpack.c.bf16 %v2179_v4, %v2178_v16  ;;  %v2168_v15 = vmul.f32 0.01, %v2136_v25  ;;  %vm2152_vm0 = vcmp.gt.f32.partialorder %v2136_v25, 0.0 }
 0x92f   : > { %v2137_v13 = vadd.f32 %v6443_v14, %v2103_v2  ;;  %v2095_v36 = vadd.f32 %v2094_v23, %v1996_v27  ;;  %v2166_v5 = vmul.f32 0.01, %v2134_v22  ;;  %vm2150_vm12 = vcmp.gt.f32.partialorder %v2134_v22, 0.0 }
 0x930   : > { %v4845_v46 = vpop.f32.mrf.mxu1  ;;  %4855 = vmatprep.mubr.msk.bf16.mxu0 %vm555_vm1, %v2192_v11  ;;  %v2184_v18 = vsel %vm2152_vm0, %v2136_v25, %v2168_v15  ;;  %v5316_v11 = vld [vmem:[%s7413_s4] sm:$0xf]  ;;  %vm7458_vm0 = vcmask 786112  }
 0x931   : > { %v2169_v1 = vmul.f32 0.01, %v2137_v13  ;;  %v2135_v26 = vadd.f32 %v6443_v14, %v2095_v36  ;;  %vm2153_vm13 = vcmp.gt.f32.partialorder %v2137_v13, 0.0  ;;  %4856 = vmatmul.mubr.msk.bf16.gmra.mxu0 %vm555_vm1, %v2193_v33  ;;  %v2116_v29 = vadd.f32 %v4845_v46, %v2006_v63 }
 0x932   : > { %v2107_v51 = vpop.f32.mrf.mxu1  ;;  %v2182_v30 = vsel %vm2150_vm12, %v2134_v22, %v2166_v5  ;;  %v6503_v33 = vrot.slane %v5316_v11, %v7435_v6 }
 0x933   : > { %v2108_v55 = vadd.f32 %v2107_v51, %v2002_v43  ;;  %vm2151_vm14 = vcmp.gt.f32.partialorder %v2135_v26, 0.0  ;;  %v2167_v27 = vmul.f32 0.01, %v2135_v26  ;;  %v2185_v49 = vsel %vm2153_vm13, %v2137_v13, %v2169_v1 }
 0x934   : > { %v4846_v32 = vpop.f32.mrf.mxu1  ;;  %v2140_v39 = vadd.f32 %v6443_v14, %v2116_v29  ;;  %v2195_v17 = vpack.c.bf16 %v2185_v49, %v2184_v18 }
 0x935   : > { %v2119_v34 = vadd.f32 %v4846_v32, %v2008_v10  ;;  %v2183_v56 = vsel %vm2151_vm14, %v2135_v26, %v2167_v27  ;;  %v2138_v62 = vadd.f32 %v6443_v14, %v2108_v55 }
 0x936   : > { %v2110_v20 = vpop.f32.mrf.mxu1  ;;  %v2194_v37 = vpack.c.bf16 %v2183_v56, %v2182_v30  ;;  %v2172_v60 = vmul.f32 0.01, %v2140_v39  ;;  %vm2156_vm14 = vcmp.gt.f32.partialorder %v2140_v39, 0.0 }
 0x937   : > { %v2141_v59 = vadd.f32 %v6443_v14, %v2119_v34  ;;  %v2111_v58 = vadd.f32 %v2110_v20, %v2004_v28  ;;  %v2170_v47 = vmul.f32 0.01, %v2138_v62  ;;  %vm2154_vm15 = vcmp.gt.f32.partialorder %v2138_v62, 0.0 }
 0x938   : > { %4859 = vmatprep.mubr.msk.bf16.mxu0 %vm555_vm1, %v2194_v37  ;;  %v2188_v9 = vsel %vm2156_vm14, %v2140_v39, %v2172_v60  ;;  %vm7465_vm14 = vcmask 1048512  }
 0x939   : > { %v2173_v0 = vmul.f32 0.01, %v2141_v59  ;;  %v2139_v31 = vadd.f32 %v6443_v14, %v2111_v58  ;;  %vm2157_vm13 = vcmp.gt.f32.partialorder %v2141_v59, 0.0  ;;  %4860 = vmatmul.mubr.msk.bf16.gmra.mxu0 %vm555_vm1, %v2195_v17  ;;  %v2186_v38 = vsel %vm2154_vm15, %v2138_v62, %v2170_v47 }
 0x93a   : > { %vm7461_vm15 = vcmask 851712  }
 0x93b   : > { %vm2155_vm12 = vcmp.gt.f32.partialorder %v2139_v31, 0.0  ;;  %v2171_v53 = vmul.f32 0.01, %v2139_v31  ;;  %v2189_v12 = vsel %vm2157_vm13, %v2141_v59, %v2173_v0  ;;  %vm7463_vm13 = vcmask 917312  }
 0x93c   : > { %v2197_v7 = vpack.c.bf16 %v2189_v12, %v2188_v9 }
 0x93d   : > { %v2187_v24 = vsel %vm2155_vm12, %v2139_v31, %v2171_v53  ;;  %vm7464_vm12 = vcmask 982912  }
 0x93e   : > { %v2196_v61 = vpack.c.bf16 %v2187_v24, %v2186_v38 }
 0x940   : > { %4863 = vmatprep.mubr.msk.bf16.mxu0 %vm555_vm1, %v2196_v61 }
 0x941   : > { %4864 = vmatmul.mubr.msk.bf16.gmra.mxu0 %vm555_vm1, %v2197_v7 }
 0x9e9   : > { %v6469_v14 = vpop.f32.mrf.mxu0 }
 0x9ea   : > { %2416 = vperm.xlu1 %5041, %v6469_v14   ;;  %v2342_v63 = vmul.f32 %v6469_v14, %v6503_v33 }
 0x9eb   : > { %v6472_v43 = vpop.f32.mrf.mxu0 }
 0x9ec   : > { %2406 = vperm.xlu0 %5042, %v6472_v43   ;;  %v2340_v55 = vmul.f32 %v6503_v33, %v6472_v43  ;;  %v2362_v10 = vsel %vm555_vm1, %v2342_v63, 0.0 }
 0x9ed   : > { %v6475_v2 = vpop.f32.mrf.mxu0 }
 0x9ee   : > { %v2356_v29 = vsel %vm555_vm1, %v2340_v55, 0.0  ;;  %v2852_v56 = vpack.c.bf16 %v6475_v2, %v6469_v14  ;;  %v2343_v30 = vmul.f32 %v6475_v2, %v6503_v33 }
 0x9ef   : > { %v6477_v28 = vpop.f32.mrf.mxu0 }
 0x9f0   : > { %v2851_v62 = vpack.c.bf16 %v6477_v28, %v6472_v43  ;;  %v2341_v20 = vmul.f32 %v6503_v33, %v6477_v28  ;;  %v2365_v39 = vsel %vm555_vm1, %v2343_v30, 0.0 }
 0x9f1   : > { %v6479_v19 = vpop.f32.mrf.mxu0 }
 0x9f2   : > { %v2359_v59 = vsel %vm555_vm1, %v2341_v20, 0.0  ;;  %v2346_v18 = vmul.f32 %v6479_v19, %v6503_v33 }
 0x9f3   : > { %v6481_v4 = vpop.f32.mrf.mxu0 }
 0x9f4   : > { %v2374_v58 = vsel %vm555_vm1, %v2346_v18, 0.0  ;;  %v2344_v37 = vmul.f32 %v6503_v33, %v6481_v4 }
 0x9f5   : > { %v6483_v23 = vpop.f32.mrf.mxu0 }
 0x9f6   : > { %v2854_v34 = vpack.c.bf16 %v6483_v23, %v6479_v19  ;;  %v2347_v17 = vmul.f32 %v6483_v23, %v6503_v33  ;;  %v2368_v47 = vsel %vm555_vm1, %v2344_v37, 0.0 }
 0x9f7   : > { %v6485_v16 = vpop.f32.mrf.mxu0 }
 0x9f8   : > { %v2853_v49 = vpack.c.bf16 %v6485_v16, %v6481_v4  ;;  %v2377_v0 = vsel %vm555_vm1, %v2347_v17, 0.0  ;;  %v2345_v60 = vmul.f32 %v6503_v33, %v6485_v16 }
 0x9f9   : > { %v6487_v25 = vpop.f32.mrf.mxu0 }
 0x9fa   : > { %v2350_v31 = vmul.f32 %v6487_v25, %v6503_v33  ;;  %v2371_v12 = vsel %vm555_vm1, %v2345_v60, 0.0 }
 0x9fb   : > { %v6489_v22 = vpop.f32.mrf.mxu0 }
 0x9fc   : > { %v2386_v53 = vsel %vm555_vm1, %v2350_v31, 0.0  ;;  %v2348_v38 = vmul.f32 %v6503_v33, %v6489_v22 }
 0x9fd   : > { %v6491_v13 = vpop.f32.mrf.mxu0 }
 0x9fe   : > { %v2856_v27 = vpack.c.bf16 %v6491_v13, %v6487_v25  ;;  %v2380_v24 = vsel %vm555_vm1, %v2348_v38, 0.0  ;;  %v2351_v61 = vmul.f32 %v6491_v13, %v6503_v33 }
 0x9ff   : > { %v6494_v36 = vpop.f32.mrf.mxu0 }
 0xa00   : > { %v2855_v32 = vpack.c.bf16 %v6494_v36, %v6489_v22  ;;  %v2389_v7 = vsel %vm555_vm1, %v2351_v61, 0.0  ;;  %v2349_v11 = vmul.f32 %v6503_v33, %v6494_v36 }
 0xa01   : > { %v6496_v46 = vpop.f32.mrf.mxu0 }
 0xa02   : > { %v2354_v9 = vmul.f32 %v6496_v46, %v6503_v33 }
 0xa03   : > { %v6505_v1 = vpop.f32.mrf.mxu0 }
 0xa04   : > { %v2352_v63 = vmul.f32 %v6503_v33, %v6505_v1 }
 0xa05   : > { %v6507_v26 = vpop.f32.mrf.mxu0 }
 0xa06   : > { %v2858_v51 = vpack.c.bf16 %v6507_v26, %v6496_v46  ;;  %v2355_v55 = vmul.f32 %v6507_v26, %v6503_v33 }
 0xa07   : > { %v6513_v15 = vpop.f32.mrf.mxu0 }
 0xa08   : > { %4867 = vmatprep.subr.bf16.mxu1 %v2858_v51  ;;  %v2857_v5 = vpack.c.bf16 %v6513_v15, %v6505_v1 }
 0xa09   : > { %4868 = vmatpush3.bf16.msra.mxu1 %v2858_v51  ;;  %v2398_v51 = vsel %vm555_vm1, %v2354_v9, 0.0 }
 0xa0a   : > { %4869 = vmatprep.subr.bf16.mxu1 %v2857_v5 }
 0xa0b   : > { %2363 = vadd.xlane.f32.xlu0 %v2362_v10  ;;  %v2392_v10 = vsel %vm555_vm1, %v2352_v63, 0.0 }
 0xa0d   : > { %4870 = vmatpush3.bf16.msra.mxu1 %v2857_v5  ;;  %v2383_v5 = vsel %vm555_vm1, %v2349_v11, 0.0 }
 0xa0e   : > { %2357 = vadd.xlane.f32.xlu1 %v2356_v29  ;;  %4871 = vmatprep.subr.bf16.mxu1 %v2856_v27  ;;  %v2353_v29 = vmul.f32 %v6503_v33, %v6513_v15 }
 0xa11   : > { %4872 = vmatpush3.bf16.msra.mxu1 %v2856_v27  ;;  %v2401_v27 = vsel %vm555_vm1, %v2355_v55, 0.0 }
 0xa12   : > { %4873 = vmatprep.subr.bf16.mxu1 %v2855_v32 }
 0xa15   : > { %4874 = vmatpush3.bf16.msra.mxu1 %v2855_v32  ;;  %v2395_v32 = vsel %vm555_vm1, %v2353_v29, 0.0 }
 0xa16   : > { %4875 = vmatprep.subr.bf16.mxu1 %v2854_v34 }
 0xa19   : > { %4876 = vmatpush3.bf16.msra.mxu1 %v2854_v34 }
 0xa1a   : > { %4877 = vmatprep.subr.bf16.mxu1 %v2853_v49 }
 0xa1d   : > { %4878 = vmatpush3.bf16.msra.mxu1 %v2853_v49 }
 0xa1e   : > { %4879 = vmatprep.subr.bf16.mxu1 %v2852_v56 }
 0xa1f   : > { %2411 = vperm.xlu1 %5041, %v6477_v28  }
 0xa21   : > { %2421 = vperm.xlu0 %5042, %v6475_v2   ;;  %4880 = vmatpush3.bf16.msra.mxu1 %v2852_v56 }
 0xa22   : > { %4881 = vmatprep.subr.bf16.mxu1 %v2851_v62 }
 0xa25   : > { %4882 = vmatpush3.bf16.msra.mxu1 %v2851_v62 }
 0xa40   : > { %2360 = vadd.xlane.f32.xlu0 %v2359_v59 }
 0xa43   : > { %2366 = vadd.xlane.f32.xlu1 %v2365_v39 }
 0xa44   : > { %2375 = vadd.xlane.f32.xlu0 %v2374_v58 }
 0xa54   : > { %2436 = vperm.xlu1 %5041, %v6479_v19  }
 0xa58   : > { %2426 = vperm.xlu1 %5041, %v6481_v4  }
 0xa5a   : > { %2441 = vperm.xlu0 %5042, %v6483_v23  }
 0xa65   : > { %v6589_v34 = vpop.permute.xlu1 %2416 }
 0xa67   : > { %v6591_v56 = vpop.permute.xlu0 %2406 }
 0xa79   : > { %2369 = vadd.xlane.f32.xlu0 %v2368_v47 }
 0xa7c   : > { %2378 = vadd.xlane.f32.xlu1 %v2377_v0 }
 0xa8d   : > { %2456 = vperm.xlu1 %5041, %v6487_v25  }
 0xa8f   : > { %2431 = vperm.xlu0 %5042, %v6485_v16  }
 0xa94   : > { %v2364_v33 = vpop.xlane.xlu0 %2363 }
 0xa97   : > { %v2358_v49 = vpop.xlane.xlu1 %2357 }
 0xa9b   : > { %v2412_v62 = vpop.permute.xlu1 %2411 }
 0xa9c   : > { %v6593_v20 = vpop.permute.xlu0 %2421 }
 0xaae   : > { %2387 = vadd.xlane.f32.xlu0 %v2386_v53  ;;  %v2503_v53 = vrot.slane %v2358_v49, %v5739_v45 }
 0xab1   : > { %2372 = vadd.xlane.f32.xlu1 %v2371_v12 }
 0xab2   : > { %2381 = vadd.xlane.f32.xlu0 %v2380_v24  ;;  %v2512_v24 = vrot.slane %v2364_v33, %v5748_v50 }
 0xac2   : > { %2446 = vperm.xlu1 %5041, %v6489_v22  }
 0xac8   : > { %2451 = vperm.xlu0 %5042, %v6494_v36  }
 0xac9   : > { %v2361_v59 = vpop.xlane.xlu0 %2360 }
 0xaca   : > { %v2507_v0 = vrot.slane %v2361_v59, %v5733_v42 }
 0xacc   : > { %v2367_v30 = vpop.xlane.xlu1 %2366  ;;  %v2508_v38 = vsel %vm711_vm2, %v2507_v0, %v2503_v53 }
 0xacd   : > { %v2376_v39 = vpop.xlane.xlu0 %2375  ;;  %v2517_v9 = vrot.slane %v2367_v30, %v5744_v48 }
 0xace   : > { %v2532_v29 = vrot.slane %v2376_v39, %v5769_v3 }
 0xad0   : > { %v6595_v18 = vpop.permute.xlu1 %2436 }
 0xad4   : > { %v2427_v58 = vpop.permute.xlu1 %2426 }
 0xad5   : > { %v6597_v37 = vpop.permute.xlu0 %2441 }
 0xae6   : > { %2390 = vadd.xlane.f32.xlu1 %v2389_v7  ;;  %v2513_v7 = vsel %vm718_vm3, %v2512_v24, %v2508_v38 }
 0xae7   : > { %2399 = vadd.xlane.f32.xlu0 %v2398_v51  ;;  %v2518_v63 = vsel %vm725_vm4, %v2517_v9, %v2513_v7 }
 0xaea   : > { %2384 = vadd.xlane.f32.xlu1 %v2383_v5 }
 0xaeb   : > { %2393 = vadd.xlane.f32.xlu0 %v2392_v10 }
 0xaee   : > { %2402 = vadd.xlane.f32.xlu1 %v2401_v27 }
 0xaf2   : > { %2396 = vadd.xlane.f32.xlu1 %v2395_v32 }
 0xb01   : > { %2461 = vperm.xlu0 %5042, %v6491_v13  }
 0xb02   : > { %v2370_v47 = vpop.xlane.xlu0 %2369 }
 0xb03   : > { %2466 = vperm.xlu1 %5041, %v6505_v1   ;;  %v2522_v11 = vrot.slane %v2370_v47, %v5754_v54 }
 0xb05   : > { %2471 = vperm.xlu0 %5042, %v6513_v15   ;;  %v2379_v17 = vpop.xlane.xlu1 %2378  ;;  %v2523_v55 = vsel %vm732_vm5, %v2522_v11, %v2518_v63 }
 0xb06   : > { %v2537_v30 = vrot.slane %v2379_v17, %v5776_v8 }
 0xb07   : > { %2476 = vperm.xlu1 %5041, %v6496_v46  }
 0xb09   : > { %2481 = vperm.xlu0 %5042, %v6507_v26   ;;  %v6602_v60 = vpop.permute.xlu1 %2456 }
 0xb0a   : > { %v6600_v31 = vpop.permute.xlu0 %2431 }
 0xb37   : > { %v2388_v12 = vpop.xlane.xlu0 %2387 }
 0xb38   : > { %v2552_v24 = vrot.slane %v2388_v12, %v5794_v40  ;;  %v7460_v12 = vld [vmem:[#allocation11_spill] sm:$0xff] }
 0xb3a   : > { %v2373_v61 = vpop.xlane.xlu1 %2372 }
 0xb3b   : > { %v2527_v51 = vrot.slane %v2373_v61, %v5759_v57  ;;  %v2382_v5 = vpop.xlane.xlu0 %2381 }
 0xb3c   : > { %v2542_v0 = vrot.slane %v2382_v5, %v5785_v44 }
 0xb3d   : > { %v2528_v27 = vsel %vm739_vm6, %v2527_v51, %v2523_v55  ;;  %v7459_v55 = vld [vmem:[#allocation10_spill] sm:$0xff] }
 0xb3e   : > { %v6613_v10 = vpop.permute.xlu1 %2446  ;;  %v2533_v49 = vsel %vm746_vm7, %v2532_v29, %v2528_v27  ;;  %v4616_v29 = vld [vmem:[%s5568_s23 + $0x80] sm:$0xff]  }
 0xb3f   : > { %v2538_v59 = vsel %vm753_vm8, %v2537_v30, %v2533_v49 }
 0xb40   : > { %v2543_v39 = vsel %vm760_vm9, %v2542_v0, %v2538_v59  ;;  %v4617_v59 = vld [vmem:[%s5568_s23 + $0x88] sm:$0xff]  }
 0xb41   : > { %v7462_v0 = vld [vmem:[#allocation12_spill] sm:$0xff] }
 0xb43   : > { %v6617_v32 = vpop.permute.xlu0 %2451 }
 0xb6f   : > { %v2391_v33 = vpop.xlane.xlu1 %2390 }
 0xb70   : > { %v2400_v47 = vpop.xlane.xlu0 %2399  ;;  %v2557_v7 = vrot.slane %v2391_v33, %v5800_v41 }
 0xb71   : > { %v2572_v49 = vrot.slane %v2400_v47, %v7460_v12 }
 0xb73   : > { %v2385_v53 = vpop.xlane.xlu1 %2384 }
 0xb74   : > { %v2547_v38 = vrot.slane %v2385_v53, %v5791_v52  ;;  %v2394_v11 = vpop.xlane.xlu0 %2393 }
 0xb75   : > { %v2562_v63 = vrot.slane %v2394_v11, %v7449_v35  ;;  %v4544_v11 = vunpack.c.h.bf16 %v4617_v59 }
 0xb76   : > { %v2548_v61 = vsel %vm767_vm10, %v2547_v38, %v2543_v39  ;;  %v4540_v39 = vunpack.c.h.bf16 %v4616_v29 }
 0xb77   : > { %v2553_v9 = vsel %vm774_vm11, %v2552_v24, %v2548_v61  ;;  %v2403_v17 = vpop.xlane.xlu1 %2402  ;;  %v4618_v24 = vld [vmem:[%s5568_s23 + $0x90] sm:$0xff]  }
 0xb78   : > { %v2558_v51 = vsel %vm7458_vm0, %v2557_v7, %v2553_v9  ;;  %v2577_v53 = vrot.slane %v2403_v17, %v7462_v0  ;;  %v4539_v9 = vunpack.c.l.bf16 %v4616_v29  ;;  %v4543_v7 = vunpack.c.l.bf16 %v4617_v59  ;;  %v4619_v59 = vld [vmem:[%s5568_s23 + $0x98] sm:$0xff]  }
 0xb79   : > { %v2563_v30 = vsel %vm7461_vm15, %v2562_v63, %v2558_v51  ;;  %v4551_v0 = vunpack.c.l.bf16 %v4619_v59 }
 0xb7b   : > { %v2397_v5 = vpop.xlane.xlu1 %2396 }
 0xb7c   : > { %v2567_v27 = vrot.slane %v2397_v5, %v7459_v55  ;;  %v4547_v5 = vunpack.c.l.bf16 %v4618_v24 }
 0xb7e   : > { %v2568_v38 = vsel %vm7463_vm13, %v2567_v27, %v2563_v30 }
 0xb7f   : > { %v2573_v33 = vsel %vm7464_vm12, %v2572_v49, %v2568_v38 }
 0xb80   : > { %v6641_v61 = vsel %vm7465_vm14, %v2577_v53, %v2573_v33 }
 0xb81   : > { %v2587_v47 = vadd.f32 %v6641_v61, %v2412_v62  ;;  %v2586_v51 = vadd.f32 %v6641_v61, %v6591_v56  ;;  %v2588_v17 = vadd.f32 %v6641_v61, %v6589_v34  ;;  %v2589_v63 = vadd.f32 %v6641_v61, %v6593_v20  ;;  %v4620_v20 = vld [vmem:[%s5568_s23 + $0xa0] sm:$0xff]  }
 0xb82   : > { %v2590_v27 = vadd.f32 %v6641_v61, %v2427_v58  ;;  %v4548_v34 = vunpack.c.h.bf16 %v4618_v24  ;;  %v2592_v24 = vadd.f32 %v6641_v61, %v6595_v18 }
 0xb83   : > { %v2636_v49 = vadd.f32 %v4540_v39, %v2587_v47  ;;  %v2635_v30 = vadd.f32 %v4539_v9, %v2586_v51  ;;  %v2637_v29 = vadd.f32 %v4543_v7, %v2588_v17  ;;  %v2638_v53 = vadd.f32 %v4544_v11, %v2589_v63  ;;  %v2462_v7 = vpop.permute.xlu0 %2461  ;;  %v4621_v63 = vld [vmem:[%s5568_s23 + $0xa8] sm:$0xff]  }
 0xb84   : > { %v2639_v33 = vadd.f32 %v4547_v5, %v2590_v27  ;;  %v4552_v9 = vunpack.c.h.bf16 %v4619_v59  ;;  %v2591_v11 = vadd.f32 %v6641_v61, %v6600_v31  ;;  %v2593_v47 = vadd.f32 %v6641_v61, %v6597_v37 }
 0xb85   : > { %vm2652_vm0 = vcmp.gt.f32.partialorder %v2636_v49, 0.0  ;;  %v2668_v62 = vmul.f32 0.2, %v2636_v49  ;;  %vm2651_vm15 = vcmp.gt.f32.partialorder %v2635_v30, 0.0  ;;  %v2667_v38 = vmul.f32 0.2, %v2635_v30 }
 0xb86   : > { %v2669_v6 = vmul.f32 0.2, %v2637_v29  ;;  %vm2653_vm13 = vcmp.gt.f32.partialorder %v2637_v29, 0.0  ;;  %v2670_v39 = vmul.f32 0.2, %v2638_v53  ;;  %vm2654_vm12 = vcmp.gt.f32.partialorder %v2638_v53, 0.0 }
 0xb87   : > { %v6652_v56 = vsel %vm2652_vm0, %v2636_v49, %v2668_v62  ;;  %v6656_v58 = vsel %vm2651_vm15, %v2635_v30, %v2667_v38  ;;  %v2671_v5 = vmul.f32 0.2, %v2639_v33  ;;  %v4555_v51 = vunpack.c.l.bf16 %v4620_v20  ;;  %v2467_v38 = vpop.permute.xlu1 %2466 }
 0xb88   : > { %2701 = vmax.xlane.f32.xlu0 %v6652_v56  ;;  %2699 = vmax.xlane.f32.xlu1 %v6656_v58  ;;  %v4556_v17 = vunpack.c.h.bf16 %v4620_v20  ;;  %v6666_v27 = vsel %vm2653_vm13, %v2637_v29, %v2669_v6  ;;  %v2640_v49 = vadd.f32 %v4548_v34, %v2591_v11  ;;  %v2641_v30 = vadd.f32 %v4551_v0, %v2592_v24  ;;  %v4622_v34 = vld [vmem:[%s5568_s23 + $0xb0] sm:$0xff]  }
 0xb89   : > { %v2594_v59 = vadd.f32 %v6641_v61, %v6613_v10  ;;  %v6671_v31 = vsel %vm2654_vm12, %v2638_v53, %v2670_v39  ;;  %vm2655_vm14 = vcmp.gt.f32.partialorder %v2639_v33, 0.0  ;;  %v2642_v18 = vadd.f32 %v4552_v9, %v2593_v47  ;;  %v2472_v10 = vpop.permute.xlu0 %2471 }
 0xb8a   : > { %v2595_v37 = vadd.f32 %v6641_v61, %v6617_v32  ;;  %vm2656_vm0 = vcmp.gt.f32.partialorder %v2640_v49, 0.0  ;;  %v2672_v6 = vmul.f32 0.2, %v2640_v49  ;;  %v4559_v29 = vunpack.c.l.bf16 %v4621_v63 }
 0xb8b   : > { %v4560_v62 = vunpack.c.h.bf16 %v4621_v63  ;;  %v2597_v0 = vadd.f32 %v6641_v61, %v2462_v7  ;;  %v6678_v20 = vsel %vm2655_vm14, %v2639_v33, %v2671_v5  ;;  %v2673_v53 = vmul.f32 0.2, %v2641_v30 }
 0xb8c   : > { %2703 = vmax.xlane.f32.xlu0 %v6666_v27  ;;  %2705 = vmax.xlane.f32.xlu1 %v6671_v31  ;;  %v2643_v39 = vadd.f32 %v4555_v51, %v2594_v59  ;;  %v2596_v9 = vadd.f32 %v6641_v61, %v6602_v60  ;;  %v6683_v32 = vsel %vm2656_vm0, %v2640_v49, %v2672_v6  ;;  %vm2657_vm15 = vcmp.gt.f32.partialorder %v2641_v30, 0.0  ;;  %v4623_v51 = vld [vmem:[%s5568_s23 + $0xb8] sm:$0xff]   ;;  %v2477_v49 = vpop.permute.xlu1 %2476 }
 0xb8d   : > { %v2674_v11 = vmul.f32 0.2, %v2642_v18  ;;  %v2644_v24 = vadd.f32 %v4556_v17, %v2595_v37  ;;  %vm2658_vm13 = vcmp.gt.f32.partialorder %v2642_v18, 0.0  ;;  %v4563_v7 = vunpack.c.l.bf16 %v4622_v34  ;;  %v2482_v37 = vpop.permute.xlu0 %2481 }
 0xb8e   : > { %v2598_v47 = vadd.f32 %v6641_v61, %v2467_v38  ;;  %v4564_v33 = vunpack.c.h.bf16 %v4622_v34  ;;  %v2599_v5 = vadd.f32 %v6641_v61, %v2472_v10  ;;  %v6689_v63 = vsel %vm2657_vm15, %v2641_v30, %v2673_v53 }
 0xb8f   : > { %v2675_v60 = vmul.f32 0.2, %v2643_v39  ;;  %v2645_v59 = vadd.f32 %v4559_v29, %v2596_v9  ;;  %v2646_v12 = vadd.f32 %v4560_v62, %v2597_v0  ;;  %v6692_v6 = vsel %vm2658_vm13, %v2642_v18, %v2674_v11 }
 0xb90   : > { %2707 = vmax.xlane.f32.xlu0 %v6678_v20  ;;  %2709 = vmax.xlane.f32.xlu1 %v6683_v32  ;;  %vm2659_vm12 = vcmp.gt.f32.partialorder %v2643_v39, 0.0  ;;  %v2676_v17 = vmul.f32 0.2, %v2644_v24  ;;  %vm2660_vm14 = vcmp.gt.f32.partialorder %v2644_v24, 0.0  ;;  %v2647_v38 = vadd.f32 %v4563_v7, %v2598_v47 }
 0xb91   : > { %v4567_v34 = vunpack.c.l.bf16 %v4623_v51  ;;  %v4568_v10 = vunpack.c.h.bf16 %v4623_v51  ;;  %v2648_v55 = vadd.f32 %v4564_v33, %v2599_v5  ;;  %v2600_v30 = vadd.f32 %v6641_v61, %v2477_v49 }
 0xb92   : > { %v6696_v53 = vsel %vm2659_vm12, %v2643_v39, %v2675_v60  ;;  %v2677_v29 = vmul.f32 0.2, %v2645_v59  ;;  %v2601_v62 = vadd.f32 %v6641_v61, %v2482_v37  ;;  %v6700_v18 = vsel %vm2660_vm14, %v2644_v24, %v2676_v17 }
 0xb93   : > { %vm2661_vm0 = vcmp.gt.f32.partialorder %v2645_v59, 0.0  ;;  %v2678_v0 = vmul.f32 0.2, %v2646_v12  ;;  %vm2662_vm15 = vcmp.gt.f32.partialorder %v2646_v12, 0.0  ;;  %v2649_v9 = vadd.f32 %v4567_v34, %v2600_v30 }
 0xb94   : > { %2711 = vmax.xlane.f32.xlu0 %v6689_v63  ;;  %2713 = vmax.xlane.f32.xlu1 %v6692_v6  ;;  %v6703_v11 = vsel %vm2661_vm0, %v2645_v59, %v2677_v29  ;;  %v2679_v7 = vmul.f32 0.2, %v2647_v38  ;;  %v2650_v47 = vadd.f32 %v4568_v10, %v2601_v62  ;;  %vm2663_vm13 = vcmp.gt.f32.partialorder %v2647_v38, 0.0 }
 0xb95   : > { %v6706_v39 = vsel %vm2662_vm15, %v2646_v12, %v2678_v0  ;;  %v2680_v61 = vmul.f32 0.2, %v2648_v55  ;;  %vm2664_vm12 = vcmp.gt.f32.partialorder %v2648_v55, 0.0  ;;  %v2681_v33 = vmul.f32 0.2, %v2649_v9 }
 0xb96   : > { %v6709_v24 = vsel %vm2663_vm13, %v2647_v38, %v2679_v7  ;;  %vm2665_vm14 = vcmp.gt.f32.partialorder %v2649_v9, 0.0  ;;  %v2682_v51 = vmul.f32 0.2, %v2650_v47  ;;  %vm2666_vm0 = vcmp.gt.f32.partialorder %v2650_v47, 0.0 }
 0xb97   : > { %v6712_v5 = vsel %vm2664_vm12, %v2648_v55, %v2680_v61  ;;  %v6715_v60 = vsel %vm2665_vm14, %v2649_v9, %v2681_v33 }
 0xb98   : > { %2715 = vmax.xlane.f32.xlu0 %v6696_v53  ;;  %2717 = vmax.xlane.f32.xlu1 %v6700_v18  ;;  %v6718_v12 = vsel %vm2666_vm0, %v2650_v47, %v2682_v51 }
 0xb9c   : > { %2719 = vmax.xlane.f32.xlu0 %v6703_v11  ;;  %2721 = vmax.xlane.f32.xlu1 %v6706_v39 }
 0xba0   : > { %2723 = vmax.xlane.f32.xlu0 %v6709_v24  ;;  %2725 = vmax.xlane.f32.xlu1 %v6712_v5 }
 0xba4   : > { %2727 = vmax.xlane.f32.xlu0 %v6715_v60  ;;  %2729 = vmax.xlane.f32.xlu1 %v6718_v12 }
 0xc11   : > { %v2702_v59 = vpop.xlane.xlu0 %2701  ;;  %v2700_v49 = vpop.xlane.xlu1 %2699 }
 0xc12   : > { %v2732_v17 = vsub.f32 %v6652_v56, %v2702_v59  ;;  %v2731_v55 = vsub.f32 %v6656_v58, %v2700_v49 }
 0xc14   : > { %v2749_v37 = vmul.f32 1.442695, %v2732_v17  ;;  %v2747_v38 = vmul.f32 1.442695, %v2731_v55 }
 0xc15   : > { %v2704_v34 = vpop.xlane.xlu0 %2703  ;;  %v2706_v10 = vpop.xlane.xlu1 %2705 }
 0xc16   : > { %5186 = vpow2.f32 %v2749_v37  ;;  %v2733_v30 = vsub.f32 %v6666_v27, %v2704_v34  ;;  %v2734_v29 = vsub.f32 %v6671_v31, %v2706_v10 }
 0xc17   : > { %5188 = vpow2.f32 %v2747_v38 }
 0xc18   : > { %v2751_v62 = vmul.f32 1.442695, %v2733_v30  ;;  %v2753_v0 = vmul.f32 1.442695, %v2734_v29 }
 0xc19   : > { %v2708_v9 = vpop.xlane.xlu0 %2707  ;;  %v2710_v7 = vpop.xlane.xlu1 %2709 }
 0xc1a   : > { %5190 = vpow2.f32 %v2751_v62  ;;  %v2735_v47 = vsub.f32 %v6678_v20, %v2708_v9  ;;  %v2736_v56 = vsub.f32 %v6683_v32, %v2710_v7 }
 0xc1b   : > { %5192 = vpow2.f32 %v2753_v0 }
 0xc1c   : > { %v2755_v58 = vmul.f32 1.442695, %v2735_v47  ;;  %v2757_v61 = vmul.f32 1.442695, %v2736_v56 }
 0xc1d   : > { %v2712_v33 = vpop.xlane.xlu0 %2711  ;;  %v2714_v51 = vpop.xlane.xlu1 %2713 }
 0xc1e   : > { %5194 = vpow2.f32 %v2755_v58  ;;  %v2737_v27 = vsub.f32 %v6689_v63, %v2712_v33  ;;  %v2738_v31 = vsub.f32 %v6692_v6, %v2714_v51 }
 0xc1f   : > { %5196 = vpow2.f32 %v2757_v61 }
 0xc20   : > { %v2759_v59 = vmul.f32 1.442695, %v2737_v27  ;;  %v2761_v49 = vmul.f32 1.442695, %v2738_v31 }
 0xc21   : > { %v2716_v17 = vpop.xlane.xlu0 %2715  ;;  %v2718_v55 = vpop.xlane.xlu1 %2717 }
 0xc22   : > { %5198 = vpow2.f32 %v2759_v59  ;;  %v2739_v20 = vsub.f32 %v6696_v53, %v2716_v17  ;;  %v2740_v32 = vsub.f32 %v6700_v18, %v2718_v55 }
 0xc23   : > { %v6730_v37 = vpop.eup %5186  ;;  %5200 = vpow2.f32 %v2761_v49 }
 0xc24   : > { %v6733_v38 = vpop.eup %5188  ;;  %v2763_v34 = vmul.f32 1.442695, %v2739_v20  ;;  %2781 = vadd.xlane.f32.xlu1 %v6730_v37  ;;  %v2765_v63 = vmul.f32 1.442695, %v2740_v32 }
 0xc25   : > { %2779 = vadd.xlane.f32.xlu0 %v6733_v38  ;;  %v2720_v6 = vpop.xlane.xlu0 %2719  ;;  %v2722_v10 = vpop.xlane.xlu1 %2721 }
 0xc26   : > { %5202 = vpow2.f32 %v2763_v34  ;;  %v2741_v30 = vsub.f32 %v6703_v11, %v2720_v6  ;;  %v2742_v53 = vsub.f32 %v6706_v39, %v2722_v10 }
 0xc27   : > { %v6738_v29 = vpop.eup %5190  ;;  %5204 = vpow2.f32 %v2765_v63 }
 0xc28   : > { %v6741_v62 = vpop.eup %5192  ;;  %v2767_v18 = vmul.f32 1.442695, %v2741_v30  ;;  %v2769_v0 = vmul.f32 1.442695, %v2742_v53 }
 0xc29   : > { %2785 = vadd.xlane.f32.xlu1 %v6741_v62  ;;  %2783 = vadd.xlane.f32.xlu0 %v6738_v29  ;;  %v2724_v9 = vpop.xlane.xlu0 %2723  ;;  %v2726_v7 = vpop.xlane.xlu1 %2725 }
 0xc2a   : > { %5206 = vpow2.f32 %v2767_v18  ;;  %v2743_v47 = vsub.f32 %v6709_v24, %v2724_v9  ;;  %v2744_v11 = vsub.f32 %v6712_v5, %v2726_v7 }
 0xc2b   : > { %v6746_v56 = vpop.eup %5194  ;;  %5208 = vpow2.f32 %v2769_v0 }
 0xc2c   : > { %v6749_v58 = vpop.eup %5196  ;;  %v2771_v39 = vmul.f32 1.442695, %v2743_v47  ;;  %v2773_v61 = vmul.f32 1.442695, %v2744_v11 }
 0xc2d   : > { %2789 = vadd.xlane.f32.xlu1 %v6749_v58  ;;  %2787 = vadd.xlane.f32.xlu0 %v6746_v56  ;;  %v2728_v33 = vpop.xlane.xlu0 %2727  ;;  %v2730_v51 = vpop.xlane.xlu1 %2729 }
 0xc2e   : > { %5210 = vpow2.f32 %v2771_v39  ;;  %v2745_v27 = vsub.f32 %v6715_v60, %v2728_v33  ;;  %v2746_v24 = vsub.f32 %v6718_v12, %v2730_v51 }
 0xc2f   : > { %v6754_v31 = vpop.eup %5198  ;;  %5212 = vpow2.f32 %v2773_v61 }
 0xc30   : > { %v6757_v59 = vpop.eup %5200  ;;  %v2775_v5 = vmul.f32 1.442695, %v2745_v27  ;;  %v2777_v49 = vmul.f32 1.442695, %v2746_v24 }
 0xc31   : > { %2793 = vadd.xlane.f32.xlu1 %v6757_v59  ;;  %2791 = vadd.xlane.f32.xlu0 %v6754_v31 }
 0xc32   : > { %5214 = vpow2.f32 %v2775_v5 }
 0xc33   : > { %v6761_v17 = vpop.eup %5202  ;;  %5216 = vpow2.f32 %v2777_v49 }
 0xc34   : > { %v6763_v55 = vpop.eup %5204 }
 0xc35   : > { %2797 = vadd.xlane.f32.xlu1 %v6763_v55  ;;  %2795 = vadd.xlane.f32.xlu0 %v6761_v17 }
 0xc37   : > { %v6767_v60 = vpop.eup %5206 }
 0xc38   : > { %v6769_v12 = vpop.eup %5208 }
 0xc39   : > { %2801 = vadd.xlane.f32.xlu1 %v6769_v12  ;;  %2799 = vadd.xlane.f32.xlu0 %v6767_v60 }
 0xc3b   : > { %v6773_v20 = vpop.eup %5210 }
 0xc3c   : > { %v6775_v32 = vpop.eup %5212 }
 0xc3d   : > { %2805 = vadd.xlane.f32.xlu1 %v6775_v32  ;;  %2803 = vadd.xlane.f32.xlu0 %v6773_v20 }
 0xc3f   : > { %v6779_v34 = vpop.eup %5214 }
 0xc40   : > { %v6781_v63 = vpop.eup %5216 }
 0xc41   : > { %2809 = vadd.xlane.f32.xlu1 %v6781_v63  ;;  %2807 = vadd.xlane.f32.xlu0 %v6779_v34 }
 0xc52   : > { %2861 = vrot.lane.b32.xlu1 %v6477_v28, %s5418_s22 }
 0xc56   : > { %2863 = vrot.lane.b32.xlu1 %v6469_v14, %s5418_s22  ;;  %v5056_v14 = vld [vmem:[%s7412_s3 + $0x28] sm:$0xff]  }
 0xc57   : > { %2859 = vrot.lane.b32.xlu0 %v6472_v43, %s5418_s22  ;;  %4899 = vmatprep.subr.bf16.mxu0 %v5056_v14 }
 0xc58   : > { %4900 = vmatpush3.bf16.msra.mxu0 %v5056_v14 }
 0xc5a   : > { %2867 = vrot.lane.b32.xlu1 %v6481_v4, %s5418_s22 }
 0xc5b   : > { %2865 = vrot.lane.b32.xlu0 %v6475_v2, %s5418_s22 }
 0xc5e   : > { %2871 = vrot.lane.b32.xlu1 %v6479_v19, %s5418_s22 }
 0xc5f   : > { %2869 = vrot.lane.b32.xlu0 %v6485_v16, %s5418_s22 }
 0xc62   : > { %2875 = vrot.lane.b32.xlu1 %v6489_v22, %s5418_s22 }
 0xc63   : > { %2873 = vrot.lane.b32.xlu0 %v6483_v23, %s5418_s22 }
 0xc66   : > { %2879 = vrot.lane.b32.xlu1 %v6487_v25, %s5418_s22 }
 0xc67   : > { %2877 = vrot.lane.b32.xlu0 %v6494_v36, %s5418_s22 }
 0xc6a   : > { %2883 = vrot.lane.b32.xlu1 %v6505_v1, %s5418_s22 }
 0xc6b   : > { %2881 = vrot.lane.b32.xlu0 %v6491_v13, %s5418_s22 }
 0xc6e   : > { %2887 = vrot.lane.b32.xlu1 %v6496_v46, %s5418_s22 }
 0xc6f   : > { %2885 = vrot.lane.b32.xlu0 %v6513_v15, %s5418_s22 }
 0xc73   : > { %2889 = vrot.lane.b32.xlu0 %v6507_v26, %s5418_s22 }
 0xcad   : > { %v2782_v43 = vpop.xlane.xlu1 %2781 }
 0xcae   : > { %5218 = vrcp.f32 %v2782_v43  ;;  %v2780_v2 = vpop.xlane.xlu0 %2779 }
 0xcaf   : > { %5220 = vrcp.f32 %v2780_v2 }
 0xcb2   : > { %v2786_v28 = vpop.xlane.xlu1 %2785  ;;  %v2784_v19 = vpop.xlane.xlu0 %2783 }
 0xcb3   : > { %5222 = vrcp.f32 %v2786_v28 }
 0xcb4   : > { %5224 = vrcp.f32 %v2784_v19 }
 0xcb6   : > { %v2790_v4 = vpop.xlane.xlu1 %2789  ;;  %v2788_v23 = vpop.xlane.xlu0 %2787 }
 0xcb7   : > { %5226 = vrcp.f32 %v2790_v4 }
 0xcb8   : > { %5228 = vrcp.f32 %v2788_v23 }
 0xcba   : > { %v2794_v16 = vpop.xlane.xlu1 %2793  ;;  %v2792_v25 = vpop.xlane.xlu0 %2791 }
 0xcbb   : > { %v5219_v22 = vpop.eup %5218  ;;  %5230 = vrcp.f32 %v2794_v16 }
 0xcbc   : > { %v5221_v13 = vpop.eup %5220  ;;  %5232 = vrcp.f32 %v2792_v25  ;;  %v2828_v36 = vmul.f32 %v5219_v22, %v6730_v37 }
 0xcbd   : > { %v2827_v46 = vmul.f32 %v5221_v13, %v6733_v38 }
 0xcbe   : > { %v2798_v1 = vpop.xlane.xlu1 %2797  ;;  %v2796_v26 = vpop.xlane.xlu0 %2795 }
 0xcbf   : > { %5234 = vrcp.f32 %v2798_v1  ;;  %v2843_v15 = vpack.c.bf16 %v2828_v36, %v2827_v46 }
 0xcc0   : > { %v5223_v6 = vpop.eup %5222  ;;  %5236 = vrcp.f32 %v2796_v26 }
 0xcc1   : > { %v5225_v10 = vpop.eup %5224  ;;  %4883 = vmatprep.mubr.bf16.mxu1 %v2843_v15  ;;  %v2830_v30 = vmul.f32 %v5223_v6, %v6741_v62 }
 0xcc2   : > { %v2802_v53 = vpop.xlane.xlu1 %2801  ;;  %v2800_v18 = vpop.xlane.xlu0 %2799  ;;  %v2829_v0 = vmul.f32 %v5225_v10, %v6738_v29 }
 0xcc3   : > { %5238 = vrcp.f32 %v2802_v53  ;;  %v7466_v53 = vsub.s32 2, %v5612_v21 }
 0xcc4   : > { %v5227_v9 = vpop.eup %5226  ;;  %5240 = vrcp.f32 %v2800_v18  ;;  %v2844_v37 = vpack.c.bf16 %v2830_v30, %v2829_v0 }
 0xcc5   : > { %v5229_v7 = vpop.eup %5228  ;;  %v2832_v38 = vmul.f32 %v5227_v9, %v6749_v58 }
 0xcc6   : > { %4884 = vmatmul.mubr.bf16.vlgmr.msra.gmra.mxu1 %v2844_v37  ;;  %v2806_v47 = vpop.xlane.xlu1 %2805  ;;  %v2804_v11 = vpop.xlane.xlu0 %2803  ;;  %v2831_v39 = vmul.f32 %v5229_v7, %v6746_v56 }
 0xcc7   : > { %5242 = vrcp.f32 %v2806_v47 }
 0xcc8   : > { %v5231_v61 = vpop.eup %5230  ;;  %5244 = vrcp.f32 %v2804_v11  ;;  %v2845_v62 = vpack.c.bf16 %v2832_v38, %v2831_v39 }
 0xcc9   : > { %v5233_v33 = vpop.eup %5232  ;;  %v2834_v51 = vmul.f32 %v5231_v61, %v6757_v59 }
 0xcca   : > { %4887 = vmatprep.mubr.bf16.mxu1 %v2845_v62  ;;  %v2810_v29 = vpop.xlane.xlu1 %2809  ;;  %v2808_v27 = vpop.xlane.xlu0 %2807  ;;  %v2833_v24 = vmul.f32 %v5233_v33, %v6754_v31 }
 0xccb   : > { %5246 = vrcp.f32 %v2810_v29 }
 0xccc   : > { %v5235_v5 = vpop.eup %5234  ;;  %5248 = vrcp.f32 %v2808_v27  ;;  %v2846_v58 = vpack.c.bf16 %v2834_v51, %v2833_v24 }
 0xccd   : > { %v5237_v49 = vpop.eup %5236  ;;  %v2836_v14 = vmul.f32 %v5235_v5, %v6763_v55 }
 0xcce   : > { %4888 = vmatmul.mubr.bf16.gmra.mxu1 %v2846_v58  ;;  %v2835_v56 = vmul.f32 %v5237_v49, %v6761_v17  ;;  %v2860_v46 = vpop.permute.xlu0 %2859 }
 0xcd0   : > { %v5239_v43 = vpop.eup %5238  ;;  %v2847_v2 = vpack.c.bf16 %v2836_v14, %v2835_v56 }
 0xcd1   : > { %v5241_v28 = vpop.eup %5240  ;;  %v2838_v59 = vmul.f32 %v5239_v43, %v6769_v12 }
 0xcd2   : > { %4891 = vmatprep.mubr.bf16.mxu1 %v2847_v2  ;;  %v2837_v19 = vmul.f32 %v5241_v28, %v6767_v60  ;;  %v5057_v60 = vld [vmem:[%s7412_s3 + $0x20] sm:$0xff]  }
 0xcd3   : > { %4901 = vmatprep.subr.bf16.mxu0 %v5057_v60 }
 0xcd4   : > { %v5243_v4 = vpop.eup %5242  ;;  %v2848_v31 = vpack.c.bf16 %v2838_v59, %v2837_v19  ;;  %4902 = vmatpush3.bf16.msra.mxu0 %v5057_v60 }
 0xcd5   : > { %v5245_v23 = vpop.eup %5244  ;;  %v2840_v16 = vmul.f32 %v5243_v4, %v6775_v32  ;;  %v2862_v32 = vpop.permute.xlu1 %2861 }
 0xcd6   : > { %4892 = vmatmul.mubr.bf16.gmra.mxu1 %v2848_v31  ;;  %v2839_v25 = vmul.f32 %v5245_v23, %v6773_v20  ;;  %v2866_v20 = vpop.permute.xlu0 %2865 }
 0xcd8   : > { %v5247_v55 = vpop.eup %5246  ;;  %v2849_v22 = vpack.c.bf16 %v2840_v16, %v2839_v25 }
 0xcd9   : > { %v5249_v13 = vpop.eup %5248  ;;  %v2842_v17 = vmul.f32 %v5247_v55, %v6781_v63  ;;  %v2864_v1 = vpop.permute.xlu1 %2863 }
 0xcda   : > { %4895 = vmatprep.mubr.bf16.mxu1 %v2849_v22  ;;  %v2841_v36 = vmul.f32 %v5249_v13, %v6779_v34  ;;  %v2870_v15 = vpop.permute.xlu0 %2869  ;;  %v5317_v34 = vld [vmem:[%s7414_s5] sm:$0xf] }
 0xcdb   : > { %v6844_v18 = vrot.slane %v5317_v34, %v7466_v53 }
 0xcdc   : > { %v2850_v12 = vpack.c.bf16 %v2842_v17, %v2841_v36 }
 0xcdd   : > { %v2868_v26 = vpop.permute.xlu1 %2867 }
 0xcde   : > { %4896 = vmatmul.mubr.bf16.gmra.mxu1 %v2850_v12  ;;  %v2874_v9 = vpop.permute.xlu0 %2873 }
 0xce1   : > { %v2872_v63 = vpop.permute.xlu1 %2871 }
 0xce2   : > { %v2878_v51 = vpop.permute.xlu0 %2877 }
 0xce5   : > { %v2876_v33 = vpop.permute.xlu1 %2875 }
 0xce6   : > { %v2882_v25 = vpop.permute.xlu0 %2881 }
 0xce9   : > { %v2880_v4 = vpop.permute.xlu1 %2879 }
 0xcea   : > { %v2886_v34 = vpop.permute.xlu0 %2885 }
 0xd86   : > { %v4885_v6 = vpop.f32.mrf.mxu1 }
 0xd87   : > { %v2950_v30 = vadd.f32 %v4885_v6, %v2864_v1 }
 0xd88   : > { %v2941_v10 = vpop.f32.mrf.mxu1 }
 0xd89   : > { %v2942_v0 = vadd.f32 %v2941_v10, %v2860_v46  ;;  %v3010_v47 = vadd.f32 %v6844_v18, %v2950_v30 }
 0xd8a   : > { %v4886_v37 = vpop.f32.mrf.mxu1 }
 0xd8b   : > { %v2953_v7 = vadd.f32 %v4886_v37, %v2866_v20  ;;  %v3008_v11 = vadd.f32 %v6844_v18, %v2942_v0  ;;  %v3042_v5 = vmul.f32 0.01, %v3010_v47  ;;  %vm3026_vm14 = vcmp.gt.f32.partialorder %v3010_v47, 0.0 }
 0xd8c   : > { %v2944_v38 = vpop.f32.mrf.mxu1 }
 0xd8d   : > { %v3011_v39 = vadd.f32 %v6844_v18, %v2953_v7  ;;  %v2945_v61 = vadd.f32 %v2944_v38, %v2862_v32  ;;  %v3040_v58 = vmul.f32 0.01, %v3008_v11  ;;  %vm3024_vm13 = vcmp.gt.f32.partialorder %v3008_v11, 0.0 }
 0xd8e   : > { %v4889_v62 = vpop.f32.mrf.mxu1  ;;  %v3058_v55 = vsel %vm3026_vm14, %v3010_v47, %v3042_v5 }
 0xd8f   : > { %v3043_v29 = vmul.f32 0.01, %v3011_v39  ;;  %v3009_v27 = vadd.f32 %v6844_v18, %v2945_v61  ;;  %vm3027_vm15 = vcmp.gt.f32.partialorder %v3011_v39, 0.0  ;;  %v2966_v56 = vadd.f32 %v4889_v62, %v2872_v63  ;;  %v2884_v63 = vpop.permute.xlu1 %2883 }
 0xd90   : > { %v2957_v24 = vpop.f32.mrf.mxu1  ;;  %v3056_v31 = vsel %vm3024_vm13, %v3008_v11, %v3040_v58 }
 0xd91   : > { %v2958_v49 = vadd.f32 %v2957_v24, %v2868_v26  ;;  %vm3025_vm12 = vcmp.gt.f32.partialorder %v3009_v27, 0.0  ;;  %v3041_v14 = vmul.f32 0.01, %v3009_v27  ;;  %v3059_v28 = vsel %vm3027_vm15, %v3011_v39, %v3043_v29 }
 0xd92   : > { %v4890_v43 = vpop.f32.mrf.mxu1  ;;  %v3014_v22 = vadd.f32 %v6844_v18, %v2966_v56  ;;  %v3073_v12 = vpack.c.bf16 %v3059_v28, %v3058_v55  ;;  %v2890_v56 = vpop.permute.xlu0 %2889 }
 0xd93   : > { %v2969_v2 = vadd.f32 %v4890_v43, %v2874_v9  ;;  %v3057_v59 = vsel %vm3025_vm12, %v3009_v27, %v3041_v14  ;;  %v3012_v23 = vadd.f32 %v6844_v18, %v2958_v49  ;;  %v2888_v5 = vpop.permute.xlu1 %2887 }
 0xd94   : > { %v2960_v19 = vpop.f32.mrf.mxu1  ;;  %v3072_v36 = vpack.c.bf16 %v3057_v59, %v3056_v31  ;;  %v3046_v6 = vmul.f32 0.01, %v3014_v22  ;;  %vm3030_vm12 = vcmp.gt.f32.partialorder %v3014_v22, 0.0 }
 0xd95   : > { %v3015_v16 = vadd.f32 %v6844_v18, %v2969_v2  ;;  %v2961_v13 = vadd.f32 %v2960_v19, %v2870_v15  ;;  %v3044_v1 = vmul.f32 0.01, %v3012_v23  ;;  %vm3028_vm15 = vcmp.gt.f32.partialorder %v3012_v23, 0.0 }
 0xd96   : > { %v4893_v17 = vpop.f32.mrf.mxu1  ;;  %4903 = vmatprep.mubr.msk.bf16.mxu0 %vm555_vm1, %v3072_v36  ;;  %v3062_v11 = vsel %vm3030_vm12, %v3014_v22, %v3046_v6 }
 0xd97   : > { %v3047_v60 = vmul.f32 0.01, %v3015_v16  ;;  %v3013_v32 = vadd.f32 %v6844_v18, %v2961_v13  ;;  %vm3031_vm0 = vcmp.gt.f32.partialorder %v3015_v16, 0.0  ;;  %v2982_v20 = vadd.f32 %v4893_v17, %v2880_v4  ;;  %4904 = vmatmul.mubr.msk.bf16.vlgmr.msra.gmra.mxu0 %vm555_vm1, %v3073_v12 }
 0xd98   : > { %v2973_v46 = vpop.f32.mrf.mxu1  ;;  %v3060_v37 = vsel %vm3028_vm15, %v3012_v23, %v3044_v1 }
 0xd99   : > { %v2974_v26 = vadd.f32 %v2973_v46, %v2876_v33  ;;  %vm3029_vm13 = vcmp.gt.f32.partialorder %v3013_v32, 0.0  ;;  %v3045_v10 = vmul.f32 0.01, %v3013_v32  ;;  %v3063_v53 = vsel %vm3031_vm0, %v3015_v16, %v3047_v60 }
 0xd9a   : > { %v4894_v15 = vpop.f32.mrf.mxu1  ;;  %v3018_v7 = vadd.f32 %v6844_v18, %v2982_v20  ;;  %v3075_v33 = vpack.c.bf16 %v3063_v53, %v3062_v11 }
 0xd9b   : > { %v2985_v30 = vadd.f32 %v4894_v15, %v2882_v25  ;;  %v3061_v0 = vsel %vm3029_vm13, %v3013_v32, %v3045_v10  ;;  %v3016_v38 = vadd.f32 %v6844_v18, %v2974_v26 }
 0xd9c   : > { %v2976_v9 = vpop.f32.mrf.mxu1  ;;  %v3074_v62 = vpack.c.bf16 %v3061_v0, %v3060_v37  ;;  %v3050_v58 = vmul.f32 0.01, %v3018_v7  ;;  %vm3034_vm13 = vcmp.gt.f32.partialorder %v3018_v7, 0.0 }
 0xd9d   : > { %v3019_v47 = vadd.f32 %v6844_v18, %v2985_v30  ;;  %v2977_v39 = vadd.f32 %v2976_v9, %v2878_v51  ;;  %v3048_v49 = vmul.f32 0.01, %v3016_v38  ;;  %vm3032_vm0 = vcmp.gt.f32.partialorder %v3016_v38, 0.0 }
 0xd9e   : > { %v4897_v61 = vpop.f32.mrf.mxu1  ;;  %4907 = vmatprep.mubr.msk.bf16.mxu0 %vm555_vm1, %v3074_v62  ;;  %v3066_v25 = vsel %vm3034_vm13, %v3018_v7, %v3050_v58 }
 0xd9f   : > { %v3051_v29 = vmul.f32 0.01, %v3019_v47  ;;  %v3017_v27 = vadd.f32 %v6844_v18, %v2977_v39  ;;  %vm3035_vm14 = vcmp.gt.f32.partialorder %v3019_v47, 0.0  ;;  %4908 = vmatmul.mubr.msk.bf16.gmra.mxu0 %vm555_vm1, %v3075_v33  ;;  %v2998_v43 = vadd.f32 %v4897_v61, %v2888_v5 }
 0xda0   : > { %v2989_v24 = vpop.f32.mrf.mxu1  ;;  %v3064_v23 = vsel %vm3032_vm0, %v3016_v38, %v3048_v49 }
 0xda1   : > { %v2990_v14 = vadd.f32 %v2989_v24, %v2884_v63  ;;  %vm3033_vm15 = vcmp.gt.f32.partialorder %v3017_v27, 0.0  ;;  %v3049_v51 = vmul.f32 0.01, %v3017_v27  ;;  %v3067_v59 = vsel %vm3035_vm14, %v3019_v47, %v3051_v29  ;;  %v5318_v63 = vld [vmem:[%s7413_s4] sm:$0xf] }
 0xda2   : > { %v4898_v2 = vpop.f32.mrf.mxu1  ;;  %v3022_v55 = vadd.f32 %v6844_v18, %v2998_v43  ;;  %v3077_v17 = vpack.c.bf16 %v3067_v59, %v3066_v25 }
 0xda3   : > { %v3001_v28 = vadd.f32 %v4898_v2, %v2890_v56  ;;  %v3065_v19 = vsel %vm3033_vm15, %v3017_v27, %v3049_v51  ;;  %v3020_v4 = vadd.f32 %v6844_v18, %v2990_v14 }
 0xda4   : > { %v2992_v31 = vpop.f32.mrf.mxu1  ;;  %v3076_v13 = vpack.c.bf16 %v3065_v19, %v3064_v23  ;;  %v3054_v32 = vmul.f32 0.01, %v3022_v55  ;;  %vm3038_vm15 = vcmp.gt.f32.partialorder %v3022_v55, 0.0 }
 0xda5   : > { %v3023_v16 = vadd.f32 %v6844_v18, %v3001_v28  ;;  %v2993_v22 = vadd.f32 %v2992_v31, %v2886_v34  ;;  %v3052_v36 = vmul.f32 0.01, %v3020_v4  ;;  %vm3036_vm12 = vcmp.gt.f32.partialorder %v3020_v4, 0.0 }
 0xda6   : > { %4911 = vmatprep.mubr.msk.bf16.mxu0 %vm555_vm1, %v3076_v13  ;;  %v3070_v10 = vsel %vm3038_vm15, %v3022_v55, %v3054_v32 }
 0xda7   : > { %v3055_v12 = vmul.f32 0.01, %v3023_v16  ;;  %v3021_v60 = vadd.f32 %v6844_v18, %v2993_v22  ;;  %vm3039_vm14 = vcmp.gt.f32.partialorder %v3023_v16, 0.0  ;;  %4912 = vmatmul.mubr.msk.bf16.gmra.mxu0 %vm555_vm1, %v3077_v17  ;;  %v3068_v1 = vsel %vm3036_vm12, %v3020_v4, %v3052_v36 }
 0xda8   : > { %v3220_v18 = vsub.s32 3, %v5612_v21 }
 0xda9   : > { %vm3037_vm0 = vcmp.gt.f32.partialorder %v3021_v60, 0.0  ;;  %v3053_v46 = vmul.f32 0.01, %v3021_v60  ;;  %v3071_v20 = vsel %vm3039_vm14, %v3023_v16, %v3055_v12 }
 0xdaa   : > { %v3079_v15 = vpack.c.bf16 %v3071_v20, %v3070_v10  ;;  %v6876_v30 = vrot.slane %v5318_v63, %v3220_v18 }
 0xdab   : > { %v3069_v26 = vsel %vm3037_vm0, %v3021_v60, %v3053_v46 }
 0xdac   : > { %v3078_v6 = vpack.c.bf16 %v3069_v26, %v3068_v1 }
 0xdae   : > { %4915 = vmatprep.mubr.msk.bf16.mxu0 %vm555_vm1, %v3078_v6 }
 0xdaf   : > { %4916 = vmatmul.mubr.msk.bf16.gmra.mxu0 %vm555_vm1, %v3079_v15 }
 0xe57   : > { %v6878_v34 = vpop.f32.mrf.mxu0 }
 0xe58   : > { %3298 = vperm.xlu1 %5041, %v6878_v34   ;;  %v3224_v53 = vmul.f32 %v6878_v34, %v6876_v30 }
 0xe59   : > { %v6883_v0 = vpop.f32.mrf.mxu0 }
 0xe5a   : > { %v3244_v9 = vsel %vm555_vm1, %v3224_v53, 0.0  ;;  %v3222_v51 = vmul.f32 %v6876_v30, %v6883_v0 }
 0xe5b   : > { %3245 = vadd.xlane.f32.xlu0 %v3244_v9  ;;  %v6886_v37 = vpop.f32.mrf.mxu0 }
 0xe5c   : > { %3288 = vperm.xlu1 %5041, %v6883_v0   ;;  %v3238_v2 = vsel %vm555_vm1, %v3222_v51, 0.0  ;;  %v3225_v28 = vmul.f32 %v6886_v37, %v6876_v30  ;;  %v3734_v31 = vpack.c.bf16 %v6886_v37, %v6878_v34 }
 0xe5d   : > { %v6889_v7 = vpop.f32.mrf.mxu0 }
 0xe5e   : > { %v3247_v19 = vsel %vm555_vm1, %v3225_v28, 0.0  ;;  %v3733_v23 = vpack.c.bf16 %v6889_v7, %v6883_v0  ;;  %v3223_v16 = vmul.f32 %v6876_v30, %v6889_v7 }
 0xe5f   : > { %v6891_v38 = vpop.f32.mrf.mxu0 }
 0xe60   : > { %v3241_v25 = vsel %vm555_vm1, %v3223_v16, 0.0  ;;  %v3228_v13 = vmul.f32 %v6891_v38, %v6876_v30 }
 0xe61   : > { %v6893_v47 = vpop.f32.mrf.mxu0 }
 0xe62   : > { %v3256_v17 = vsel %vm555_vm1, %v3228_v13, 0.0  ;;  %v3226_v60 = vmul.f32 %v6876_v30, %v6893_v47 }
 0xe63   : > { %v6895_v11 = vpop.f32.mrf.mxu0 }
 0xe64   : > { %v3736_v59 = vpack.c.bf16 %v6895_v11, %v6891_v38  ;;  %v3229_v55 = vmul.f32 %v6895_v11, %v6876_v30  ;;  %v3250_v32 = vsel %vm555_vm1, %v3226_v60, 0.0 }
 0xe65   : > { %v6897_v39 = vpop.f32.mrf.mxu0 }
 0xe66   : > { %v3735_v4 = vpack.c.bf16 %v6897_v39, %v6893_v47  ;;  %v3259_v22 = vsel %vm555_vm1, %v3229_v55, 0.0  ;;  %v3227_v36 = vmul.f32 %v6876_v30, %v6897_v39 }
 0xe67   : > { %v6899_v61 = vpop.f32.mrf.mxu0 }
 0xe68   : > { %v3253_v12 = vsel %vm555_vm1, %v3227_v36, 0.0  ;;  %v3232_v46 = vmul.f32 %v6899_v61, %v6876_v30 }
 0xe69   : > { %v6901_v62 = vpop.f32.mrf.mxu0 }
 0xe6a   : > { %v3268_v1 = vsel %vm555_vm1, %v3232_v46, 0.0  ;;  %v3230_v15 = vmul.f32 %v6876_v30, %v6901_v62 }
 0xe6b   : > { %v6903_v33 = vpop.f32.mrf.mxu0 }
 0xe6c   : > { %v3738_v56 = vpack.c.bf16 %v6903_v33, %v6899_v61  ;;  %v3233_v20 = vmul.f32 %v6903_v33, %v6876_v30  ;;  %v3262_v63 = vsel %vm555_vm1, %v3230_v15, 0.0 }
 0xe6d   : > { %v6905_v29 = vpop.f32.mrf.mxu0 }
 0xe6e   : > { %v3737_v43 = vpack.c.bf16 %v6905_v29, %v6901_v62  ;;  %v3271_v26 = vsel %vm555_vm1, %v3233_v20, 0.0  ;;  %v3231_v6 = vmul.f32 %v6876_v30, %v6905_v29 }
 0xe6f   : > { %v6907_v27 = vpop.f32.mrf.mxu0 }
 0xe70   : > { %v3265_v10 = vsel %vm555_vm1, %v3231_v6, 0.0 }
 0xe71   : > { %3303 = vperm.xlu0 %5042, %v6886_v37   ;;  %v6910_v24 = vpop.f32.mrf.mxu0 }
 0xe73   : > { %v6912_v5 = vpop.f32.mrf.mxu0 }
 0xe74   : > { %v3740_v58 = vpack.c.bf16 %v6912_v5, %v6907_v27  ;;  %v3237_v53 = vmul.f32 %v6912_v5, %v6876_v30 }
 0xe75   : > { %3293 = vperm.xlu0 %5042, %v6889_v7   ;;  %v6917_v49 = vpop.f32.mrf.mxu0 }
 0xe76   : > { %v3739_v14 = vpack.c.bf16 %v6917_v49, %v6910_v24  ;;  %4919 = vmatprep.subr.bf16.mxu0 %v3740_v58  ;;  %4973 = vmatprep.subr.bf16.mxu1 %v3740_v58  ;;  %v3283_v9 = vsel %vm555_vm1, %v3237_v53, 0.0 }
 0xe77   : > { %4920 = vmatpush3.bf16.msra.mxu0 %v3740_v58  ;;  %4981 = vmatpush3.bf16.msra.mxu1 %v3740_v58  ;;  %v3235_v58 = vmul.f32 %v6876_v30, %v6917_v49 }
 0xe78   : > { %4921 = vmatprep.subr.bf16.mxu0 %v3739_v14  ;;  %4974 = vmatprep.subr.bf16.mxu1 %v3739_v14 }
 0xe7b   : > { %4922 = vmatpush3.bf16.msra.mxu0 %v3739_v14  ;;  %4982 = vmatpush3.bf16.msra.mxu1 %v3739_v14  ;;  %v3277_v14 = vsel %vm555_vm1, %v3235_v58, 0.0 }
 0xe7c   : > { %4923 = vmatprep.subr.bf16.mxu0 %v3738_v56  ;;  %4975 = vmatprep.subr.bf16.mxu1 %v3738_v56 }
 0xe7f   : > { %4924 = vmatpush3.bf16.msra.mxu0 %v3738_v56  ;;  %4983 = vmatpush3.bf16.msra.mxu1 %v3738_v56  ;;  %v3236_v56 = vmul.f32 %v6907_v27, %v6876_v30 }
 0xe80   : > { %3239 = vadd.xlane.f32.xlu1 %v3238_v2  ;;  %4925 = vmatprep.subr.bf16.mxu0 %v3737_v43 }
 0xe81   : > { %4976 = vmatprep.subr.bf16.mxu1 %v3737_v43  ;;  %v3280_v51 = vsel %vm555_vm1, %v3236_v56, 0.0 }
 0xe83   : > { %4926 = vmatpush3.bf16.msra.mxu0 %v3737_v43  ;;  %4984 = vmatpush3.bf16.msra.mxu1 %v3737_v43  ;;  %v3234_v43 = vmul.f32 %v6876_v30, %v6910_v24 }
 0xe84   : > { %3248 = vadd.xlane.f32.xlu1 %v3247_v19  ;;  %4927 = vmatprep.subr.bf16.mxu0 %v3736_v59 }
 0xe85   : > { %4977 = vmatprep.subr.bf16.mxu1 %v3736_v59  ;;  %v3274_v2 = vsel %vm555_vm1, %v3234_v43, 0.0 }
 0xe87   : > { %4928 = vmatpush3.bf16.msra.mxu0 %v3736_v59  ;;  %4985 = vmatpush3.bf16.msra.mxu1 %v3736_v59 }
 0xe88   : > { %4929 = vmatprep.subr.bf16.mxu0 %v3735_v4  ;;  %4978 = vmatprep.subr.bf16.mxu1 %v3735_v4 }
 0xe8b   : > { %4930 = vmatpush3.bf16.msra.mxu0 %v3735_v4  ;;  %4986 = vmatpush3.bf16.msra.mxu1 %v3735_v4 }
 0xe8c   : > { %4931 = vmatprep.subr.bf16.mxu0 %v3734_v31  ;;  %4979 = vmatprep.subr.bf16.mxu1 %v3734_v31 }
 0xe8f   : > { %4932 = vmatpush3.bf16.msra.mxu0 %v3734_v31  ;;  %4987 = vmatpush3.bf16.msra.mxu1 %v3734_v31 }
 0xe90   : > { %4933 = vmatprep.subr.bf16.mxu0 %v3733_v23  ;;  %4980 = vmatprep.subr.bf16.mxu1 %v3733_v23 }
 0xe93   : > { %4934 = vmatpush3.bf16.msra.mxu0 %v3733_v23  ;;  %4988 = vmatpush3.bf16.msra.mxu1 %v3733_v23 }
 0xe94   : > { %3242 = vadd.xlane.f32.xlu0 %v3241_v25 }
 0xe95   : > { %3318 = vperm.xlu1 %5041, %v6891_v38  }
 0xe99   : > { %3313 = vperm.xlu1 %5041, %v6897_v39  }
 0xeaa   : > { %3308 = vperm.xlu0 %5042, %v6893_v47  }
 0xebd   : > { %3260 = vadd.xlane.f32.xlu1 %v3259_v22 }
 0xec9   : > { %3257 = vadd.xlane.f32.xlu0 %v3256_v17 }
 0xece   : > { %3338 = vperm.xlu1 %5041, %v6899_v61  }
 0xed3   : > { %v6990_v28 = vpop.permute.xlu1 %3298 }
 0xed7   : > { %v6992_v59 = vpop.permute.xlu1 %3288 }
 0xedf   : > { %3323 = vperm.xlu0 %5042, %v6895_v11  }
 0xee4   : > { %v3246_v31 = vpop.xlane.xlu0 %3245 }
 0xee5   : > { %v3394_v6 = vrot.slane %v3246_v31, %v5748_v50 }
 0xeec   : > { %v6994_v23 = vpop.permute.xlu0 %3303 }
 0xef0   : > { %v6998_v16 = vpop.permute.xlu0 %3293 }
 0xef2   : > { %3254 = vadd.xlane.f32.xlu1 %v3253_v12 }
 0xefe   : > { %3251 = vadd.xlane.f32.xlu0 %v3250_v32 }
 0xf02   : > { %3269 = vadd.xlane.f32.xlu0 %v3268_v1 }
 0xf03   : > { %3328 = vperm.xlu1 %5041, %v6901_v62  }
 0xf09   : > { %v3240_v19 = vpop.xlane.xlu1 %3239 }
 0xf0a   : > { %v3385_v20 = vrot.slane %v3240_v19, %v5739_v45 }
 0xf0d   : > { %v3249_v4 = vpop.xlane.xlu1 %3248 }
 0xf11   : > { %v6996_v30 = vpop.permute.xlu1 %3318 }
 0xf15   : > { %v3314_v25 = vpop.permute.xlu1 %3313 }
 0xf18   : > { %3343 = vperm.xlu0 %5042, %v6903_v33  }
 0xf1d   : > { %v3243_v55 = vpop.xlane.xlu0 %3242 }
 0xf1e   : > { %v3389_v32 = vrot.slane %v3243_v55, %v5733_v42 }
 0xf25   : > { %v3309_v13 = vpop.permute.xlu0 %3308 }
 0xf27   : > { %3272 = vadd.xlane.f32.xlu1 %v3271_v26  ;;  %v3390_v26 = vsel %vm711_vm2, %v3389_v32, %v3385_v20  ;;  %vm7468_vm2 = vcmask 786112  }
 0xf2b   : > { %3266 = vadd.xlane.f32.xlu1 %v3265_v10 }
 0xf37   : > { %3263 = vadd.xlane.f32.xlu0 %v3262_v63  ;;  %v3395_v63 = vsel %vm718_vm3, %v3394_v6, %v3390_v26  ;;  %v7467_v26 = vld [vmem:[#allocation10_spill] sm:$0xff]  ;;  %vm7470_vm3 = vcmask 851712  }
 0xf3c   : > { %3348 = vperm.xlu1 %5041, %v6910_v24  }
 0xf46   : > { %v3261_v22 = vpop.xlane.xlu1 %3260 }
 0xf4a   : > { %v7000_v17 = vpop.permute.xlu1 %3338 }
 0xf4d   : > { %3333 = vperm.xlu0 %5042, %v6905_v29  }
 0xf52   : > { %v3258_v36 = vpop.xlane.xlu0 %3257 }
 0xf53   : > { %v3414_v50 = vrot.slane %v3258_v36, %v5769_v3 }
 0xf5a   : > { %v3324_v60 = vpop.permute.xlu0 %3323 }
 0xf60   : > { %3284 = vadd.xlane.f32.xlu1 %v3283_v9  ;;  %v3399_v9 = vrot.slane %v3249_v4, %v5744_v48  ;;  %v3419_v48 = vrot.slane %v3261_v22, %v5776_v8 }
 0xf62   : > { %v3400_v58 = vsel %vm725_vm4, %v3399_v9, %v3395_v63  ;;  %v7469_v9 = vld [vmem:[#allocation11_spill] sm:$0xff]  ;;  %vm7472_vm4 = vcmask 917312  }
 0xf64   : > { %3278 = vadd.xlane.f32.xlu1 %v3277_v14 }
 0xf6c   : > { %3281 = vadd.xlane.f32.xlu0 %v3280_v51 }
 0xf70   : > { %3275 = vadd.xlane.f32.xlu0 %v3274_v2 }
 0xf75   : > { %3358 = vperm.xlu1 %5041, %v6907_v27  }
 0xf7b   : > { %v3255_v12 = vpop.xlane.xlu1 %3254 }
 0xf7c   : > { %v3409_v45 = vrot.slane %v3255_v12, %v5759_v57 }
 0xf7f   : > { %v3329_v1 = vpop.permute.xlu1 %3328 }
 0xf86   : > { %3353 = vperm.xlu0 %5042, %v6917_v49  }
 0xf87   : > { %v3252_v46 = vpop.xlane.xlu0 %3251 }
 0xf88   : > { %v3404_v53 = vrot.slane %v3252_v46, %v5754_v54 }
 0xf8a   : > { %3363 = vperm.xlu0 %5042, %v6912_v5   ;;  %v3405_v42 = vsel %vm732_vm5, %v3404_v53, %v3400_v58  ;;  %v4626_v53 = vld [vmem:[%s5568_s23 + $0xd0] sm:$0xff]   ;;  %vm7473_vm5 = vcmask 982912  }
 0xf8b   : > { %v3270_v15 = vpop.xlane.xlu0 %3269  ;;  %v3410_v51 = vsel %vm739_vm6, %v3409_v45, %v3405_v42  ;;  %vm7474_vm6 = vcmask 1048512  }
 0xf8c   : > { %v3415_v19 = vsel %vm746_vm7, %v3414_v50, %v3410_v51  ;;  %v3434_v32 = vrot.slane %v3270_v15, %v5794_v40  ;;  %v7471_v40 = vld [vmem:[#allocation12_spill] sm:$0xff]  ;;  %v4628_v51 = vld [vmem:[%s5568_s23 + $0xe0] sm:$0xff]  }
 0xf8d   : > { %v3420_v4 = vsel %vm753_vm8, %v3419_v48, %v3415_v19 }
 0xf93   : > { %v3344_v14 = vpop.permute.xlu0 %3343 }
 0xfb0   : > { %v3273_v10 = vpop.xlane.xlu1 %3272 }
 0xfb1   : > { %v3439_v8 = vrot.slane %v3273_v10, %v5800_v41  ;;  %v4580_v41 = vunpack.c.h.bf16 %v4626_v53  ;;  %v4579_v10 = vunpack.c.l.bf16 %v4626_v53 }
 0xfb4   : > { %v3267_v56 = vpop.xlane.xlu1 %3266 }
 0xfb5   : > { %v3429_v12 = vrot.slane %v3267_v56, %v5791_v52  ;;  %v4627_v52 = vld [vmem:[%s5568_s23 + $0xd8] sm:$0xff]  }
 0xfb6   : > { %v4584_v50 = vunpack.c.h.bf16 %v4627_v52 }
 0xfb8   : > { %v7014_v2 = vpop.permute.xlu1 %3348 }
 0xfc0   : > { %v3264_v43 = vpop.xlane.xlu0 %3263 }
 0xfc1   : > { %v3424_v54 = vrot.slane %v3264_v43, %v5785_v44 }
 0xfc3   : > { %v3425_v57 = vsel %vm760_vm9, %v3424_v54, %v3420_v4 }
 0xfc4   : > { %v3430_v3 = vsel %vm767_vm10, %v3429_v12, %v3425_v57  ;;  %v4587_v57 = vunpack.c.l.bf16 %v4628_v51 }
 0xfc5   : > { %v3435_v44 = vsel %vm774_vm11, %v3434_v32, %v3430_v3  ;;  %v4629_v32 = vld [vmem:[%s5568_s23 + $0xe8] sm:$0xff]  }
 0xfc6   : > { %v3440_v63 = vsel %vm7468_vm2, %v3439_v8, %v3435_v44  ;;  %v4588_v8 = vunpack.c.h.bf16 %v4628_v51 }
 0xfc8   : > { %v3334_v31 = vpop.permute.xlu0 %3333 }
 0xfe9   : > { %v3285_v55 = vpop.xlane.xlu1 %3284 }
 0xfea   : > { %v3459_v15 = vrot.slane %v3285_v55, %v7471_v40 }
 0xfed   : > { %v3279_v46 = vpop.xlane.xlu1 %3278 }
 0xfee   : > { %v3449_v6 = vrot.slane %v3279_v46, %v7467_v26 }
 0xff5   : > { %v3282_v36 = vpop.xlane.xlu0 %3281 }
 0xff6   : > { %v3454_v58 = vrot.slane %v3282_v36, %v7469_v9 }
 0xff9   : > { %v3276_v22 = vpop.xlane.xlu0 %3275 }
 0xffa   : > { %v3444_v20 = vrot.slane %v3276_v22, %v7449_v35  ;;  %v4583_v35 = vunpack.c.l.bf16 %v4627_v52  ;;  %v4592_v22 = vunpack.c.h.bf16 %v4629_v32 }
 0xffc   : > { %v3445_v42 = vsel %vm7470_vm3, %v3444_v20, %v3440_v63  ;;  %v4624_v63 = vld [vmem:[%s5568_s23 + $0xc0] sm:$0xff]  }
 0xffd   : > { %v3450_v56 = vsel %vm7472_vm4, %v3449_v6, %v3445_v42  ;;  %v4572_v9 = vunpack.c.h.bf16 %v4624_v63 }
 0xffe   : > { %v3455_v45 = vsel %vm7473_vm5, %v3454_v58, %v3450_v56  ;;  %v4571_v58 = vunpack.c.l.bf16 %v4624_v63 }
 0xfff   : > { %v7038_v43 = vsel %vm7474_vm6, %v3459_v15, %v3455_v45  ;;  %v4625_v15 = vld [vmem:[%s5568_s23 + $0xc8] sm:$0xff]  }
0x1000   : > { %v3473_v19 = vadd.f32 %v7038_v43, %v3314_v25  ;;  %v3472_v54 = vadd.f32 %v7038_v43, %v3309_v13  ;;  %v3474_v48 = vadd.f32 %v7038_v43, %v6996_v30  ;;  %v3475_v4 = vadd.f32 %v7038_v43, %v3324_v60 }
0x1001   : > { %v3476_v36 = vadd.f32 %v7038_v43, %v3329_v1  ;;  %v3477_v44 = vadd.f32 %v7038_v43, %v3334_v31  ;;  %v3478_v30 = vadd.f32 %v7038_v43, %v7000_v17  ;;  %v4591_v60 = vunpack.c.l.bf16 %v4629_v32 }
0x1002   : > { %v3522_v55 = vadd.f32 %v4580_v41, %v3473_v19  ;;  %v3521_v12 = vadd.f32 %v4579_v10, %v3472_v54  ;;  %v3523_v3 = vadd.f32 %v4583_v35, %v3474_v48  ;;  %v3524_v46 = vadd.f32 %v4584_v50, %v3475_v4  ;;  %v4630_v50 = vld [vmem:[%s5568_s23 + $0xf0] sm:$0xff]   ;;  %v3354_v19 = vpop.permute.xlu0 %3353 }
0x1003   : > { %v3525_v6 = vadd.f32 %v4587_v57, %v3476_v36  ;;  %v3479_v1 = vadd.f32 %v7038_v43, %v3344_v14  ;;  %v3526_v52 = vadd.f32 %v4588_v8, %v3477_v44  ;;  %v3527_v17 = vadd.f32 %v4591_v60, %v3478_v30 }
0x1004   : > { %vm3538_vm7 = vcmp.gt.f32.partialorder %v3522_v55, 0.0  ;;  %v3554_v25 = vmul.f32 0.2, %v3522_v55  ;;  %vm3537_vm8 = vcmp.gt.f32.partialorder %v3521_v12, 0.0  ;;  %v3553_v13 = vmul.f32 0.2, %v3521_v12 }
0x1005   : > { %v3555_v26 = vmul.f32 0.2, %v3523_v3  ;;  %vm3539_vm9 = vcmp.gt.f32.partialorder %v3523_v3, 0.0  ;;  %v3556_v53 = vmul.f32 0.2, %v3524_v46  ;;  %vm3540_vm10 = vcmp.gt.f32.partialorder %v3524_v46, 0.0 }
0x1006   : > { %v7050_v20 = vsel %vm3538_vm7, %v3522_v55, %v3554_v25  ;;  %v7055_v31 = vsel %vm3537_vm8, %v3521_v12, %v3553_v13  ;;  %vm3541_vm11 = vcmp.gt.f32.partialorder %v3525_v6, 0.0  ;;  %v3557_v14 = vmul.f32 0.2, %v3525_v6  ;;  %v3364_v60 = vpop.permute.xlu0 %3363 }
0x1007   : > { %3591 = vmax.xlane.f32.xlu0 %v7050_v20  ;;  %3589 = vmax.xlane.f32.xlu1 %v7055_v31  ;;  %v7058_v42 = vsel %vm3539_vm9, %v3523_v3, %v3555_v26  ;;  %v3468_v40 = vadd.f32 %v7038_v43, %v6992_v59  ;;  %v7064_v56 = vsel %vm3540_vm10, %v3524_v46, %v3556_v53  ;;  %v3558_v45 = vmul.f32 0.2, %v3526_v52  ;;  %v4631_v46 = vld [vmem:[%s5568_s23 + $0xf8] sm:$0xff]   ;;  %s4263_s23 = scalar_lea.hbm %s7417_s8, %s4469_s20 }
0x1008   : > { %v3528_v41 = vadd.f32 %v4592_v22, %v3479_v1  ;;  %v3469_v10 = vadd.f32 %v7038_v43, %v6998_v16  ;;  %vm3542_vm13 = vcmp.gt.f32.partialorder %v3526_v52, 0.0  ;;  %vm3543_vm12 = vcmp.gt.f32.partialorder %v3527_v17, 0.0  ;;  %v3359_v22 = vpop.permute.xlu1 %3358 }
0x1009   : > { %v4576_v35 = vunpack.c.h.bf16 %v4625_v15  ;;  %v4575_v51 = vunpack.c.l.bf16 %v4625_v15  ;;  %v7071_v59 = vsel %vm3541_vm11, %v3525_v6, %v3557_v14  ;;  %v3559_v54 = vmul.f32 0.2, %v3527_v17 }
0x100a   : > { %v3517_v48 = vadd.f32 %v4571_v58, %v3468_v40  ;;  %v3470_v4 = vadd.f32 %v7038_v43, %v6990_v28  ;;  %v7076_v16 = vsel %vm3542_vm13, %v3526_v52, %v3558_v45  ;;  %v3560_v57 = vmul.f32 0.2, %v3528_v41 }
0x100b   : > { %3593 = vmax.xlane.f32.xlu0 %v7058_v42  ;;  %3595 = vmax.xlane.f32.xlu1 %v7064_v56  ;;  %v3518_v55 = vadd.f32 %v4572_v9, %v3469_v10  ;;  %v3471_v12 = vadd.f32 %v7038_v43, %v6994_v23  ;;  %vm3544_vm14 = vcmp.gt.f32.partialorder %v3528_v41, 0.0  ;;  %v4595_v3 = vunpack.c.l.bf16 %v4630_v50 }
0x100c   : > { %v4596_v36 = vunpack.c.h.bf16 %v4630_v50  ;;  %v3481_v32 = vadd.f32 %v7038_v43, %v3354_v19  ;;  %v7084_v44 = vsel %vm3543_vm12, %v3527_v17, %v3559_v54  ;;  %v3549_v28 = vmul.f32 0.2, %v3517_v48 }
0x100d   : > { %v3519_v8 = vadd.f32 %v4575_v51, %v3470_v4  ;;  %v3480_v25 = vadd.f32 %v7038_v43, %v7014_v2  ;;  %v7089_v13 = vsel %vm3544_vm14, %v3528_v41, %v3560_v57  ;;  %v3550_v23 = vmul.f32 0.2, %v3518_v55 }
0x100e   : > { %vm3533_vm0 = vcmp.gt.f32.partialorder %v3517_v48, 0.0  ;;  %v3520_v30 = vadd.f32 %v4576_v35, %v3471_v12  ;;  %vm3534_vm15 = vcmp.gt.f32.partialorder %v3518_v55, 0.0  ;;  %v3530_v26 = vadd.f32 %v4596_v36, %v3481_v32 }
0x100f   : > { %3597 = vmax.xlane.f32.xlu0 %v7071_v59  ;;  %3599 = vmax.xlane.f32.xlu1 %v7076_v16  ;;  %v4599_v6 = vunpack.c.l.bf16 %v4631_v46  ;;  %v4600_v1 = vunpack.c.h.bf16 %v4631_v46  ;;  %v7092_v63 = vsel %vm3533_vm0, %v3517_v48, %v3549_v28  ;;  %v3551_v53 = vmul.f32 0.2, %v3519_v8 }
0x1010   : > { %v3529_v52 = vadd.f32 %v4595_v3, %v3480_v25  ;;  %v3482_v2 = vadd.f32 %v7038_v43, %v3359_v22  ;;  %v3483_v17 = vadd.f32 %v7038_v43, %v3364_v60  ;;  %v7096_v9 = vsel %vm3534_vm15, %v3518_v55, %v3550_v23 }
0x1011   : > { %v3552_v58 = vmul.f32 0.2, %v3520_v30  ;;  %vm3535_vm2 = vcmp.gt.f32.partialorder %v3519_v8, 0.0  ;;  %vm3536_vm3 = vcmp.gt.f32.partialorder %v3520_v30, 0.0  ;;  %v3562_v43 = vmul.f32 0.2, %v3530_v26 }
0x1012   : > { %v7100_v14 = vsel %vm3535_vm2, %v3519_v8, %v3551_v53  ;;  %v3561_v40 = vmul.f32 0.2, %v3529_v52  ;;  %v3531_v15 = vadd.f32 %v4599_v6, %v3482_v2  ;;  %v3532_v45 = vadd.f32 %v4600_v1, %v3483_v17 }
0x1013   : > { %3601 = vmax.xlane.f32.xlu0 %v7084_v44  ;;  %3603 = vmax.xlane.f32.xlu1 %v7089_v13  ;;  %v7102_v41 = vsel %vm3536_vm3, %v3520_v30, %v3552_v58  ;;  %vm3545_vm4 = vcmp.gt.f32.partialorder %v3529_v52, 0.0  ;;  %vm3546_vm5 = vcmp.gt.f32.partialorder %v3530_v26, 0.0  ;;  %vm5420_vm8 = vmmov 0  }
0x1014   : > { %v7106_v10 = vsel %vm3545_vm4, %v3529_v52, %v3561_v40  ;;  %v3563_v35 = vmul.f32 0.2, %v3531_v15  ;;  %v7109_v51 = vsel %vm3546_vm5, %v3530_v26, %v3562_v43  ;;  %vm3547_vm6 = vcmp.gt.f32.partialorder %v3531_v15, 0.0 }
0x1015   : > { %v3564_v50 = vmul.f32 0.2, %v3532_v45  ;;  %vm3548_vm7 = vcmp.gt.f32.partialorder %v3532_v45, 0.0  ;;  %vm4059_vm9 = vcmask 1040384   ;;  %vm4061_vm10 = vcmask 1041408  }
0x1016   : > { %v7112_v19 = vsel %vm3547_vm6, %v3531_v15, %v3563_v35  ;;  %vm4063_vm11 = vcmask 1042432   ;;  %vm4065_vm13 = vcmask 1043456   ;;  %vm4067_vm12 = vcmask 1044480  }
0x1017   : > { %3581 = vmax.xlane.f32.xlu0 %v7092_v63  ;;  %3583 = vmax.xlane.f32.xlu1 %v7096_v9  ;;  %v7115_v54 = vsel %vm3548_vm7, %v3532_v45, %v3564_v50  ;;  %vm4069_vm14 = vcmask 1045504   ;;  %vm4071_vm0 = vcmask 1046528   ;;  %vm4249_vm3 = vcmask 195584  }
0x101b   : > { %3585 = vmax.xlane.f32.xlu0 %v7100_v14  ;;  %3587 = vmax.xlane.f32.xlu1 %v7102_v41 }
0x101f   : > { %3605 = vmax.xlane.f32.xlu0 %v7106_v10  ;;  %3607 = vmax.xlane.f32.xlu1 %v7109_v51 }
0x1023   : > { %3609 = vmax.xlane.f32.xlu0 %v7112_v19  ;;  %3611 = vmax.xlane.f32.xlu1 %v7115_v54 }
0x1090   : > { %v3592_v48 = vpop.xlane.xlu0 %3591  ;;  %v3590_v4 = vpop.xlane.xlu1 %3589 }
0x1091   : > { %v3618_v57 = vsub.f32 %v7050_v20, %v3592_v48  ;;  %v3617_v55 = vsub.f32 %v7055_v31, %v3590_v4 }
0x1093   : > { %v3639_v12 = vmul.f32 1.442695, %v3618_v57  ;;  %v3637_v3 = vmul.f32 1.442695, %v3617_v55 }
0x1094   : > { %v3594_v36 = vpop.xlane.xlu0 %3593  ;;  %v3596_v32 = vpop.xlane.xlu1 %3595 }
0x1095   : > { %5250 = vpow2.f32 %v3639_v12  ;;  %v3619_v46 = vsub.f32 %v7058_v42, %v3594_v36  ;;  %v3620_v28 = vsub.f32 %v7064_v56, %v3596_v32 }
0x1096   : > { %5252 = vpow2.f32 %v3637_v3 }
0x1097   : > { %v3641_v8 = vmul.f32 1.442695, %v3619_v46  ;;  %v3643_v25 = vmul.f32 1.442695, %v3620_v28 }
0x1098   : > { %v3598_v23 = vpop.xlane.xlu0 %3597  ;;  %v3600_v30 = vpop.xlane.xlu1 %3599 }
0x1099   : > { %5254 = vpow2.f32 %v3641_v8  ;;  %v3621_v60 = vsub.f32 %v7071_v59, %v3598_v23  ;;  %v3622_v20 = vsub.f32 %v7076_v16, %v3600_v30 }
0x109a   : > { %5256 = vpow2.f32 %v3643_v25 }
0x109b   : > { %v3645_v31 = vmul.f32 1.442695, %v3621_v60  ;;  %v3647_v22 = vmul.f32 1.442695, %v3622_v20 }
0x109c   : > { %v3602_v26 = vpop.xlane.xlu0 %3601  ;;  %v3604_v6 = vpop.xlane.xlu1 %3603 }
0x109d   : > { %5258 = vpow2.f32 %v3645_v31  ;;  %v3623_v42 = vsub.f32 %v7084_v44, %v3602_v26  ;;  %v3624_v56 = vsub.f32 %v7089_v13, %v3604_v6 }
0x109e   : > { %5260 = vpow2.f32 %v3647_v22 }
0x109f   : > { %v3649_v1 = vmul.f32 1.442695, %v3623_v42  ;;  %v3651_v53 = vmul.f32 1.442695, %v3624_v56 }
0x10a0   : > { %v3582_v52 = vpop.xlane.xlu0 %3581  ;;  %v3584_v2 = vpop.xlane.xlu1 %3583 }
0x10a1   : > { %5262 = vpow2.f32 %v3649_v1  ;;  %v3613_v59 = vsub.f32 %v7092_v63, %v3582_v52  ;;  %v3614_v16 = vsub.f32 %v7096_v9, %v3584_v2 }
0x10a2   : > { %v7127_v17 = vpop.eup %5250  ;;  %5264 = vpow2.f32 %v3651_v53 }
0x10a3   : > { %v7130_v58 = vpop.eup %5252  ;;  %v3629_v40 = vmul.f32 1.442695, %v3613_v59  ;;  %3671 = vadd.xlane.f32.xlu1 %v7127_v17  ;;  %v3631_v44 = vmul.f32 1.442695, %v3614_v16 }
0x10a4   : > { %3669 = vadd.xlane.f32.xlu0 %v7130_v58  ;;  %v3586_v13 = vpop.xlane.xlu0 %3585  ;;  %v3588_v15 = vpop.xlane.xlu1 %3587 }
0x10a5   : > { %5266 = vpow2.f32 %v3629_v40  ;;  %v3615_v45 = vsub.f32 %v7100_v14, %v3586_v13  ;;  %v3616_v63 = vsub.f32 %v7102_v41, %v3588_v15 }
0x10a6   : > { %v7135_v43 = vpop.eup %5254  ;;  %5268 = vpow2.f32 %v3631_v44 }
0x10a7   : > { %v7138_v35 = vpop.eup %5256  ;;  %v3633_v9 = vmul.f32 1.442695, %v3615_v45  ;;  %v3635_v50 = vmul.f32 1.442695, %v3616_v63 }
0x10a8   : > { %3675 = vadd.xlane.f32.xlu1 %v7138_v35  ;;  %3673 = vadd.xlane.f32.xlu0 %v7135_v43  ;;  %v3606_v48 = vpop.xlane.xlu0 %3605  ;;  %v3608_v4 = vpop.xlane.xlu1 %3607 }
0x10a9   : > { %5270 = vpow2.f32 %v3633_v9  ;;  %v3625_v57 = vsub.f32 %v7106_v10, %v3606_v48  ;;  %v3626_v14 = vsub.f32 %v7109_v51, %v3608_v4 }
0x10aa   : > { %v7143_v55 = vpop.eup %5258  ;;  %5272 = vpow2.f32 %v3635_v50 }
0x10ab   : > { %v7146_v12 = vpop.eup %5260  ;;  %v3653_v41 = vmul.f32 1.442695, %v3625_v57  ;;  %v3655_v3 = vmul.f32 1.442695, %v3626_v14 }
0x10ac   : > { %3679 = vadd.xlane.f32.xlu1 %v7146_v12  ;;  %3677 = vadd.xlane.f32.xlu0 %v7143_v55  ;;  %v3610_v36 = vpop.xlane.xlu0 %3609  ;;  %v3612_v32 = vpop.xlane.xlu1 %3611 }
0x10ad   : > { %5274 = vpow2.f32 %v3653_v41  ;;  %v3627_v46 = vsub.f32 %v7112_v19, %v3610_v36  ;;  %v3628_v10 = vsub.f32 %v7115_v54, %v3612_v32 }
0x10ae   : > { %v7151_v28 = vpop.eup %5262  ;;  %5276 = vpow2.f32 %v3655_v3 }
0x10af   : > { %v7154_v8 = vpop.eup %5264  ;;  %v3657_v51 = vmul.f32 1.442695, %v3627_v46  ;;  %v3659_v25 = vmul.f32 1.442695, %v3628_v10 }
0x10b0   : > { %3683 = vadd.xlane.f32.xlu1 %v7154_v8  ;;  %3681 = vadd.xlane.f32.xlu0 %v7151_v28 }
0x10b1   : > { %5278 = vpow2.f32 %v3657_v51 }
0x10b2   : > { %v7158_v23 = vpop.eup %5266  ;;  %5280 = vpow2.f32 %v3659_v25 }
0x10b3   : > { %v7160_v30 = vpop.eup %5268 }
0x10b4   : > { %3663 = vadd.xlane.f32.xlu1 %v7160_v30  ;;  %3661 = vadd.xlane.f32.xlu0 %v7158_v23 }
0x10b6   : > { %v7164_v19 = vpop.eup %5270 }
0x10b7   : > { %v7166_v54 = vpop.eup %5272 }
0x10b8   : > { %3667 = vadd.xlane.f32.xlu1 %v7166_v54  ;;  %3665 = vadd.xlane.f32.xlu0 %v7164_v19 }
0x10ba   : > { %v7170_v60 = vpop.eup %5274 }
0x10bb   : > { %v7172_v20 = vpop.eup %5276 }
0x10bc   : > { %3687 = vadd.xlane.f32.xlu1 %v7172_v20  ;;  %3685 = vadd.xlane.f32.xlu0 %v7170_v60 }
0x10be   : > { %v7176_v31 = vpop.eup %5278 }
0x10bf   : > { %v7178_v22 = vpop.eup %5280 }
0x10c0   : > { %3691 = vadd.xlane.f32.xlu1 %v7178_v22  ;;  %3689 = vadd.xlane.f32.xlu0 %v7176_v31 }
0x10d1   : > { %3743 = vrot.lane.b32.xlu1 %v6889_v7, %s5418_s22 }
0x10d5   : > { %3745 = vrot.lane.b32.xlu1 %v6878_v34, %s5418_s22 }
0x10d6   : > { %3741 = vrot.lane.b32.xlu0 %v6883_v0, %s5418_s22 }
0x10d9   : > { %3749 = vrot.lane.b32.xlu1 %v6893_v47, %s5418_s22 }
0x10da   : > { %3747 = vrot.lane.b32.xlu0 %v6886_v37, %s5418_s22 }
0x10dd   : > { %3753 = vrot.lane.b32.xlu1 %v6891_v38, %s5418_s22 }
0x10de   : > { %3751 = vrot.lane.b32.xlu0 %v6897_v39, %s5418_s22 }
0x10e1   : > { %3757 = vrot.lane.b32.xlu1 %v6901_v62, %s5418_s22 }
0x10e2   : > { %3755 = vrot.lane.b32.xlu0 %v6895_v11, %s5418_s22 }
0x10e5   : > { %3761 = vrot.lane.b32.xlu1 %v6899_v61, %s5418_s22 }
0x10e6   : > { %3759 = vrot.lane.b32.xlu0 %v6905_v29, %s5418_s22 }
0x10e9   : > { %3765 = vrot.lane.b32.xlu1 %v6910_v24, %s5418_s22 }
0x10ea   : > { %3763 = vrot.lane.b32.xlu0 %v6903_v33, %s5418_s22 }
0x10ed   : > { %3769 = vrot.lane.b32.xlu1 %v6907_v27, %s5418_s22 }
0x10ee   : > { %3767 = vrot.lane.b32.xlu0 %v6917_v49, %s5418_s22 }
0x10f2   : > { %3771 = vrot.lane.b32.xlu0 %v6912_v5, %s5418_s22  ;;  %s4252_s22 = scalar_lea.sflag [#allocation4], %s5564_s14 }
0x112c   : > { %v3672_v34 = vpop.xlane.xlu1 %3671 }
0x112d   : > { %5282 = vrcp.f32 %v3672_v34  ;;  %v3670_v0 = vpop.xlane.xlu0 %3669 }
0x112e   : > { %5284 = vrcp.f32 %v3670_v0 }
0x1131   : > { %v3676_v37 = vpop.xlane.xlu1 %3675  ;;  %v3674_v7 = vpop.xlane.xlu0 %3673 }
0x1132   : > { %5286 = vrcp.f32 %v3676_v37 }
0x1133   : > { %5288 = vrcp.f32 %v3674_v7 }
0x1135   : > { %v3680_v38 = vpop.xlane.xlu1 %3679  ;;  %v3678_v47 = vpop.xlane.xlu0 %3677 }
0x1136   : > { %5290 = vrcp.f32 %v3680_v38 }
0x1137   : > { %5292 = vrcp.f32 %v3678_v47 }
0x1139   : > { %v3684_v11 = vpop.xlane.xlu1 %3683  ;;  %v3682_v39 = vpop.xlane.xlu0 %3681 }
0x113a   : > { %v5283_v61 = vpop.eup %5282  ;;  %5294 = vrcp.f32 %v3684_v11 }
0x113b   : > { %v5285_v62 = vpop.eup %5284  ;;  %5296 = vrcp.f32 %v3682_v39  ;;  %v3714_v33 = vmul.f32 %v5283_v61, %v7127_v17  ;;  %v5319_v61 = vld [vmem:[%s7414_s5] sm:$0xf] }
0x113c   : > { %v3713_v29 = vmul.f32 %v5285_v62, %v7130_v58  ;;  %v7262_v62 = vrot.slane %v5319_v61, %v3220_v18 }
0x113d   : > { %v3664_v27 = vpop.xlane.xlu1 %3663  ;;  %v3662_v24 = vpop.xlane.xlu0 %3661 }
0x113e   : > { %5298 = vrcp.f32 %v3664_v27  ;;  %v3727_v5 = vpack.c.bf16 %v3714_v33, %v3713_v29 }
0x113f   : > { %v5287_v49 = vpop.eup %5286  ;;  %5300 = vrcp.f32 %v3662_v24 }
0x1140   : > { %v5289_v26 = vpop.eup %5288  ;;  %4939 = vmatprep.mubr.bf16.mxu1 %v3727_v5  ;;  %v3716_v6 = vmul.f32 %v5287_v49, %v7138_v35 }
0x1141   : > { %v3668_v42 = vpop.xlane.xlu1 %3667  ;;  %v3666_v56 = vpop.xlane.xlu0 %3665  ;;  %v3715_v1 = vmul.f32 %v5289_v26, %v7135_v43 }
0x1142   : > { %5302 = vrcp.f32 %v3668_v42 }
0x1143   : > { %v5291_v53 = vpop.eup %5290  ;;  %5304 = vrcp.f32 %v3666_v56  ;;  %v3728_v52 = vpack.c.bf16 %v3716_v6, %v3715_v1 }
0x1144   : > { %v5293_v2 = vpop.eup %5292  ;;  %v3718_v59 = vmul.f32 %v5291_v53, %v7146_v12 }
0x1145   : > { %4940 = vmatmul.mubr.bf16.vlgmr.msra.gmra.mxu1 %v3728_v52  ;;  %v3688_v17 = vpop.xlane.xlu1 %3687  ;;  %v3686_v16 = vpop.xlane.xlu0 %3685  ;;  %v3717_v58 = vmul.f32 %v5293_v2, %v7143_v55 }
0x1146   : > { %5306 = vrcp.f32 %v3688_v17 }
0x1147   : > { %v5295_v40 = vpop.eup %5294  ;;  %5308 = vrcp.f32 %v3686_v16  ;;  %v3729_v44 = vpack.c.bf16 %v3718_v59, %v3717_v58 }
0x1148   : > { %v5297_v13 = vpop.eup %5296  ;;  %v3720_v15 = vmul.f32 %v5295_v40, %v7154_v8 }
0x1149   : > { %4943 = vmatprep.mubr.bf16.mxu1 %v3729_v44  ;;  %v3692_v45 = vpop.xlane.xlu1 %3691  ;;  %v3690_v43 = vpop.xlane.xlu0 %3689  ;;  %v3719_v63 = vmul.f32 %v5297_v13, %v7151_v28 }
0x114a   : > { %5310 = vrcp.f32 %v3692_v45 }
0x114b   : > { %v5299_v35 = vpop.eup %5298  ;;  %5312 = vrcp.f32 %v3690_v43  ;;  %v3730_v9 = vpack.c.bf16 %v3720_v15, %v3719_v63 }
0x114c   : > { %v5301_v50 = vpop.eup %5300  ;;  %v3710_v48 = vmul.f32 %v5299_v35, %v7160_v30 }
0x114d   : > { %4944 = vmatmul.mubr.bf16.gmra.mxu1 %v3730_v9  ;;  %v3709_v4 = vmul.f32 %v5301_v50, %v7158_v23  ;;  %v7251_v34 = vpop.permute.xlu0 %3741 }
0x114f   : > { %v5303_v57 = vpop.eup %5302  ;;  %v3725_v55 = vpack.c.bf16 %v3710_v48, %v3709_v4 }
0x1150   : > { %v5305_v14 = vpop.eup %5304  ;;  %v3712_v12 = vmul.f32 %v5303_v57, %v7166_v54  ;;  %v5419_v54 = vmov 0.0  }
0x1151   : > { %4935 = vmatprep.mubr.bf16.mxu0 %v3725_v55  ;;  %v3711_v41 = vmul.f32 %v5305_v14, %v7164_v19  ;;  %v4464_v19 = vld [vmem:[%s7415_s6 + $0x38] sm:$0xff]  ;;  %4951 = vmatprep.subr.mxu0 %v5419_v54  ;;  %v7255_v37 = vpop.permute.xlu0 %3747 }
0x1153   : > { %v5307_v3 = vpop.eup %5306  ;;  %v3726_v36 = vpack.c.bf16 %v3712_v12, %v3711_v41 }
0x1154   : > { %v5309_v32 = vpop.eup %5308  ;;  %v3722_v46 = vmul.f32 %v5307_v3, %v7172_v20  ;;  %v4462_v20 = vld [vmem:[%s7415_s6 + $0x28] sm:$0xff] }
0x1155   : > { %4936 = vmatmul.mubr.bf16.vlgmr.msra.gmra.mxu0 %v3726_v36  ;;  %v3721_v28 = vmul.f32 %v5309_v32, %v7170_v60  ;;  %v4463_v60 = vld [vmem:[%s7415_s6 + $0x30] sm:$0xff]  ;;  %v3752_v38 = vpop.permute.xlu0 %3751 }
0x1156   : > { %4959 = vmatprep.mubr.msk.f32.mxu0 %vm5420_vm8, %v5419_v54  ;;  %4952 = vmatpush3.msra.mxu0 %v4464_v19 }
0x1157   : > { %v5311_v10 = vpop.eup %5310  ;;  %v3731_v8 = vpack.c.bf16 %v3722_v46, %v3721_v28  ;;  %4953 = vmatprep.subr.mxu0 %v5419_v54 }
0x1158   : > { %v5313_v51 = vpop.eup %5312  ;;  %v3724_v25 = vmul.f32 %v5311_v10, %v7178_v22  ;;  %4954 = vmatpush3.msra.mxu0 %v4463_v60  ;;  %v7249_v22 = vpop.permute.xlu1 %3743 }
0x1159   : > { %4947 = vmatprep.mubr.bf16.mxu1 %v3731_v8  ;;  %v3723_v23 = vmul.f32 %v5313_v51, %v7176_v31  ;;  %4955 = vmatprep.subr.mxu0 %v5419_v54  ;;  %v4461_v31 = vld [vmem:[%s7415_s6 + $0x20] sm:$0xff]  ;;  %v3756_v11 = vpop.permute.xlu0 %3755 }
0x115a   : > { %4956 = vmatpush3.msra.mxu0 %v4462_v20 }
0x115b   : > { %v3732_v30 = vpack.c.bf16 %v3724_v25, %v3723_v23  ;;  %4957 = vmatprep.subr.mxu0 %v5419_v54 }
0x115c   : > { %4958 = vmatpush3.msra.mxu0 %v4461_v31  ;;  %v7253_v0 = vpop.permute.xlu1 %3745 }
0x115d   : > { %4948 = vmatmul.mubr.bf16.gmra.mxu1 %v3732_v30  ;;  %4962 = vmatprep.subr.mxu0 %v5419_v54  ;;  %v3760_v6 = vpop.permute.xlu0 %3759 }
0x1160   : > { %v3750_v7 = vpop.permute.xlu1 %3749 }
0x1161   : > { %v3764_v9 = vpop.permute.xlu0 %3763 }
0x1164   : > { %v3754_v47 = vpop.permute.xlu1 %3753 }
0x1168   : > { %v3758_v27 = vpop.permute.xlu1 %3757 }
0x116c   : > { %v3762_v18 = vpop.permute.xlu1 %3761 }
0x1205   : > { %v4941_v39 = vpop.f32.mrf.mxu1 }
0x1206   : > { %v3848_v33 = vadd.f32 %v4941_v39, %v3754_v47 }
0x1207   : > { %v3839_v29 = vpop.f32.mrf.mxu1 }
0x1208   : > { %v3840_v24 = vadd.f32 %v3839_v29, %v3750_v7  ;;  %v3896_v5 = vadd.f32 %v7262_v62, %v3848_v33 }
0x1209   : > { %v4942_v49 = vpop.f32.mrf.mxu1 }
0x120a   : > { %v3851_v26 = vadd.f32 %v4942_v49, %v3756_v11  ;;  %v3894_v42 = vadd.f32 %v7262_v62, %v3840_v24  ;;  %v3964_v52 = vsel %vm555_vm1, %v3896_v5, -inf  ;;  %v3973_v2 = vsel %vm555_vm1, %v3896_v5, 0.0 }
0x120b   : > { %v3842_v56 = vpop.f32.mrf.mxu1 }
0x120c   : > { %v3897_v1 = vadd.f32 %v7262_v62, %v3851_v26  ;;  %v3843_v53 = vadd.f32 %v3842_v56, %v3752_v38  ;;  %v3945_v58 = vsel %vm555_vm1, %v3894_v42, -inf  ;;  %v3954_v45 = vsel %vm555_vm1, %v3894_v42, 0.0 }
0x120d   : > { %v4945_v21 = vpop.f32.mrf.mxu1 }
0x120e   : > { %v3965_v59 = vsel %vm555_vm1, %v3897_v1, -inf  ;;  %v3974_v17 = vsel %vm555_vm1, %v3897_v1, 0.0  ;;  %v3895_v16 = vadd.f32 %v7262_v62, %v3843_v53  ;;  %v3864_v13 = vadd.f32 %v4945_v21, %v3762_v18  ;;  %v3766_v21 = vpop.permute.xlu1 %3765 }
0x120f   : > { %v3966_v40 = vmax.f32 %v3964_v52, %v3965_v59  ;;  %v3975_v44 = vadd.f32 %v3974_v17, %v3973_v2  ;;  %v3855_v15 = vpop.f32.mrf.mxu1 }
0x1210   : > { %v3946_v43 = vsel %vm555_vm1, %v3895_v16, -inf  ;;  %v3955_v63 = vsel %vm555_vm1, %v3895_v16, 0.0  ;;  %v3856_v35 = vadd.f32 %v3855_v15, %v3758_v27  ;;  %v3900_v36 = vadd.f32 %v7262_v62, %v3864_v13 }
0x1211   : > { %v3967_v50 = vrot.slane %v3966_v40, 4  ;;  %v3976_v48 = vrot.slane %v3975_v44, 4  ;;  %v3947_v4 = vmax.f32 %v3945_v58, %v3946_v43  ;;  %v3956_v57 = vadd.f32 %v3955_v63, %v3954_v45  ;;  %v4946_v55 = vpop.f32.mrf.mxu1 }
0x1212   : > { %v3867_v14 = vadd.f32 %v4946_v55, %v3764_v9  ;;  %v3898_v46 = vadd.f32 %v7262_v62, %v3856_v35  ;;  %v4002_v7 = vsel %vm555_vm1, %v3900_v36, -inf  ;;  %v4011_v11 = vsel %vm555_vm1, %v3900_v36, 0.0  ;;  %v3768_v35 = vpop.permute.xlu0 %3767 }
0x1213   : > { %v3977_v12 = vadd.f32 %v3976_v48, %v3975_v44  ;;  %v3948_v41 = vrot.slane %v3947_v4, 4  ;;  %v3957_v3 = vrot.slane %v3956_v57, 4  ;;  %v3858_v32 = vpop.f32.mrf.mxu1  ;;  %v3968_v8 = vmax.f32 %v3966_v40, %v3967_v50 }
0x1214   : > { %v3901_v28 = vadd.f32 %v7262_v62, %v3867_v14  ;;  %v3859_v10 = vadd.f32 %v3858_v32, %v3760_v6  ;;  %v3992_v27 = vsel %vm555_vm1, %v3898_v46, 0.0  ;;  %v3983_v56 = vsel %vm555_vm1, %v3898_v46, -inf  ;;  %v3770_v14 = vpop.permute.xlu1 %3769 }
0x1215   : > { %v3978_v51 = vrot.slane %v3977_v12, 2  ;;  %v3949_v25 = vmax.f32 %v3947_v4, %v3948_v41  ;;  %v3958_v23 = vadd.f32 %v3957_v3, %v3956_v57  ;;  %v4937_v30 = vpop.f32.mrf.mxu0  ;;  %v3969_v33 = vrot.slane %v3968_v8, 2 }
0x1216   : > { %v4003_v19 = vsel %vm555_vm1, %v3901_v28, -inf  ;;  %v3899_v60 = vadd.f32 %v7262_v62, %v3859_v10  ;;  %v4012_v38 = vsel %vm555_vm1, %v3901_v28, 0.0  ;;  %v3832_v52 = vadd.f32 %v4937_v30, %v7253_v0 }
0x1217   : > { %v3950_v20 = vrot.slane %v3949_v25, 2  ;;  %v3959_v31 = vrot.slane %v3958_v23, 2  ;;  %v3823_v47 = vpop.f32.mrf.mxu0  ;;  %v4004_v39 = vmax.f32 %v4002_v7, %v4003_v19  ;;  %v3979_v29 = vadd.f32 %v3978_v51, %v3977_v12 }
0x1218   : > { %v3993_v61 = vsel %vm555_vm1, %v3899_v60, 0.0  ;;  %v3984_v24 = vsel %vm555_vm1, %v3899_v60, -inf  ;;  %v4013_v49 = vadd.f32 %v4012_v38, %v4011_v11  ;;  %v7289_v18 = vmax.f32 %v3968_v8, %v3969_v33 }
0x1219   : > { %v3951_v5 = vmax.f32 %v3949_v25, %v3950_v20  ;;  %v3994_v26 = vadd.f32 %v3993_v61, %v3992_v27  ;;  %v4938_v6 = vpop.f32.mrf.mxu0  ;;  %v3960_v42 = vadd.f32 %v3959_v31, %v3958_v23  ;;  %v4005_v1 = vrot.slane %v4004_v39, 4  ;;  %v3772_v20 = vpop.permute.xlu0 %3771 }
0x121a   : > { %v3985_v53 = vmax.f32 %v3983_v56, %v3984_v24  ;;  %v3980_v2 = vrot.slane %v3979_v29, 1  ;;  %v4014_v16 = vrot.slane %v4013_v49, 4  ;;  %v3824_v15 = vadd.f32 %v3823_v47, %v7251_v34 }
0x121b   : > { %v3952_v17 = vrot.slane %v3951_v5, 1  ;;  %v3995_v58 = vrot.slane %v3994_v26, 4  ;;  %v3826_v40 = vpop.f32.mrf.mxu0  ;;  %v3961_v44 = vrot.slane %v3960_v42, 1  ;;  %v7291_v13 = vmax.f32 %v4004_v39, %v4005_v1 }
0x121c   : > { %v3986_v45 = vrot.slane %v3985_v53, 4  ;;  %v3892_v43 = vadd.f32 %v7262_v62, %v3832_v52  ;;  %v3971_v0 = vrot.slane %v7289_v18, 1  ;;  %v7296_v9 = vadd.f32 %v3980_v2, %v3979_v29 }
0x121d   : > { %v4949_v59 = vpop.f32.mrf.mxu1  ;;  %v3835_v50 = vadd.f32 %v4938_v6, %v7255_v37  ;;  %v3827_v48 = vadd.f32 %v3826_v40, %v7249_v22  ;;  %v7300_v4 = vmax.f32 %v3951_v5, %v3952_v17  ;;  %v7302_v57 = vadd.f32 %v4014_v16, %v4013_v49 }
0x121e   : > { %v3996_v55 = vadd.f32 %v3995_v58, %v3994_v26  ;;  %v3890_v34 = vadd.f32 %v7262_v62, %v3824_v15  ;;  %v7305_v12 = vadd.f32 %v3961_v44, %v3960_v42  ;;  %v4007_v41 = vrot.slane %v7291_v13, 2 }
0x121f   : > { %v3871_v63 = vpop.f32.mrf.mxu1  ;;  %v3893_v3 = vadd.f32 %v7262_v62, %v3835_v50  ;;  %v3891_v36 = vadd.f32 %v7262_v62, %v3827_v48  ;;  %v7310_v32 = vmax.f32 %v3985_v53, %v3986_v45  ;;  %v3926_v22 = vsel %vm555_vm1, %v3892_v43, -inf }
0x1220   : > { %v3935_v37 = vsel %vm555_vm1, %v3892_v43, 0.0  ;;  %v3880_v46 = vadd.f32 %v4949_v59, %v3770_v14  ;;  %v3997_v23 = vrot.slane %v3996_v55, 2  ;;  %v3906_v30 = vsel %vm555_vm1, %v3890_v34, -inf }
0x1221   : > { %v4950_v28 = vpop.f32.mrf.mxu1  ;;  %v3927_v10 = vsel %vm555_vm1, %v3893_v3, -inf  ;;  %v3936_v8 = vsel %vm555_vm1, %v3893_v3, 0.0  ;;  %v3907_v51 = vsel %vm555_vm1, %v3891_v36, -inf  ;;  %v3916_v25 = vsel %vm555_vm1, %v3891_v36, 0.0 }
0x1222   : > { %v3915_v19 = vsel %vm555_vm1, %v3890_v34, 0.0  ;;  %v3928_v60 = vmax.f32 %v3926_v22, %v3927_v10  ;;  %v4016_v31 = vrot.slane %v7302_v57, 2  ;;  %v3937_v7 = vadd.f32 %v3936_v8, %v3935_v37 }
0x1223   : > { %v3908_v38 = vmax.f32 %v3906_v30, %v3907_v51  ;;  %v3917_v47 = vadd.f32 %v3916_v25, %v3915_v19  ;;  %v3904_v39 = vadd.f32 %v7262_v62, %v3880_v46  ;;  %v3872_v61 = vadd.f32 %v3871_v63, %v3766_v21  ;;  %v3874_v29 = vpop.f32.mrf.mxu1 }
0x1224   : > { %v3929_v11 = vrot.slane %v3928_v60, 4  ;;  %v3883_v33 = vadd.f32 %v4950_v28, %v3772_v20  ;;  %v3988_v27 = vrot.slane %v7310_v32, 2  ;;  %v3938_v24 = vrot.slane %v3937_v7, 4 }
0x1225   : > { %v3909_v5 = vrot.slane %v3908_v38, 4  ;;  %v3918_v49 = vrot.slane %v3917_v47, 4  ;;  %v3998_v26 = vadd.f32 %v3997_v23, %v3996_v55  ;;  %v3902_v42 = vadd.f32 %v7262_v62, %v3872_v61 }
0x1226   : > { %v3930_v6 = vmax.f32 %v3928_v60, %v3929_v11  ;;  %v3905_v56 = vadd.f32 %v7262_v62, %v3883_v33  ;;  %v3939_v1 = vadd.f32 %v3938_v24, %v3937_v7  ;;  %v3875_v2 = vadd.f32 %v3874_v29, %v3768_v35 }
0x1227   : > { %v3910_v53 = vmax.f32 %v3908_v38, %v3909_v5  ;;  %v3919_v52 = vadd.f32 %v3918_v49, %v3917_v47  ;;  %v4040_v21 = vsel %vm555_vm1, %v3904_v39, -inf  ;;  %v4049_v17 = vsel %vm555_vm1, %v3904_v39, 0.0 }
0x1228   : > { %v3931_v59 = vrot.slane %v3930_v6, 2  ;;  %v4041_v16 = vsel %vm555_vm1, %v3905_v56, -inf  ;;  %v3940_v58 = vrot.slane %v3939_v1, 2  ;;  %v4021_v43 = vsel %vm555_vm1, %v3902_v42, -inf }
0x1229   : > { %v3911_v40 = vrot.slane %v3910_v53, 2  ;;  %v3920_v44 = vrot.slane %v3919_v52, 2  ;;  %v4042_v15 = vmax.f32 %v4040_v21, %v4041_v16  ;;  %v4050_v63 = vsel %vm555_vm1, %v3905_v56, 0.0 }
0x122a   : > { %v3932_v45 = vmax.f32 %v3930_v6, %v3931_v59  ;;  %v3903_v50 = vadd.f32 %v7262_v62, %v3875_v2  ;;  %v3941_v35 = vadd.f32 %v3940_v58, %v3939_v1  ;;  %v4030_v34 = vsel %vm555_vm1, %v3902_v42, 0.0 }
0x122b   : > { %v3912_v48 = vmax.f32 %v3910_v53, %v3911_v40  ;;  %v3921_v55 = vadd.f32 %v3920_v44, %v3919_v52  ;;  %v4043_v14 = vrot.slane %v4042_v15, 4  ;;  %v4051_v3 = vadd.f32 %v4050_v63, %v4049_v17 }
0x122c   : > { %v4022_v36 = vsel %vm555_vm1, %v3903_v50, -inf  ;;  %v4031_v22 = vsel %vm555_vm1, %v3903_v50, 0.0  ;;  %v3933_v37 = vrot.slane %v3932_v45, 1  ;;  %v3942_v46 = vrot.slane %v3941_v35, 1 }
0x122d   : > { %v3913_v28 = vrot.slane %v3912_v48, 1  ;;  %v3922_v10 = vrot.slane %v3921_v55, 1  ;;  %v4017_v8 = vadd.f32 %v4016_v31, %v7302_v57  ;;  %v4052_v51 = vrot.slane %v4051_v3, 4 }
0x122e   : > { %v4023_v62 = vmax.f32 %v4021_v43, %v4022_v36  ;;  %v4032_v25 = vadd.f32 %v4031_v22, %v4030_v34  ;;  %v3999_v23 = vrot.slane %v3998_v26, 1  ;;  %v3943_v30 = vadd.f32 %v3942_v46, %v3941_v35 }
0x122f   : > { %v3914_v19 = vmax.f32 %v3912_v48, %v3913_v28  ;;  %v3923_v60 = vadd.f32 %v3922_v10, %v3921_v55  ;;  %v3989_v20 = vmax.f32 %v7310_v32, %v3988_v27  ;;  %v4053_v7 = vadd.f32 %v4052_v51, %v4051_v3 }
0x1230   : > { %v4024_v38 = vrot.slane %v4023_v62, 4  ;;  %v4033_v47 = vrot.slane %v4032_v25, 4  ;;  %v3934_v11 = vmax.f32 %v3932_v45, %v3933_v37  ;;  %v3944_v39 = vmul.f32 0.0625, %v3943_v30 }
0x1231   : > { %v3925_v61 = vmul.f32 0.0625, %v3923_v60  ;;  %v4044_v33 = vmax.f32 %v4042_v15, %v4043_v14  ;;  %v3963_v29 = vmul.f32 0.0625, %v7305_v12  ;;  %v4054_v57 = vrot.slane %v4053_v7, 2 }
0x1232   : > { %v4025_v31 = vmax.f32 %v4023_v62, %v4024_v38  ;;  %v4034_v24 = vadd.f32 %v4033_v47, %v4032_v25  ;;  %v4018_v5 = vrot.slane %v4017_v8, 1  ;;  %v4000_v49 = vadd.f32 %v3999_v23, %v3998_v26  ;;  %v4088_v62 = vld [vmem:[%s7415_s6 + $0x10] sm:$0xff]  ;;  %v4087_v23 = vld [vmem:[%s7415_s6 + $0x8] sm:$0xff]  ;;  %v4467_v47 = vld [vmem:[%s7416_s7] ss:$0 sm:$0xff] }
0x1233   : > { %v4060_v6 = vsel %vm4059_vm9, %v3914_v19, %v3934_v11  ;;  %v4076_v42 = vsel %vm4059_vm9, %v3925_v61, %v3944_v39  ;;  %v4055_v27 = vadd.f32 %v4054_v57, %v4053_v7  ;;  %v3982_v53 = vmul.f32 0.0625, %v7296_v9  ;;  %v4086_v19 = vld [vmem:[%s7415_s6] sm:$0xff] }
0x1234   : > { %v4077_v32 = vsel %vm4061_vm10, %v4076_v42, %v3963_v29  ;;  %v4026_v56 = vrot.slane %v4025_v31, 2  ;;  %v4035_v1 = vrot.slane %v4034_v24, 2  ;;  %v4008_v12 = vmax.f32 %v7291_v13, %v4007_v41 }
0x1235   : > { %v3990_v52 = vrot.slane %v3989_v20, 1  ;;  %v4045_v2 = vrot.slane %v4044_v33, 2  ;;  %v4062_v26 = vsel %vm4061_vm10, %v4060_v6, %v7300_v4  ;;  %v4056_v59 = vrot.slane %v4055_v27, 1 }
0x1236   : > { %v4027_v21 = vmax.f32 %v4025_v31, %v4026_v56  ;;  %v4036_v17 = vadd.f32 %v4035_v1, %v4034_v24  ;;  %v3972_v16 = vmax.f32 %v7289_v18, %v3971_v0  ;;  %v4019_v58 = vadd.f32 %v4018_v5, %v4017_v8  ;;  %v4089_v8 = vld [vmem:[%s7415_s6 + $0x18] sm:$0xff] }
0x1237   : > { %v4078_v40 = vsel %vm4063_vm11, %v4077_v32, %v3982_v53  ;;  %v4001_v9 = vmul.f32 0.0625, %v4000_v49  ;;  %v4009_v13 = vrot.slane %v4008_v12, 1  ;;  %v4046_v41 = vmax.f32 %v4044_v33, %v4045_v2 }
0x1238   : > { %v4028_v44 = vrot.slane %v4027_v21, 1  ;;  %v4037_v15 = vrot.slane %v4036_v17, 1  ;;  %v4057_v45 = vadd.f32 %v4056_v59, %v4055_v27  ;;  %v4064_v43 = vsel %vm4063_vm11, %v4062_v26, %v3972_v16 }
0x1239   : > { %v3991_v4 = vmax.f32 %v3989_v20, %v3990_v52  ;;  %v4079_v50 = vsel %vm4065_vm13, %v4078_v40, %v4001_v9  ;;  %v4020_v35 = vmul.f32 0.0625, %v4019_v58  ;;  %v4010_v0 = vmax.f32 %v4008_v12, %v4009_v13 }
0x123a   : > { %v4038_v63 = vadd.f32 %v4037_v15, %v4036_v17  ;;  %v4029_v48 = vmax.f32 %v4027_v21, %v4028_v44  ;;  %v4047_v34 = vrot.slane %v4046_v41, 1  ;;  %v4058_v14 = vmul.f32 0.0625, %v4057_v45 }
0x123b   : > { %v4066_v18 = vsel %vm4065_vm13, %v4064_v43, %v3991_v4  ;;  %v4080_v3 = vsel %vm4067_vm12, %v4079_v50, %v4020_v35 }
0x123c   : > { %v4039_v55 = vmul.f32 0.0625, %v4038_v63  ;;  %v4068_v37 = vsel %vm4067_vm12, %v4066_v18, %v4010_v0  ;;  %v4048_v10 = vmax.f32 %v4046_v41, %v4047_v34 }
0x123d   : > { %v4070_v28 = vsel %vm4069_vm14, %v4068_v37, %v4029_v48 }
0x123e   : > { %v4081_v36 = vsel %vm4069_vm14, %v4080_v3, %v4039_v55  ;;  %v4072_v25 = vsel %vm4071_vm0, %v4070_v28, %v4048_v10 }
0x123f   : > { %v4082_v22 = vsel %vm4071_vm0, %v4081_v36, %v4058_v14  ;;  %v4074_v30 = vmul.f32 0.01, %v4072_v25  ;;  %vm4073_vm2 = vcmp.gt.f32.partialorder %v4072_v25, 0.0 }
0x1240   : > { %vm4083_vm15 = vcmp.gt.f32.partialorder %v4082_v22, 0.0  ;;  %v4084_v46 = vmul.f32 0.01, %v4082_v22 }
0x1241   : > { %v4075_v60 = vsel %vm4073_vm2, %v4072_v25, %v4074_v30 }
0x1242   : > { %v4085_v51 = vsel %vm4083_vm15, %v4082_v22, %v4084_v46 }
0x1243   : > { %4960 = vmatmul.mubr.msk.f32.vlgmr.msra.gmra.mxu0 %vm555_vm1, %v4085_v51 }
0x1244   : > { %4963 = vmatpush3.msra.mxu0 %v4089_v8  ;;  %4970 = vmatprep.mubr.msk.f32.mxu0 %vm5420_vm8, %v5419_v54 }
0x1245   : > { %4964 = vmatprep.subr.mxu0 %v5419_v54 }
0x1246   : > { %4965 = vmatpush3.msra.mxu0 %v4088_v62 }
0x1247   : > { %4966 = vmatprep.subr.mxu0 %v5419_v54 }
0x1248   : > { %4967 = vmatpush3.msra.mxu0 %v4087_v23 }
0x1249   : > { %4968 = vmatprep.subr.mxu0 %v5419_v54 }
0x124a   : > { %4969 = vmatpush3.msra.mxu0 %v4086_v19 }
0x124b   : > { %4971 = vmatmul.mubr.msk.f32.vlgmr.msra.gmra.mxu0 %vm555_vm1, %v4075_v60 }
0x1303   : > { %v4164_v20 = vpop.f32.mrf.mxu0 }
0x1305   : > { %v4961_v7 = vpop.f32.mrf.mxu0 }
0x130b   : > { %v4237_v38 = vpop.f32.mrf.mxu0 }
0x130c   : > { %v4238_v11 = vadd.f32 %v4237_v38, %v4164_v20 }
0x130d   : > { %v4972_v39 = vpop.f32.mrf.mxu0 }
0x130e   : > { %v4248_v54 = vadd.f32 %v4467_v47, %v4238_v11 }
0x1310   : > { %4250 = vst.msk [vmem:[%s339_s16] sm:$0xff] %vm4249_vm3, %v4248_v54 }
0x1311   : > { %5361 = shalt.err (!%p5358_p0)
}
0x1312   : > { %s5362_s12 = scalar_lea.hbm %s4263_s23, 128  ;;  %s5366_s25 = scalar_lea.hbm %s7417_s8, 256 }
0x1313   : > { %p5363_p2 = scmp.ne.s32.totalorder %s4263_s23, %s5362_s12  ;;  %p5367_p3 = scmp.lt.s32.totalorder %s4263_s23, %s7417_s8 }
0x1314   : > { %p5368_p6 = scmp.lt.s32.totalorder %s5366_s25, %s5362_s12 }
0x1315   : > { %p5364_p9 = pnand %p5363_p2, %p7475_p13 }
0x1316   : > { %p5369_p11 = por %p5368_p6, %p5367_p3 }
0x1317   : > { %p5365_p1 = pneg %p5364_p9 }
0x1319   : > { %p5370_p12 = pnand %p5369_p11, %p5365_p1 }
0x131b   : > { %5373 = shalt.err (!%p5370_p12)
}
0x131c   : > { %4991 = dma.vmem_to_hbm [thread:$0]  (%p7475_p13), %s4266_s13, 128, %s4263_s23, %s4252_s22  }
0x131d PF: > { %s4277_s21 = sand.u32 1, %s5400_s27   ;;  %p7476_p4 = scmp.ne.s32.totalorder %s7440_s18, 0 }
0x131e   : > { %p7477_p5 = scmp.ge.s32.totalorder %s5412_s30, 2  ;;  %s4278_s15 = scalar_lea.sflag [#allocation4], %s4277_s21 }
0x1320   : > { %p4998_p7 = pnand %p7477_p5, %p7476_p4 }
0x1322   : > { %p4999_p8 = pneg %p4998_p7 }
0x1324   : > { %5395 = dma.done.wait (%p4999_p8), %s4278_s15, 128  }
0x1325   : > { %5397 = vsyncadd (%p4999_p8), %s4278_s15, 4294967168  ;;  %s7478_s24 = sld [smem:[#allocation8_spill]]  ;;  %p21_p10 = scmp.ge.s32.totalorder %s5492_s11, 4  }
0x1326   : > { %s7479_s27 = smov %s5404_s28  ;;  %s7480_s28 = smov %s5408_s29 }
0x1327   : > { %s7482_s30 = smov %s5492_s11  ;;  %23 = sbr.rel (!%p21_p10) target bundleno = 5 (0x5), region = 106 }
0x132b   : > { %s7481_s29 = smov %s7478_s24 }
0x132c   :  { %4283 = vsyncpa [#allocation3], 1 }
0x132d   :  { %4285 = vsyncpa [#allocation3 + $0x1], 1 }
0x132e   :  { %4286 = vsyncpa [#allocation4], 1 }
0x132f   :  { %4288 = vsyncpa [#allocation4 + $0x1], 1 }

</bundles_post_ra>
